<compile_context>
chip_gen: v7x
topology: tpu7x:2x2x1
jax: 0.10.0
libtpu: 0.0.40
codegen_flags: <defaults>
</compile_context>

<pallas_src>
import math
import functools

import jax
import jax.numpy as jnp
from jax.experimental import pallas as pl

# Keep XLA's f32 matmuls at full precision so the pure-JAX reference matches the
# kernel's f32-accumulated dots on real TPUs (default precision would use bf16 passes).
jax.config.update("jax_default_matmul_precision", "highest")


def _layernorm(x, gamma, beta, eps=1e-5):
    # PyTorch LayerNorm: biased variance over the last dim, eps=1e-5, affine.
    # One-pass statistics (var = E[x^2] - E[x]^2): one less dependent lane reduction.
    # Fine at f32 / these magnitudes; switch to two-pass if activations grow large.
    mean = jnp.mean(x, axis=-1, keepdims=True)
    mean_sq = jnp.mean(x * x, axis=-1, keepdims=True)
    var = mean_sq - mean * mean
    return (x - mean) * jax.lax.rsqrt(var + eps) * gamma + beta


def residual_transform_kernel(
    q_ref, k_ref, v_ref,          # (B, S, D) f32 each
    wqkv_ref, bqkv_ref,           # (3, D, A) matmul_dtype, (3, 1, A) f32 (wq/bq pre-scaled)
    g1_ref, be1_ref,              # (1, A) qkv_layernorm affine
    wm_ref, bm_ref,               # (D, A) matmul_dtype, (1, A) f32  (NormMLP linear)
    g2_ref, be2_ref,              # (1, A) NormMLP layernorm affine
    o_ref,                        # (B, S, A) f32
    *, n_heads, head_dim, matmul_dtype):
    B, S, D = q_ref.shape
    H, Dh = n_heads, head_dim
    A = H * Dh
    BS = B * S

    def mm(x, w):
        # Matmul operands in matmul_dtype (bf16 for MXU-native speed at production
        # sizes), accumulation always f32.
        return jnp.dot(x.astype(matmul_dtype), w, preferred_element_type=jnp.float32)

    # ---- fold batch: q/k/v projections on (B*S, D) rows (bigger MXU M) ----------
    q2 = q_ref[...].reshape(BS, D)
    mq = mm(q2, wqkv_ref[0]) + bqkv_ref[0]          # scale folded into wq/bq
    mk = mm(k_ref[...].reshape(BS, D), wqkv_ref[1]) + bqkv_ref[1]
    mv = mm(v_ref[...].reshape(BS, D), wqkv_ref[2]) + bqkv_ref[2]

    # ---- head split: (B*S, A) -> (B*H, S, Dh), mirrors torch view+permute -------
    def split_heads(m):
        m = m.astype(matmul_dtype).reshape(B, S, H, Dh)
        return jnp.transpose(m, (0, 2, 1, 3)).reshape(B * H, S, Dh)

    qh, kh, vh = split_heads(mq), split_heads(mk), split_heads(mv)

    # ---- batched scaled dot-product attention (scale pre-folded) ----------------
    scores = jnp.einsum("bqd,bkd->bqk", qh, kh,
                        preferred_element_type=jnp.float32)          # (B*H, S, S)
    scores = scores - jnp.max(scores, axis=-1, keepdims=True)
    p = jnp.exp(scores)
    p = p / jnp.sum(p, axis=-1, keepdims=True)                       # exact softmax
    ctx = jnp.einsum("bqk,bkd->bqd", p.astype(matmul_dtype), vh,
                     preferred_element_type=jnp.float32)             # (B*H, S, Dh)

    # ---- merge heads back and qkv_layernorm --------------------------------------
    ctx = jnp.transpose(ctx.reshape(B, H, S, Dh), (0, 2, 1, 3)).reshape(BS, A)
    ctx = _layernorm(ctx, g1_ref[...], be1_ref[...])

    # ---- residual 1: activations = q + attention(q, k, v) ------------------------
    act = q2 + ctx

    # ---- NormMLP: layer_norm(linear(relu(activations))), folded over B*S rows ----
    h = jnp.maximum(act, 0.0)
    h = mm(h, wm_ref[...]) + bm_ref[...]
    h = _layernorm(h, g2_ref[...], be2_ref[...])

    # ---- residual 2 ---------------------------------------------------------------
    o_ref[...] = (act + h).reshape(B, S, A)


def pack_params(params, n_heads, matmul_dtype=jnp.float32):
    """One-time (init-time) packing: stack q/k/v projection weights, fold the
    1/sqrt(head_dim) attention scale into the query projection, and cast the matmul
    weights to matmul_dtype.  NOT per-call work."""
    A = params["wq"].shape[1]
    head_dim = A // n_heads
    scale = 1.0 / math.sqrt(head_dim)
    wqkv = jnp.stack([params["wq"] * scale, params["wk"], params["wv"]],
                     axis=0).astype(matmul_dtype)                    # (3, D, A)
    bqkv = jnp.stack([params["bq"] * scale, params["bk"], params["bv"]],
                     axis=0)                                         # (3, 1, A) f32
    return {
        "wqkv": wqkv, "bqkv": bqkv,
        "g1": params["g1"], "be1": params["be1"],
        "wm": params["wm"].astype(matmul_dtype), "bm": params["bm"],
        "g2": params["g2"], "be2": params["be2"],
    }


def residual_transform(q, k, v, packed, n_heads):
    B, S, D = q.shape
    A = packed["wqkv"].shape[2]
    head_dim = A // n_heads
    matmul_dtype = packed["wqkv"].dtype
    wbytes = jnp.dtype(matmul_dtype).itemsize

    kernel = functools.partial(residual_transform_kernel,
                               n_heads=n_heads, head_dim=head_dim,
                               matmul_dtype=matmul_dtype)

    BS = B * S
    flops = (2 * BS * D * 3 * A                 # q/k/v projections
             + 4 * B * n_heads * S * S * head_dim   # attention scores + context
             + 2 * BS * D * A)                  # NormMLP linear
    transcendentals = B * n_heads * S * S + 2 * BS      # exp + 2 rsqrt per row
    bytes_accessed = (4 * 4 * BS * D                     # q, k, v in + out
                      + wbytes * (3 * D * A + D * A)     # wqkv + wm
                      + 4 * 9 * A)                       # biases + affines

    # Single invocation, no grid: at these shapes everything (inputs + weights
    # + output ~ 0.5 MiB) fits comfortably in VMEM and per-step grid overhead
    # would dominate.  For large B, re-introduce a ("parallel",) batch grid.
    return pl.pallas_call(
        kernel,
        out_shape=jax.ShapeDtypeStruct((B, S, A), jnp.float32),
        cost_estimate=pl.CostEstimate(flops=int(flops),
                                      transcendentals=int(transcendentals),
                                      bytes_accessed=int(bytes_accessed)),
    )(q, k, v,
      packed["wqkv"], packed["bqkv"],
      packed["g1"], packed["be1"],
      packed["wm"], packed["bm"],
      packed["g2"], packed["be2"])


def residual_transform_ref(q, k, v, params, n_heads, matmul_dtype=jnp.float32):
    """Pure-JAX reference mirroring the PyTorch forward.  When matmul_dtype=bf16 it
    quantizes every matmul's operands the same way the kernel's bf16 path does
    (accumulation stays f32, everything else f32)."""
    B, S, D = q.shape
    A = params["wq"].shape[1]
    Dh = A // n_heads

    def ln(x, g, b, eps=1e-5):
        mean = jnp.mean(x, axis=-1, keepdims=True)
        var = jnp.mean((x - mean) ** 2, axis=-1, keepdims=True)
        return (x - mean) * jax.lax.rsqrt(var + eps) * g + b

    def mm(a, w):
        return jnp.dot(a.astype(matmul_dtype), w.astype(matmul_dtype),
                       preferred_element_type=jnp.float32)

    mq = mm(q, params["wq"]) + params["bq"]
    mk = mm(k, params["wk"]) + params["bk"]
    mv = mm(v, params["wv"]) + params["bv"]

    def split(x):  # [B,S,A] -> [B,H,S,Dh]
        return x.reshape(B, S, n_heads, Dh).transpose(0, 2, 1, 3)

    Q, K, V = split(mq), split(mk), split(mv)
    scores = jnp.einsum("bhqd,bhkd->bhqk",
                        Q.astype(matmul_dtype), K.astype(matmul_dtype),
                        preferred_element_type=jnp.float32) / math.sqrt(Dh)
    probs = jax.nn.softmax(scores, axis=-1)
    ctx = jnp.einsum("bhqk,bhkd->bhqd",
                     probs.astype(matmul_dtype), V.astype(matmul_dtype),
                     preferred_element_type=jnp.float32)
    ctx = ctx.transpose(0, 2, 1, 3).reshape(B, S, A)
    ctx = ln(ctx, params["g1"], params["be1"])

    act = q + ctx
    h = mm(jax.nn.relu(act), params["wm"]) + params["bm"]
    h = ln(h, params["g2"], params["be2"])
    return act + h


def init_params(key, D):
    ks = jax.random.split(key, 8)
    s = 0.05
    return {
        "wq": jax.random.normal(ks[0], (D, D), jnp.float32) * s,
        "bq": jax.random.normal(ks[1], (1, D), jnp.float32) * s,
        "wk": jax.random.normal(ks[2], (D, D), jnp.float32) * s,
        "bk": jax.random.normal(ks[3], (1, D), jnp.float32) * s,
        "wv": jax.random.normal(ks[4], (D, D), jnp.float32) * s,
        "bv": jax.random.normal(ks[5], (1, D), jnp.float32) * s,
        # qkv_layernorm affine (torch default init: gamma=1, beta=0)
        "g1": jnp.ones((1, D), jnp.float32),
        "be1": jnp.zeros((1, D), jnp.float32),
        # NormMLP linear + layernorm
        "wm": jax.random.normal(ks[6], (D, D), jnp.float32) * s,
        "bm": jax.random.normal(ks[7], (1, D), jnp.float32) * s,
        "g2": jnp.ones((1, D), jnp.float32),
        "be2": jnp.zeros((1, D), jnp.float32),
    }


if __name__ == "__main__":
    # Small shapes consistent with the module:
    #   n_neighbours (= memory slots) = 8, key_size = hidden_dim = D = 128,
    #   n_heads = 4 (head_dim = 32), batch = 2.
    B, S, D, H = 2, 8, 128, 4

    key = jax.random.PRNGKey(0)
    kq, kk, kv, kp = jax.random.split(key, 4)
    q = jax.random.normal(kq, (B, S, D), jnp.float32)
    k = jax.random.normal(kk, (B, S, D), jnp.float32)
    v = jax.random.normal(kv, (B, S, D), jnp.float32)
    params = init_params(kp, D)

    # --- f32 path: tight check against the torch-faithful reference --------------
    packed_f32 = pack_params(params, n_heads=H, matmul_dtype=jnp.float32)
    out = jax.block_until_ready(residual_transform(q, k, v, packed_f32, n_heads=H))
    ref = residual_transform_ref(q, k, v, params, n_heads=H)
    assert out.shape == (B, S, D)
    assert jnp.allclose(out, ref, atol=1e-3, rtol=1e-3), "f32 mismatch vs JAX reference"

    # --- bf16 matmul-operand path (per perf review): check against a reference
    #     using the same operand quantization (accumulation f32 in both) ----------
    packed_bf16 = pack_params(params, n_heads=H, matmul_dtype=jnp.bfloat16)
    out16 = jax.block_until_ready(residual_transform(q, k, v, packed_bf16, n_heads=H))
    ref16 = residual_transform_ref(q, k, v, params, n_heads=H,
                                   matmul_dtype=jnp.bfloat16)
    assert out16.shape == (B, S, D)
    # Residual kernel-vs-ref delta here stems only from where the 1/sqrt(Dh) scale
    # is applied before bf16 rounding; 3e-2 bounds it with ample margin.
    assert jnp.allclose(out16, ref16, atol=3e-2, rtol=3e-2), "bf16 mismatch vs matched reference"

    print("KERNEL_OK")
</pallas_src>

<mosaic_0001>
module attributes {stable_mosaic.version = 11 : i64} {
  func.func @residual_transform_kernel(%arg0: memref<2x8x128xf32, #tpu.memory_space<vmem>>, %arg1: memref<2x8x128xf32, #tpu.memory_space<vmem>>, %arg2: memref<2x8x128xf32, #tpu.memory_space<vmem>>, %arg3: memref<3x128x128xf32, #tpu.memory_space<vmem>>, %arg4: memref<3x1x128xf32, #tpu.memory_space<vmem>>, %arg5: memref<1x128xf32, #tpu.memory_space<vmem>>, %arg6: memref<1x128xf32, #tpu.memory_space<vmem>>, %arg7: memref<128x128xf32, #tpu.memory_space<vmem>>, %arg8: memref<1x128xf32, #tpu.memory_space<vmem>>, %arg9: memref<1x128xf32, #tpu.memory_space<vmem>>, %arg10: memref<1x128xf32, #tpu.memory_space<vmem>>, %arg11: memref<2x8x128xf32, #tpu.memory_space<vmem>>) attributes {dimension_semantics = [], scalar_prefetch = 0 : i64, scratch_operands = 0 : i64, tpu.core_type = #tpu.core_type<tc>} {
    %c0 = arith.constant 0 : index
    %c0_0 = arith.constant 0 : index
    %c0_1 = arith.constant 0 : index
    %0 = vector.load %arg0[%c0, %c0_0, %c0_1] : memref<2x8x128xf32, #tpu.memory_space<vmem>>, vector<2x8x128xf32>
    %1 = vector.shape_cast %0 : vector<2x8x128xf32> to vector<16x128xf32>
    %c0_2 = arith.constant 0 : index
    %c0_3 = arith.constant 0 : index
    %c0_4 = arith.constant 0 : index
    %2 = vector.load %arg3[%c0_2, %c0_3, %c0_4] : memref<3x128x128xf32, #tpu.memory_space<vmem>>, vector<1x128x128xf32>
    %3 = vector.shape_cast %2 : vector<1x128x128xf32> to vector<128x128xf32>
    %cst = arith.constant dense<0.000000e+00> : vector<16x128xf32>
    %4 = tpu.matmul %1, %3, %cst {dimension_numbers = #tpu.dot_dimension_numbers<[1], [0], [0], [1], [0, 0, 1, 1], [], []>, precision = #tpu.contract_precision<fp32>} : vector<16x128xf32>, vector<128x128xf32>, vector<16x128xf32> -> vector<16x128xf32>
    %c0_5 = arith.constant 0 : index
    %c0_6 = arith.constant 0 : index
    %c0_7 = arith.constant 0 : index
    %5 = vector.load %arg4[%c0_5, %c0_6, %c0_7] : memref<3x1x128xf32, #tpu.memory_space<vmem>>, vector<1x1x128xf32>
    %6 = vector.shape_cast %5 : vector<1x1x128xf32> to vector<1x128xf32>
    %7 = vector.broadcast %6 : vector<1x128xf32> to vector<16x128xf32>
    %8 = arith.addf %4, %7 : vector<16x128xf32>
    %c0_8 = arith.constant 0 : index
    %c0_9 = arith.constant 0 : index
    %c0_10 = arith.constant 0 : index
    %9 = vector.load %arg1[%c0_8, %c0_9, %c0_10] : memref<2x8x128xf32, #tpu.memory_space<vmem>>, vector<2x8x128xf32>
    %10 = vector.shape_cast %9 : vector<2x8x128xf32> to vector<16x128xf32>
    %c1 = arith.constant 1 : index
    %c0_11 = arith.constant 0 : index
    %c0_12 = arith.constant 0 : index
    %11 = vector.load %arg3[%c1, %c0_11, %c0_12] : memref<3x128x128xf32, #tpu.memory_space<vmem>>, vector<1x128x128xf32>
    %12 = vector.shape_cast %11 : vector<1x128x128xf32> to vector<128x128xf32>
    %cst_13 = arith.constant dense<0.000000e+00> : vector<16x128xf32>
    %13 = tpu.matmul %10, %12, %cst_13 {dimension_numbers = #tpu.dot_dimension_numbers<[1], [0], [0], [1], [0, 0, 1, 1], [], []>, precision = #tpu.contract_precision<fp32>} : vector<16x128xf32>, vector<128x128xf32>, vector<16x128xf32> -> vector<16x128xf32>
    %c1_14 = arith.constant 1 : index
    %c0_15 = arith.constant 0 : index
    %c0_16 = arith.constant 0 : index
    %14 = vector.load %arg4[%c1_14, %c0_15, %c0_16] : memref<3x1x128xf32, #tpu.memory_space<vmem>>, vector<1x1x128xf32>
    %15 = vector.shape_cast %14 : vector<1x1x128xf32> to vector<1x128xf32>
    %16 = vector.broadcast %15 : vector<1x128xf32> to vector<16x128xf32>
    %17 = arith.addf %13, %16 : vector<16x128xf32>
    %c0_17 = arith.constant 0 : index
    %c0_18 = arith.constant 0 : index
    %c0_19 = arith.constant 0 : index
    %18 = vector.load %arg2[%c0_17, %c0_18, %c0_19] : memref<2x8x128xf32, #tpu.memory_space<vmem>>, vector<2x8x128xf32>
    %19 = vector.shape_cast %18 : vector<2x8x128xf32> to vector<16x128xf32>
    %c2 = arith.constant 2 : index
    %c0_20 = arith.constant 0 : index
    %c0_21 = arith.constant 0 : index
    %20 = vector.load %arg3[%c2, %c0_20, %c0_21] : memref<3x128x128xf32, #tpu.memory_space<vmem>>, vector<1x128x128xf32>
    %21 = vector.shape_cast %20 : vector<1x128x128xf32> to vector<128x128xf32>
    %cst_22 = arith.constant dense<0.000000e+00> : vector<16x128xf32>
    %22 = tpu.matmul %19, %21, %cst_22 {dimension_numbers = #tpu.dot_dimension_numbers<[1], [0], [0], [1], [0, 0, 1, 1], [], []>, precision = #tpu.contract_precision<fp32>} : vector<16x128xf32>, vector<128x128xf32>, vector<16x128xf32> -> vector<16x128xf32>
    %c2_23 = arith.constant 2 : index
    %c0_24 = arith.constant 0 : index
    %c0_25 = arith.constant 0 : index
    %23 = vector.load %arg4[%c2_23, %c0_24, %c0_25] : memref<3x1x128xf32, #tpu.memory_space<vmem>>, vector<1x1x128xf32>
    %24 = vector.shape_cast %23 : vector<1x1x128xf32> to vector<1x128xf32>
    %25 = vector.broadcast %24 : vector<1x128xf32> to vector<16x128xf32>
    %26 = arith.addf %22, %25 : vector<16x128xf32>
    %27 = vector.shape_cast %8 : vector<16x128xf32> to vector<2x8x4x32xf32>
    %28 = tpu.transpose %27, [0, 2, 1, 3] : vector<2x8x4x32xf32> -> vector<2x4x8x32xf32>
    %29 = vector.shape_cast %28 : vector<2x4x8x32xf32> to vector<8x8x32xf32>
    %30 = vector.shape_cast %17 : vector<16x128xf32> to vector<2x8x4x32xf32>
    %31 = tpu.transpose %30, [0, 2, 1, 3] : vector<2x8x4x32xf32> -> vector<2x4x8x32xf32>
    %32 = vector.shape_cast %31 : vector<2x4x8x32xf32> to vector<8x8x32xf32>
    %33 = vector.shape_cast %26 : vector<16x128xf32> to vector<2x8x4x32xf32>
    %34 = tpu.transpose %33, [0, 2, 1, 3] : vector<2x8x4x32xf32> -> vector<2x4x8x32xf32>
    %35 = vector.shape_cast %34 : vector<2x4x8x32xf32> to vector<8x8x32xf32>
    "tpu.trace_start"() <{level = 10 : i32, message = "bqd,bkd->bqk"}> : () -> ()
    %cst_26 = arith.constant dense<0.000000e+00> : vector<8x8x8xf32>
    %36 = tpu.matmul %29, %32, %cst_26 {dimension_numbers = #tpu.dot_dimension_numbers<[2], [2], [1], [1], [0, 0, 0, 1, 1, 1], [0], [0]>, precision = #tpu.contract_precision<fp32>} : vector<8x8x32xf32>, vector<8x8x32xf32>, vector<8x8x8xf32> -> vector<8x8x8xf32>
    "tpu.trace_stop"() : () -> ()
    %cst_27 = arith.constant dense<0xFF800000> : vector<8x8xf32>
    %37 = vector.multi_reduction <maximumf>, %36, %cst_27 [2] : vector<8x8x8xf32> to vector<8x8xf32>
    %38 = vector.shape_cast %37 : vector<8x8xf32> to vector<8x8x1xf32>
    %39 = vector.broadcast %38 : vector<8x8x1xf32> to vector<8x8x8xf32>
    %40 = arith.subf %36, %39 : vector<8x8x8xf32>
    %41 = math.exp %40 : vector<8x8x8xf32>
    %cst_28 = arith.constant dense<0.000000e+00> : vector<8x8xf32>
    %42 = vector.multi_reduction <add>, %41, %cst_28 [2] : vector<8x8x8xf32> to vector<8x8xf32>
    %43 = vector.shape_cast %42 : vector<8x8xf32> to vector<8x8x1xf32>
    %44 = vector.broadcast %43 : vector<8x8x1xf32> to vector<8x8x8xf32>
    %45 = arith.divf %41, %44 : vector<8x8x8xf32>
    "tpu.trace_start"() <{level = 10 : i32, message = "bqk,bkd->bqd"}> : () -> ()
    %cst_29 = arith.constant dense<0.000000e+00> : vector<8x8x32xf32>
    %46 = tpu.matmul %45, %35, %cst_29 {dimension_numbers = #tpu.dot_dimension_numbers<[2], [1], [1], [2], [0, 0, 0, 1, 1, 2], [0], [0]>, precision = #tpu.contract_precision<fp32>} : vector<8x8x8xf32>, vector<8x8x32xf32>, vector<8x8x32xf32> -> vector<8x8x32xf32>
    "tpu.trace_stop"() : () -> ()
    %47 = vector.shape_cast %46 : vector<8x8x32xf32> to vector<2x4x8x32xf32>
    %48 = tpu.transpose %47, [0, 2, 1, 3] : vector<2x4x8x32xf32> -> vector<2x8x4x32xf32>
    %49 = vector.shape_cast %48 : vector<2x8x4x32xf32> to vector<16x128xf32>
    %c0_30 = arith.constant 0 : index
    %c0_31 = arith.constant 0 : index
    %50 = vector.load %arg5[%c0_30, %c0_31] : memref<1x128xf32, #tpu.memory_space<vmem>>, vector<1x128xf32>
    %c0_32 = arith.constant 0 : index
    %c0_33 = arith.constant 0 : index
    %51 = vector.load %arg6[%c0_32, %c0_33] : memref<1x128xf32, #tpu.memory_space<vmem>>, vector<1x128xf32>
    %cst_34 = arith.constant dense<0.000000e+00> : vector<16xf32>
    %52 = vector.multi_reduction <add>, %49, %cst_34 [1] : vector<16x128xf32> to vector<16xf32>
    %53 = vector.shape_cast %52 : vector<16xf32> to vector<16x1xf32>
    %cst_35 = arith.constant 1.280000e+02 : f32
    %54 = vector.broadcast %cst_35 : f32 to vector<16x1xf32>
    %55 = arith.divf %53, %54 : vector<16x1xf32>
    %56 = arith.mulf %49, %49 : vector<16x128xf32>
    %cst_36 = arith.constant dense<0.000000e+00> : vector<16xf32>
    %57 = vector.multi_reduction <add>, %56, %cst_36 [1] : vector<16x128xf32> to vector<16xf32>
    %58 = vector.shape_cast %57 : vector<16xf32> to vector<16x1xf32>
    %cst_37 = arith.constant 1.280000e+02 : f32
    %59 = vector.broadcast %cst_37 : f32 to vector<16x1xf32>
    %60 = arith.divf %58, %59 : vector<16x1xf32>
    %61 = arith.mulf %55, %55 : vector<16x1xf32>
    %62 = arith.subf %60, %61 : vector<16x1xf32>
    %63 = vector.broadcast %55 : vector<16x1xf32> to vector<16x128xf32>
    %64 = arith.subf %49, %63 : vector<16x128xf32>
    %cst_38 = arith.constant 9.99999974E-6 : f32
    %65 = vector.broadcast %cst_38 : f32 to vector<16x1xf32>
    %66 = arith.addf %62, %65 : vector<16x1xf32>
    %67 = math.rsqrt %66 : vector<16x1xf32>
    %68 = vector.broadcast %67 : vector<16x1xf32> to vector<16x128xf32>
    %69 = arith.mulf %64, %68 : vector<16x128xf32>
    %70 = vector.broadcast %50 : vector<1x128xf32> to vector<16x128xf32>
    %71 = arith.mulf %69, %70 : vector<16x128xf32>
    %72 = vector.broadcast %51 : vector<1x128xf32> to vector<16x128xf32>
    %73 = arith.addf %71, %72 : vector<16x128xf32>
    %74 = arith.addf %1, %73 : vector<16x128xf32>
    %cst_39 = arith.constant 0.000000e+00 : f32
    %75 = vector.broadcast %cst_39 : f32 to vector<16x128xf32>
    %76 = arith.maximumf %74, %75 : vector<16x128xf32>
    %c0_40 = arith.constant 0 : index
    %c0_41 = arith.constant 0 : index
    %77 = vector.load %arg7[%c0_40, %c0_41] : memref<128x128xf32, #tpu.memory_space<vmem>>, vector<128x128xf32>
    %cst_42 = arith.constant dense<0.000000e+00> : vector<16x128xf32>
    %78 = tpu.matmul %76, %77, %cst_42 {dimension_numbers = #tpu.dot_dimension_numbers<[1], [0], [0], [1], [0, 0, 1, 1], [], []>, precision = #tpu.contract_precision<fp32>} : vector<16x128xf32>, vector<128x128xf32>, vector<16x128xf32> -> vector<16x128xf32>
    %c0_43 = arith.constant 0 : index
    %c0_44 = arith.constant 0 : index
    %79 = vector.load %arg8[%c0_43, %c0_44] : memref<1x128xf32, #tpu.memory_space<vmem>>, vector<1x128xf32>
    %80 = vector.broadcast %79 : vector<1x128xf32> to vector<16x128xf32>
    %81 = arith.addf %78, %80 : vector<16x128xf32>
    %c0_45 = arith.constant 0 : index
    %c0_46 = arith.constant 0 : index
    %82 = vector.load %arg9[%c0_45, %c0_46] : memref<1x128xf32, #tpu.memory_space<vmem>>, vector<1x128xf32>
    %c0_47 = arith.constant 0 : index
    %c0_48 = arith.constant 0 : index
    %83 = vector.load %arg10[%c0_47, %c0_48] : memref<1x128xf32, #tpu.memory_space<vmem>>, vector<1x128xf32>
    %cst_49 = arith.constant dense<0.000000e+00> : vector<16xf32>
    %84 = vector.multi_reduction <add>, %81, %cst_49 [1] : vector<16x128xf32> to vector<16xf32>
    %85 = vector.shape_cast %84 : vector<16xf32> to vector<16x1xf32>
    %cst_50 = arith.constant 1.280000e+02 : f32
    %86 = vector.broadcast %cst_50 : f32 to vector<16x1xf32>
    %87 = arith.divf %85, %86 : vector<16x1xf32>
    %88 = arith.mulf %81, %81 : vector<16x128xf32>
    %cst_51 = arith.constant dense<0.000000e+00> : vector<16xf32>
    %89 = vector.multi_reduction <add>, %88, %cst_51 [1] : vector<16x128xf32> to vector<16xf32>
    %90 = vector.shape_cast %89 : vector<16xf32> to vector<16x1xf32>
    %cst_52 = arith.constant 1.280000e+02 : f32
    %91 = vector.broadcast %cst_52 : f32 to vector<16x1xf32>
    %92 = arith.divf %90, %91 : vector<16x1xf32>
    %93 = arith.mulf %87, %87 : vector<16x1xf32>
    %94 = arith.subf %92, %93 : vector<16x1xf32>
    %95 = vector.broadcast %87 : vector<16x1xf32> to vector<16x128xf32>
    %96 = arith.subf %81, %95 : vector<16x128xf32>
    %cst_53 = arith.constant 9.99999974E-6 : f32
    %97 = vector.broadcast %cst_53 : f32 to vector<16x1xf32>
    %98 = arith.addf %94, %97 : vector<16x1xf32>
    %99 = math.rsqrt %98 : vector<16x1xf32>
    %100 = vector.broadcast %99 : vector<16x1xf32> to vector<16x128xf32>
    %101 = arith.mulf %96, %100 : vector<16x128xf32>
    %102 = vector.broadcast %82 : vector<1x128xf32> to vector<16x128xf32>
    %103 = arith.mulf %101, %102 : vector<16x128xf32>
    %104 = vector.broadcast %83 : vector<1x128xf32> to vector<16x128xf32>
    %105 = arith.addf %103, %104 : vector<16x128xf32>
    %106 = arith.addf %74, %105 : vector<16x128xf32>
    %107 = vector.shape_cast %106 : vector<16x128xf32> to vector<2x8x128xf32>
    %c0_54 = arith.constant 0 : index
    %c0_55 = arith.constant 0 : index
    %c0_56 = arith.constant 0 : index
    %108 = vector.load %arg11[%c0_54, %c0_55, %c0_56] : memref<2x8x128xf32, #tpu.memory_space<vmem>>, vector<2x8x128xf32>
    tpu.vector_store %arg11[%c0_54, %c0_55, %c0_56], %107 {strides = array<i32>} : memref<2x8x128xf32, #tpu.memory_space<vmem>>, vector<2x8x128xf32>,
    return
  }
}

</mosaic_0001>

<bundles_post_ra>
// kernel: tpu_custom_call.1
= control target key start
LH: loop header
LB: loop body
LE: loop exit
PB: predicated region body
PF: predicated region fallthrough
CT: control target
= control target key end

     0   :  { %16 = vsyncpa [#allocation3], 0  ;;  %s16807_s0 = inlined_call_operand.hbm [shape: f32[2,8,128], index: 0, kind: input, shape index: {}]   ;;  %s16808_s1 = inlined_call_operand.hbm [shape: f32[2,8,128], index: 1, kind: input, shape index: {}]   ;;  %s16809_s2 = inlined_call_operand.hbm [shape: f32[2,8,128], index: 2, kind: input, shape index: {}]   ;;  %s16810_s3 = inlined_call_operand.hbm [shape: f32[3,128,128], index: 3, kind: input, shape index: {}]   ;;  %s16811_s4 = inlined_call_operand.vmem [shape: f32[3,1,128], index: 4, kind: input, shape index: {}]   ;;  %s16812_s5 = inlined_call_operand.vmem [shape: f32[1,128], index: 5, kind: input, shape index: {}]   ;;  %s16813_s6 = inlined_call_operand.vmem [shape: f32[1,128], index: 6, kind: input, shape index: {}]   ;;  %s16814_s7 = inlined_call_operand.hbm [shape: f32[128,128], index: 7, kind: input, shape index: {}]   ;;  %s16815_s8 = inlined_call_operand.vmem [shape: f32[1,128], index: 8, kind: input, shape index: {}]   ;;  %s16816_s9 = inlined_call_operand.vmem [shape: f32[1,128], index: 9, kind: input, shape index: {}]   ;;  %s16817_s10 = inlined_call_operand.vmem [shape: f32[1,128], index: 10, kind: input, shape index: {}]   ;;  %s16818_s11 = inlined_call_operand.hbm [shape: f32[2,8,128], index: 11, kind: output, shape index: {}]  }
   0x1   :  { %17 = vsyncpa [#allocation6], 0 }
   0x2   :  { %18 = vsyncpa [#allocation9], 0 }
   0x3   :  { %19 = vsyncpa [#allocation4], 0  ;;  %s14682_s17 = smov [#allocation5]   ;;  %s14683_s19 = smov [#allocation8]  }
   0x4   :  { %s37_s18 = sshll.u32 %s14682_s17, 4  ;;  %s61_s20 = sshll.u32 %s14683_s19, 4  ;;  %s38_s18 = int_to_ptr.vmem [resolvable:$true] %s37_s18  ;;  %s14757_s20 = int_to_ptr.vmem [resolvable:$true] %s61_s20 }
   0x5   :  { %s14542_s23 = scalar_lea.hbm %s16808_s1, 256 }
   0x6   :  { %p14543_p0 = scmp.ne.s32.totalorder %s16808_s1, %s14542_s23  ;;  %p14546_p1 = scmp.lt.u32.totalorder %s14542_s23, %s16808_s1 }
   0x8   :  { %p14548_p2 = pnand %p14546_p1, %p14543_p0 }
   0xa   :  { %14551 = shalt.err (!%p14548_p2)
}
   0xb   :  { %s14552_s28 = scalar_lea.vmem %s38_s18, 256  ;;  %p14557_p4 = scmp.lt.s32.totalorder %s38_s18, %s38_s18 }
   0xc   :  { %p14553_p3 = scmp.ne.s32.totalorder %s38_s18, %s14552_s28  ;;  %p14558_p5 = scmp.lt.s32.totalorder %s14552_s28, %s14552_s28 }
   0xe   :  { %p14559_p6 = por %p14558_p5, %p14557_p4 }
  0x10   :  { %p14560_p7 = pnand %p14559_p6, %p14553_p3 }
  0x12   :  { %14563 = shalt.err (!%p14560_p7)
}
  0x13   :  { %s14684_s29 = smov 128   ;;  %s14685_s30 = smov 8  }
  0x14   :  { %43 = dma.hbm_to_vmem [thread:$0]  %s16808_s1, 256, %s38_s18, [#allocation6], %s14684_s29, %s14684_s29, %s14685_s30  }
  0x15   :  { %s14564_s16 = scalar_lea.hbm %s16810_s3, 6144 }
  0x16   :  { %p14565_p8 = scmp.ne.s32.totalorder %s16810_s3, %s14564_s16  ;;  %p14568_p9 = scmp.lt.u32.totalorder %s14564_s16, %s16810_s3 }
  0x18   :  { %p14570_p10 = pnand %p14568_p9, %p14565_p8 }
  0x1a   :  { %14573 = shalt.err (!%p14570_p10)
}
  0x1b   :  { %s14574_s23 = scalar_lea.vmem %s14757_s20, 6144  ;;  %p14579_p12 = scmp.lt.s32.totalorder %s14757_s20, %s14757_s20 }
  0x1c   :  { %p14575_p11 = scmp.ne.s32.totalorder %s14757_s20, %s14574_s23  ;;  %p14580_p13 = scmp.lt.s32.totalorder %s14574_s23, %s14574_s23 }
  0x1e   :  { %p14581_p0 = por %p14580_p13, %p14579_p12 }
  0x20   :  { %p14582_p1 = pnand %p14581_p0, %p14575_p11 }
  0x22   :  { %14585 = shalt.err (!%p14582_p1)
}
  0x23   :  { %67 = dma.hbm_to_vmem [thread:$0]  %s16810_s3, 6144, %s14757_s20, [#allocation9], %s14684_s29, %s14684_s29, %s14685_s30  }
  0x24   :  { %s14686_s24 = smov [#allocation2]   ;;  %s14687_s26 = smov [#allocation7]  }
  0x25   :  { %s25_s25 = sshll.u32 %s14686_s24, 4  ;;  %s49_s27 = sshll.u32 %s14687_s26, 4  ;;  %s26_s25 = int_to_ptr.vmem [resolvable:$true] %s25_s25  ;;  %s14794_s27 = int_to_ptr.vmem [resolvable:$true] %s49_s27 }
  0x26   :  { %s14586_s13 = scalar_lea.hbm %s16807_s0, 256 }
  0x27   :  { %p14587_p2 = scmp.ne.s32.totalorder %s16807_s0, %s14586_s13  ;;  %p14590_p3 = scmp.lt.u32.totalorder %s14586_s13, %s16807_s0 }
  0x29   :  { %p14592_p4 = pnand %p14590_p3, %p14587_p2 }
  0x2b   :  { %14595 = shalt.err (!%p14592_p4)
}
  0x2c   :  { %s14596_s3 = scalar_lea.vmem %s26_s25, 256  ;;  %p14601_p6 = scmp.lt.s32.totalorder %s26_s25, %s26_s25 }
  0x2d   :  { %p14597_p5 = scmp.ne.s32.totalorder %s26_s25, %s14596_s3  ;;  %p14602_p7 = scmp.lt.s32.totalorder %s14596_s3, %s14596_s3 }
  0x2f   :  { %p14603_p8 = por %p14602_p7, %p14601_p6 }
  0x31   :  { %p14604_p9 = pnand %p14603_p8, %p14597_p5 }
  0x33   :  { %14607 = shalt.err (!%p14604_p9)
}
  0x34   :  { %31 = dma.hbm_to_vmem [thread:$0]  %s16807_s0, 256, %s26_s25, [#allocation3], %s14684_s29, %s14684_s29, %s14685_s30  }
  0x35   :  { %s14608_s23 = scalar_lea.hbm %s16809_s2, 256 }
  0x36   :  { %p14609_p10 = scmp.ne.s32.totalorder %s16809_s2, %s14608_s23  ;;  %p14612_p11 = scmp.lt.u32.totalorder %s14608_s23, %s16809_s2 }
  0x38   :  { %p14614_p12 = pnand %p14612_p11, %p14609_p10 }
  0x3a   :  { %14617 = shalt.err (!%p14614_p12)
}
  0x3b   :  { %s14618_s28 = scalar_lea.vmem %s14794_s27, 256  ;;  %p14623_p0 = scmp.lt.s32.totalorder %s14794_s27, %s14794_s27 }
  0x3c   :  { %p14619_p13 = scmp.ne.s32.totalorder %s14794_s27, %s14618_s28  ;;  %p14624_p1 = scmp.lt.s32.totalorder %s14618_s28, %s14618_s28 }
  0x3e   :  { %p14625_p2 = por %p14624_p1, %p14623_p0 }
  0x40   :  { %p14626_p3 = pnand %p14625_p2, %p14619_p13 }
  0x42   :  { %14629 = shalt.err (!%p14626_p3)
}
  0x43   :  { %55 = dma.hbm_to_vmem [thread:$0]  %s16809_s2, 256, %s14794_s27, [#allocation6], %s14684_s29, %s14684_s29, %s14685_s30  }
  0x44   :  { %s14688_s12 = smov [#allocation10]   ;;  %s14630_s16 = scalar_lea.hbm %s16814_s7, 2048 }
  0x45   :  { %s79_s13 = sshll.u32 %s14688_s12, 4  ;;  %p14631_p4 = scmp.ne.s32.totalorder %s16814_s7, %s14630_s16  ;;  %s80_s13 = int_to_ptr.vmem [resolvable:$true] %s79_s13 }
  0x46   :  { %p14634_p5 = scmp.lt.u32.totalorder %s14630_s16, %s16814_s7 }
  0x48   :  { %p14636_p6 = pnand %p14634_p5, %p14631_p4 }
  0x4a   :  { %14639 = shalt.err (!%p14636_p6)
}
  0x4b   :  { %s14640_s21 = scalar_lea.vmem %s80_s13, 2048  ;;  %p14645_p8 = scmp.lt.s32.totalorder %s80_s13, %s80_s13 }
  0x4c   :  { %p14641_p7 = scmp.ne.s32.totalorder %s80_s13, %s14640_s21  ;;  %p14646_p9 = scmp.lt.s32.totalorder %s14640_s21, %s14640_s21 }
  0x4e   :  { %p14647_p10 = por %p14646_p9, %p14645_p8 }
  0x50   :  { %p14648_p11 = pnand %p14647_p10, %p14641_p7 }
  0x52   :  { %14651 = shalt.err (!%p14648_p11)
}
  0x53   :  { %85 = dma.hbm_to_vmem [thread:$0]  %s16814_s7, 2048, %s80_s13, [#allocation9], %s14684_s29, %s14684_s29, %s14685_s30  }
  0x54   :  { %14674 = dma.done.wait [#allocation3], 256  }
  0x55   :  { %14675 = vsyncadd [#allocation3], 4294967040 }
  0x56   :  { %14676 = dma.done.wait [#allocation6], 512  }
  0x57   :  { %14677 = vsyncadd [#allocation6], 4294966784 }
  0x58   :  { %14678 = dma.done.wait [#allocation9], 8192  }
  0x59   :  { %14679 = vsyncadd [#allocation9], 4294959104  ;;  %v109_v0 = vld [vmem:[#allocation8] sm:$0xff]  ;;  %v110_v1 = vld [vmem:[#allocation8 + $0x8] sm:$0xff]  ;;  %s14689_s23 = smov 32   ;;  %s14690_s1 = smov 96  }
  0x5a   :  { %v111_v2 = vld [vmem:[#allocation8 + $0x10] sm:$0xff]  ;;  %v133_v3 = vand.u32 4294901760, %v109_v0  ;;  %v136_v4 = vand.u32 4294901760, %v110_v1  ;;  %v14846_v5 = vld [vmem:[#allocation8 + $0x18] sm:$0xff]  ;;  %v14848_v7 = vld [vmem:[#allocation8 + $0x20] sm:$0xff]  ;;  %s14691_s18 = smov 64  }
  0x5b   :  { %v139_v6 = vand.u32 4294901760, %v111_v2  ;;  %v14850_v8 = vld [vmem:[#allocation8 + $0x28] sm:$0xff]  ;;  %v142_v9 = vand.u32 4294901760, %v14846_v5  ;;  %v145_v11 = vand.u32 4294901760, %v14848_v7  ;;  %v14859_v14 = vld [vmem:[#allocation8 + $0x30] sm:$0xff]  ;;  %v14861_v15 = vld [vmem:[#allocation8 + $0x38] sm:$0xff] }
  0x5c   :  { %v14853_v10 = vpack.c.bf16 %v136_v4, %v133_v3  ;;  %v148_v12 = vand.u32 4294901760, %v14850_v8  ;;  %v107_v16 = vld [vmem:[#allocation2] sm:$0xff]  ;;  %v151_v19 = vand.u32 4294901760, %v14859_v14  ;;  %v154_v20 = vand.u32 4294901760, %v14861_v15  ;;  %v14879_v21 = vld [vmem:[#allocation8 + $0x40] sm:$0xff]  ;;  %v14881_v22 = vld [vmem:[#allocation8 + $0x48] sm:$0xff] }
  0x5d   :  { %v14857_v13 = vpack.c.bf16 %v142_v9, %v139_v6  ;;  %v14867_v17 = vand.u32 4294901760, %v107_v16  ;;  %v157_v26 = vand.u32 4294901760, %v14879_v21  ;;  %v160_v27 = vand.u32 4294901760, %v14881_v22  ;;  %v14899_v28 = vld [vmem:[#allocation8 + $0x50] sm:$0xff]  ;;  %v14901_v29 = vld [vmem:[#allocation8 + $0x58] sm:$0xff]  ;;  %v14916_v36 = vld [vmem:[#allocation8 + $0x60] sm:$0xff] }
  0x5e   :  { %13510 = vmatprep.subr.bf16.mxu1 %v14853_v10  ;;  %13606 = vmatprep.subr.bf16.mxu0 %v14853_v10  ;;  %v14875_v18 = vpack.c.bf16 %v148_v12, %v145_v11  ;;  %v14895_v25 = vpack.c.bf16 %v154_v20, %v151_v19  ;;  %v163_v31 = vand.u32 4294901760, %v14899_v28  ;;  %v108_v33 = vld [vmem:[#allocation2 + $0x8] sm:$0xff]  ;;  %v166_v35 = vand.u32 4294901760, %v14901_v29  ;;  %v14918_v37 = vld [vmem:[#allocation8 + $0x68] sm:$0xff]  ;;  %v14930_v43 = vld [vmem:[#allocation8 + $0x70] sm:$0xff]  ;;  %s14696_s17 = smov [#allocation11]  }
  0x5f   :  { %13512 = vmatpush3.bf16.msra.mxu1 %v14853_v10  ;;  %13608 = vmatpush3.bf16.msra.mxu0 %v14853_v10  ;;  %v14884_v23 = vsub.f32 %v107_v16, %v14867_v17  ;;  %v14913_v34 = vpack.c.bf16 %v160_v27, %v157_v26  ;;  %v14920_v38 = vsub.f32 %v109_v0, %v133_v3  ;;  %v14924_v40 = vand.u32 4294901760, %v108_v33  ;;  %v14932_v44 = vld [vmem:[#allocation8 + $0x78] sm:$0xff]  ;;  %s11525_s3 = sshll.u32 %s14696_s17, 4  ;;  %s11526_s3 = int_to_ptr.vmem [resolvable:$true] %s11525_s3 }
  0x60   :  { %13514 = vmatprep.subr.bf16.mxu1 %v14857_v13  ;;  %13610 = vmatprep.subr.bf16.mxu0 %v14857_v13  ;;  %v14922_v39 = vsub.f32 %v110_v1, %v136_v4  ;;  %v169_v41 = vand.u32 4294901760, %v14916_v36  ;;  %v172_v42 = vand.u32 4294901760, %v14918_v37  ;;  %v14934_v45 = vsub.f32 %v111_v2, %v139_v6  ;;  %p14657_p13 = scmp.lt.s32.totalorder %s11526_s3, %s11526_s3 }
  0x61   :  { %v215_v24 = vand.u32 4294901760, %v14884_v23  ;;  %v14942_v46 = vpack.c.bf16 %v166_v35, %v163_v31  ;;  %v236_v47 = vand.u32 4294901760, %v14920_v38  ;;  %v14947_v49 = vsub.f32 %v14846_v5, %v142_v9 }
  0x62   :  { %v243_v48 = vand.u32 4294901760, %v14922_v39  ;;  %v175_v50 = vand.u32 4294901760, %v14930_v43  ;;  %v178_v51 = vand.u32 4294901760, %v14932_v44  ;;  %v14952_v52 = vsub.f32 %v108_v33, %v14924_v40 }
  0x63   :  { %13516 = vmatpush3.bf16.msra.mxu1 %v14857_v13  ;;  %13612 = vmatpush3.bf16.msra.mxu0 %v14857_v13  ;;  %v216_v30 = vsub.f32 %v14884_v23, %v215_v24  ;;  %v14960_v53 = vpack.c.bf16 %v172_v42, %v169_v41  ;;  %v250_v54 = vand.u32 4294901760, %v14934_v45  ;;  %v14966_v55 = vsub.f32 %v14848_v7, %v145_v11 }
  0x64   :  { %13518 = vmatprep.subr.bf16.mxu1 %v14875_v18  ;;  %13614 = vmatprep.subr.bf16.mxu0 %v14875_v18  ;;  %v237_v56 = vsub.f32 %v14920_v38, %v236_v47  ;;  %v244_v57 = vsub.f32 %v14922_v39, %v243_v48  ;;  %v257_v58 = vand.u32 4294901760, %v14947_v49  ;;  %v14976_v59 = vsub.f32 %v14850_v8, %v148_v12 }
  0x65   :  { %12326 = vmatprep.mubr.f32.mxu0 %v215_v24  ;;  %v217_v32 = vand.u32 4294901760, %v216_v30  ;;  %v14982_v60 = vpack.c.bf16 %v178_v51, %v175_v50  ;;  %v225_v61 = vand.u32 4294901760, %v14952_v52  ;;  %v251_v62 = vsub.f32 %v14934_v45, %v250_v54 }
  0x66   :  { %v264_v63 = vand.u32 4294901760, %v14966_v55  ;;  %v14992_v0 = vsub.f32 %v14859_v14, %v151_v19  ;;  %v14997_v1 = vsub.f32 %v14861_v15, %v154_v20  ;;  %v238_v2 = vand.u32 4294901760, %v237_v56 }
  0x67   :  { %13520 = vmatpush3.bf16.msra.mxu1 %v14875_v18  ;;  %13616 = vmatpush3.bf16.msra.mxu0 %v14875_v18  ;;  %v245_v3 = vand.u32 4294901760, %v244_v57  ;;  %v258_v4 = vsub.f32 %v14947_v49, %v257_v58  ;;  %v271_v5 = vand.u32 4294901760, %v14976_v59  ;;  %v226_v6 = vsub.f32 %v14952_v52, %v225_v61 }
  0x68   :  { %13522 = vmatprep.subr.bf16.mxu1 %v14895_v25  ;;  %13618 = vmatprep.subr.bf16.mxu0 %v14895_v25  ;;  %v13637_v7 = vpack.c.bf16 %v243_v48, %v236_v47  ;;  %v15007_v8 = vsub.f32 %v14879_v21, %v157_v26  ;;  %v252_v9 = vand.u32 4294901760, %v251_v62  ;;  %v265_v11 = vsub.f32 %v14966_v55, %v264_v63 }
  0x69   :  { %12221 = vmatprep.mubr.f32.mxu1 %v217_v32  ;;  %v278_v12 = vand.u32 4294901760, %v14992_v0  ;;  %v285_v14 = vand.u32 4294901760, %v14997_v1  ;;  %v13541_v15 = vpack.c.bf16 %v245_v3, %v238_v2  ;;  %v259_v16 = vand.u32 4294901760, %v258_v4 }
  0x6a   :  { %v272_v19 = vsub.f32 %v14976_v59, %v271_v5  ;;  %v15020_v20 = vsub.f32 %v14881_v22, %v160_v27  ;;  %v227_v21 = vand.u32 4294901760, %v226_v6  ;;  %v13641_v24 = vpack.c.bf16 %v257_v58, %v250_v54 }
  0x6b   :  { %13524 = vmatpush3.bf16.msra.mxu1 %v14895_v25  ;;  %13620 = vmatpush3.bf16.msra.mxu0 %v14895_v25  ;;  %v292_v26 = vand.u32 4294901760, %v15007_v8  ;;  %v15026_v30 = vsub.f32 %v14899_v28, %v163_v31  ;;  %v279_v32 = vsub.f32 %v14992_v0, %v278_v12  ;;  %v286_v33 = vsub.f32 %v14997_v1, %v285_v14 }
  0x6c   :  { %13526 = vmatprep.subr.bf16.mxu1 %v14913_v34  ;;  %13622 = vmatprep.subr.bf16.mxu0 %v14913_v34  ;;  %v15035_v22 = vsub.f32 %v14901_v29, %v166_v35  ;;  %v13545_v27 = vpack.c.bf16 %v259_v16, %v252_v9  ;;  %v266_v47 = vand.u32 4294901760, %v265_v11  ;;  %v273_v48 = vand.u32 4294901760, %v272_v19 }
  0x6d   :  { %v299_v28 = vand.u32 4294901760, %v15020_v20  ;;  %v13645_v31 = vpack.c.bf16 %v271_v5, %v264_v63  ;;  %v293_v54 = vsub.f32 %v15007_v8, %v292_v26  ;;  %v15042_v56 = vsub.f32 %v14916_v36, %v169_v41 }
  0x6e   :  { %v280_v29 = vand.u32 4294901760, %v279_v32  ;;  %v287_v35 = vand.u32 4294901760, %v286_v33  ;;  %v306_v57 = vand.u32 4294901760, %v15026_v30  ;;  %v313_v58 = vand.u32 4294901760, %v15035_v22 }
  0x6f   :  { %13528 = vmatpush3.bf16.msra.mxu1 %v14913_v34  ;;  %13624 = vmatpush3.bf16.msra.mxu0 %v14913_v34  ;;  %v13549_v62 = vpack.c.bf16 %v273_v48, %v266_v47  ;;  %v15050_v63 = vsub.f32 %v14918_v37, %v172_v42  ;;  %v13649_v36 = vpack.c.bf16 %v285_v14, %v278_v12  ;;  %v294_v41 = vand.u32 4294901760, %v293_v54 }
  0x70   :  { %13530 = vmatprep.subr.bf16.mxu1 %v14942_v46  ;;  %13626 = vmatprep.subr.bf16.mxu0 %v14942_v46  ;;  %v13553_v2 = vpack.c.bf16 %v287_v35, %v280_v29  ;;  %v307_v3 = vsub.f32 %v15026_v30, %v306_v57  ;;  %v314_v4 = vsub.f32 %v15035_v22, %v313_v58  ;;  %v320_v5 = vand.u32 4294901760, %v15042_v56  ;;  %v823_v35 = vld [vmem:[#allocation8 + $0xa0] sm:$0xff] }
  0x71   :  { %v327_v37 = vand.u32 4294901760, %v15050_v63  ;;  %v15061_v42 = vsub.f32 %v14930_v43, %v175_v50  ;;  %v13653_v9 = vpack.c.bf16 %v299_v28, %v292_v26  ;;  %v13577_v54 = vpack.c.bf16 %v14947_v49, %v14934_v45  ;;  %v819_v45 = vld [vmem:[#allocation8 + $0x80] sm:$0xff]  ;;  %v820_v49 = vld [vmem:[#allocation8 + $0x88] sm:$0xff] }
  0x72   :  { %v308_v11 = vand.u32 4294901760, %v307_v3  ;;  %v315_v12 = vand.u32 4294901760, %v314_v4  ;;  %v321_v14 = vsub.f32 %v15042_v56, %v320_v5  ;;  %v825_v4 = vld [vmem:[#allocation8 + $0xb0] sm:$0xff]  ;;  %vm14695_vm0 = vmmov 0  }
  0x73   :  { %13532 = vmatpush3.bf16.msra.mxu1 %v14942_v46  ;;  %13628 = vmatpush3.bf16.msra.mxu0 %v14942_v46  ;;  %v328_v16 = vsub.f32 %v15050_v63, %v327_v37  ;;  %v334_v43 = vand.u32 4294901760, %v15061_v42  ;;  %v13661_v33 = vpack.c.bf16 %v327_v37, %v320_v5  ;;  %v826_v5 = vld [vmem:[#allocation8 + $0xb8] sm:$0xff]  ;;  %vm3114_vm1 = vcmask 261120  }
  0x74   :  { %13534 = vmatprep.subr.bf16.mxu1 %v14960_v53  ;;  %13630 = vmatprep.subr.bf16.mxu0 %v14960_v53  ;;  %v322_v19 = vand.u32 4294901760, %v321_v14  ;;  %v827_v14 = vld [vmem:[#allocation8 + $0xc0] sm:$0xff]  ;;  %vm6731_vm2 = vcmask 64512   ;;  %vm10710_vm3 = vcmask 523264   ;;  %vm10713_vm4 = vcmask 785408  }
  0x77   :  { %13536 = vmatpush3.bf16.msra.mxu1 %v14960_v53  ;;  %13632 = vmatpush3.bf16.msra.mxu0 %v14960_v53 }
  0x78   :  { %13538 = vmatprep.subr.bf16.mxu1 %v14982_v60  ;;  %13634 = vmatprep.subr.bf16.mxu0 %v14982_v60 }
  0x7b   :  { %13540 = vmatpush3.bf16.msra.mxu1 %v14982_v60  ;;  %13636 = vmatpush3.bf16.msra.mxu0 %v14982_v60 }
  0x7c   :  { %13542 = vmatprep.subr.bf16.mxu1 %v13541_v15  ;;  %13638 = vmatprep.subr.bf16.mxu0 %v13637_v7 }
  0x7e   :  { %12222 = vmatmul.mubr.f32.vlgmr.msra.gmra.mrb[0].mxu1 %v227_v21  ;;  %12327 = vmatmul.mubr.f32.vlgmr.msra.gmra.mrb[0].mxu0 %v225_v61  ;;  %v300_v61 = vsub.f32 %v15020_v20, %v299_v28  ;;  %v329_v21 = vand.u32 4294901760, %v328_v16 }
  0x7f   :  { %13544 = vmatpush3.bf16.msra.mxu1 %v13541_v15  ;;  %13640 = vmatpush3.bf16.msra.mxu0 %v13637_v7  ;;  %v15066_v7 = vsub.f32 %v14932_v44, %v178_v51  ;;  %v13561_v44 = vpack.c.bf16 %v315_v12, %v308_v11  ;;  %v13657_v51 = vpack.c.bf16 %v313_v58, %v306_v57  ;;  %v824_v57 = vld [vmem:[#allocation8 + $0xa8] sm:$0xff] }
  0x80   :  { %13546 = vmatprep.subr.bf16.mxu1 %v13545_v27  ;;  %13642 = vmatprep.subr.bf16.mxu0 %v13641_v24  ;;  %v301_v6 = vand.u32 4294901760, %v300_v61  ;;  %v13565_v32 = vpack.c.bf16 %v329_v21, %v322_v19  ;;  %v829_v21 = vld [vmem:[#allocation8 + $0xd0] sm:$0xff] }
  0x81   :  { %12256 = vmatprep.mubr.f32.mxu1 %v14867_v17  ;;  %12361 = vmatprep.mubr.f32.mxu0 %v14867_v17  ;;  %v341_v50 = vand.u32 4294901760, %v15066_v7 }
  0x82   :  { %v13557_v15 = vpack.c.bf16 %v301_v6, %v294_v41 }
  0x83   :  { %13548 = vmatpush3.bf16.msra.mxu1 %v13545_v27  ;;  %13644 = vmatpush3.bf16.msra.mxu0 %v13641_v24  ;;  %v335_v24 = vsub.f32 %v15061_v42, %v334_v43  ;;  %v342_v26 = vsub.f32 %v15066_v7, %v341_v50  ;;  %v13665_v28 = vpack.c.bf16 %v341_v50, %v334_v43  ;;  %v868_v50 = vand.u32 4294901760, %v827_v14 }
  0x84   :  { %13550 = vmatprep.subr.bf16.mxu1 %v13549_v62  ;;  %13646 = vmatprep.subr.bf16.mxu0 %v13645_v31 }
  0x85   :  { %v336_v27 = vand.u32 4294901760, %v335_v24  ;;  %v343_v47 = vand.u32 4294901760, %v342_v26  ;;  %v830_v24 = vld [vmem:[#allocation8 + $0xd8] sm:$0xff] }
  0x87   :  { %13552 = vmatpush3.bf16.msra.mxu1 %v13549_v62  ;;  %13648 = vmatpush3.bf16.msra.mxu0 %v13645_v31  ;;  %v13569_v48 = vpack.c.bf16 %v343_v47, %v336_v27  ;;  %v13573_v31 = vpack.c.bf16 %v14922_v39, %v14920_v38  ;;  %v13581_v38 = vpack.c.bf16 %v14976_v59, %v14966_v55  ;;  %v844_v55 = vand.u32 4294901760, %v819_v45  ;;  %v817_v47 = vld [vmem:[#allocation5 + $0x8] sm:$0xff] }
  0x88   :  { %13554 = vmatprep.subr.bf16.mxu1 %v13553_v2  ;;  %13650 = vmatprep.subr.bf16.mxu0 %v13649_v36  ;;  %v13585_v39 = vpack.c.bf16 %v14997_v1, %v14992_v0  ;;  %v847_v59 = vand.u32 4294901760, %v820_v49  ;;  %v821_v1 = vld [vmem:[#allocation8 + $0x90] sm:$0xff] }
  0x8a   :  { %v15122_v29 = vpack.c.bf16 %v847_v59, %v844_v55 }
  0x8b   :  { %13556 = vmatpush3.bf16.msra.mxu1 %v13553_v2  ;;  %13652 = vmatpush3.bf16.msra.mxu0 %v13649_v36  ;;  %v859_v36 = vand.u32 4294901760, %v824_v57 }
  0x8c   :  { %13558 = vmatprep.subr.bf16.mxu1 %v13557_v15  ;;  %13654 = vmatprep.subr.bf16.mxu0 %v13653_v9 }
  0x8f   :  { %13560 = vmatpush3.bf16.msra.mxu1 %v13557_v15  ;;  %13656 = vmatpush3.bf16.msra.mxu0 %v13653_v9  ;;  %v865_v9 = vand.u32 4294901760, %v826_v5  ;;  %v828_v15 = vld [vmem:[#allocation8 + $0xc8] sm:$0xff] }
  0x90   :  { %13562 = vmatprep.subr.bf16.mxu1 %v13561_v44  ;;  %13658 = vmatprep.subr.bf16.mxu0 %v13657_v51 }
  0x91   :  { %v15162_v43 = vsub.f32 %v826_v5, %v865_v9 }
  0x93   :  { %13564 = vmatpush3.bf16.msra.mxu1 %v13561_v44  ;;  %13660 = vmatpush3.bf16.msra.mxu0 %v13657_v51  ;;  %v871_v44 = vand.u32 4294901760, %v828_v15 }
  0x94   :  { %13566 = vmatprep.subr.bf16.mxu1 %v13565_v32  ;;  %13662 = vmatprep.subr.bf16.mxu0 %v13661_v33 }
  0x95   :  { %v15174_v27 = vsub.f32 %v828_v15, %v871_v44 }
  0x97   :  { %13568 = vmatpush3.bf16.msra.mxu1 %v13565_v32  ;;  %13664 = vmatpush3.bf16.msra.mxu0 %v13661_v33  ;;  %v996_v32 = vand.u32 4294901760, %v15162_v43  ;;  %v15172_v33 = vsub.f32 %v827_v14, %v868_v50 }
  0x98   :  { %13570 = vmatprep.subr.bf16.mxu1 %v13569_v48  ;;  %13666 = vmatprep.subr.bf16.mxu0 %v13665_v28 }
  0x9b   :  { %13572 = vmatpush3.bf16.msra.mxu1 %v13569_v48  ;;  %13668 = vmatpush3.bf16.msra.mxu0 %v13665_v28  ;;  %v15180_v28 = vpack.c.bf16 %v871_v44, %v868_v50 }
  0x9c   :  { %13574 = vmatprep.subr.bf16.mxu1 %v13573_v31  ;;  %13670 = vmatprep.subr.bf16.mxu0 %v14853_v10 }
  0x9e   :  { %12257 = vmatmul.mubr.f32.vlgmr.msra.gmra.mrb[0].mxu1 %v14924_v40  ;;  %12362 = vmatmul.mubr.f32.vlgmr.msra.gmra.mrb[0].mxu0 %v14924_v40 }
  0x9f   :  { %13576 = vmatpush3.bf16.msra.mxu1 %v13573_v31  ;;  %13672 = vmatpush3.bf16.msra.mxu0 %v14853_v10  ;;  %v13589_v10 = vpack.c.bf16 %v15020_v20, %v15007_v8  ;;  %v822_v8 = vld [vmem:[#allocation8 + $0x98] sm:$0xff]  ;;  %v15113_v20 = vsub.f32 %v819_v45, %v844_v55  ;;  %v874_v31 = vand.u32 4294901760, %v829_v21 }
  0xa0   :  { %13578 = vmatprep.subr.bf16.mxu1 %v13577_v54  ;;  %13674 = vmatprep.subr.bf16.mxu0 %v14857_v13 }
  0xa1   :  { %12291 = vmatprep.mubr.f32.mxu1 %v14884_v23  ;;  %12396 = vmatprep.mubr.f32.mxu0 %v14867_v17  ;;  %v816_v23 = vld [vmem:[#allocation5] sm:$0xff]  ;;  %v13593_v17 = vpack.c.bf16 %v15035_v22, %v15026_v30  ;;  %v15115_v30 = vsub.f32 %v820_v49, %v847_v59  ;;  %v853_v22 = vand.u32 4294901760, %v822_v8  ;;  %v947_v58 = vand.u32 4294901760, %v15113_v20  ;;  %v833_v59 = vld [vmem:[#allocation8 + $0xf0] sm:$0xff] }
  0xa3   :  { %13580 = vmatpush3.bf16.msra.mxu1 %v13577_v54  ;;  %13676 = vmatpush3.bf16.msra.mxu0 %v14857_v13  ;;  %v15096_v13 = vand.u32 4294901760, %v816_v23  ;;  %v954_v62 = vand.u32 4294901760, %v15115_v30  ;;  %v877_v54 = vand.u32 4294901760, %v830_v24 }
  0xa4   :  { %13582 = vmatprep.subr.bf16.mxu1 %v13581_v38  ;;  %13678 = vmatprep.subr.bf16.mxu0 %v14875_v18 }
  0xa5   :  { %v15135_v2 = vpack.c.bf16 %v954_v62, %v947_v58  ;;  %v15190_v45 = vpack.c.bf16 %v877_v54, %v874_v31  ;;  %v15226_v44 = vsub.f32 %v830_v24, %v877_v54 }
  0xa7   :  { %13584 = vmatpush3.bf16.msra.mxu1 %v13581_v38  ;;  %13680 = vmatpush3.bf16.msra.mxu0 %v14875_v18  ;;  %v15103_v18 = vsub.f32 %v816_v23, %v15096_v13  ;;  %v831_v38 = vld [vmem:[#allocation8 + $0xe0] sm:$0xff]  ;;  %v1010_v23 = vand.u32 4294901760, %v15174_v27 }
  0xa8   :  { %13586 = vmatprep.subr.bf16.mxu1 %v13585_v39  ;;  %13682 = vmatprep.subr.bf16.mxu0 %v14895_v25  ;;  %v880_v49 = vand.u32 4294901760, %v831_v38 }
  0xa9   :  { %v926_v0 = vand.u32 4294901760, %v15103_v18 }
  0xab   :  { %13588 = vmatpush3.bf16.msra.mxu1 %v13585_v39  ;;  %13684 = vmatpush3.bf16.msra.mxu0 %v14895_v25  ;;  %v13597_v25 = vpack.c.bf16 %v15050_v63, %v15042_v56  ;;  %v927_v56 = vsub.f32 %v15103_v18, %v926_v0  ;;  %v856_v63 = vand.u32 4294901760, %v823_v35  ;;  %v832_v39 = vld [vmem:[#allocation8 + $0xe8] sm:$0xff] }
  0xac   :  { %13590 = vmatprep.subr.bf16.mxu1 %v13589_v10  ;;  %13686 = vmatprep.subr.bf16.mxu0 %v14913_v34  ;;  %v883_v55 = vand.u32 4294901760, %v832_v39 }
  0xad   :  { %v928_v41 = vand.u32 4294901760, %v927_v56  ;;  %v15156_v12 = vpack.c.bf16 %v859_v36, %v856_v63  ;;  %v948_v56 = vsub.f32 %v15113_v20, %v947_v58 }
  0xaf   :  { %13592 = vmatpush3.bf16.msra.mxu1 %v13589_v10  ;;  %13688 = vmatpush3.bf16.msra.mxu0 %v14913_v34  ;;  %v13601_v34 = vpack.c.bf16 %v15066_v7, %v15061_v42  ;;  %v15144_v42 = vsub.f32 %v824_v57, %v859_v36  ;;  %v862_v7 = vand.u32 4294901760, %v825_v4  ;;  %v1003_v10 = vand.u32 4294901760, %v15172_v33 }
  0xb0   :  { %13594 = vmatprep.subr.bf16.mxu1 %v13593_v17  ;;  %13690 = vmatprep.subr.bf16.mxu0 %v14942_v46  ;;  %v949_v36 = vand.u32 4294901760, %v948_v56 }
  0xb1   :  { %v15160_v16 = vsub.f32 %v825_v4, %v862_v7  ;;  %v15168_v19 = vpack.c.bf16 %v865_v9, %v862_v7 }
  0xb3   :  { %13596 = vmatpush3.bf16.msra.mxu1 %v13593_v17  ;;  %13692 = vmatpush3.bf16.msra.mxu0 %v14942_v46  ;;  %v850_v46 = vand.u32 4294901760, %v821_v1  ;;  %v989_v26 = vand.u32 4294901760, %v15160_v16  ;;  %v15184_v17 = vand.u32 4294901760, %v817_v47 }
  0xb4   :  { %13598 = vmatprep.subr.bf16.mxu1 %v13597_v25  ;;  %13694 = vmatprep.subr.bf16.mxu0 %v14960_v53 }
  0xb5   :  { %v15126_v61 = vsub.f32 %v821_v1, %v850_v46  ;;  %v15138_v3 = vpack.c.bf16 %v853_v22, %v850_v46  ;;  %v15177_v48 = vpack.c.bf16 %v996_v32, %v989_v26  ;;  %v15193_v1 = vsub.f32 %v817_v47, %v15184_v17 }
  0xb7   :  { %13600 = vmatpush3.bf16.msra.mxu1 %v13597_v25  ;;  %13696 = vmatpush3.bf16.msra.mxu0 %v14960_v53  ;;  %v15128_v53 = vsub.f32 %v822_v8, %v853_v22  ;;  %v961_v6 = vand.u32 4294901760, %v15126_v61  ;;  %v15187_v25 = vpack.c.bf16 %v1010_v23, %v1003_v10  ;;  %v886_v8 = vand.u32 4294901760, %v833_v59 }
  0xb8   :  { %13602 = vmatprep.subr.bf16.mxu1 %v13601_v34  ;;  %13698 = vmatprep.subr.bf16.mxu0 %v14982_v60  ;;  %v15197_v22 = vpack.c.bf16 %v883_v55, %v880_v49  ;;  %v936_v57 = vand.u32 4294901760, %v15193_v1 }
  0xb9   :  { %v968_v37 = vand.u32 4294901760, %v15128_v53  ;;  %v962_v4 = vsub.f32 %v15126_v61, %v961_v6 }
  0xbb   :  { %13604 = vmatpush3.bf16.msra.mxu1 %v13601_v34  ;;  %13700 = vmatpush3.bf16.msra.mxu0 %v14982_v60  ;;  %v15142_v60 = vsub.f32 %v823_v35, %v856_v63  ;;  %v15153_v11 = vpack.c.bf16 %v968_v37, %v961_v6  ;;  %v834_v34 = vld [vmem:[#allocation8 + $0xf8] sm:$0xff]  ;;  %v955_v35 = vsub.f32 %v15115_v30, %v954_v62  ;;  %v963_v9 = vand.u32 4294901760, %v962_v4 }
  0xbc   :  { %13702 = vmatprep.subr.bf16.mxu1 %v15122_v29  ;;  %v889_v46 = vand.u32 4294901760, %v834_v34  ;;  %v969_v58 = vsub.f32 %v15128_v53, %v968_v37  ;;  %v937_v62 = vsub.f32 %v15193_v1, %v936_v57  ;;  %v15224_v37 = vsub.f32 %v829_v21, %v874_v31 }
  0xbd   :  { %v1024_v21 = vand.u32 4294901760, %v15226_v44  ;;  %v15235_v31 = vsub.f32 %v832_v39, %v883_v55 }
  0xbe   :  { %12292 = vmatmul.mubr.f32.vlgmr.msra.gmra.mrb[0].mxu1 %v14952_v52  ;;  %12397 = vmatmul.mubr.f32.vlgmr.msra.gmra.mrb[0].mxu0 %v14924_v40  ;;  %v975_v52 = vand.u32 4294901760, %v15142_v60  ;;  %v982_v40 = vand.u32 4294901760, %v15144_v42  ;;  %v15207_v63 = vpack.c.bf16 %v889_v46, %v886_v8  ;;  %v970_v14 = vand.u32 4294901760, %v969_v58 }
  0xbf   :  { %13704 = vmatpush3.bf16.msra.mxu1 %v15122_v29  ;;  %12431 = vmatprep.mubr.f32.mxu1 %v928_v41  ;;  %v956_v41 = vand.u32 4294901760, %v955_v35  ;;  %v938_v6 = vand.u32 4294901760, %v937_v62  ;;  %v997_v35 = vsub.f32 %v15162_v43, %v996_v32  ;;  %v1011_v32 = vsub.f32 %v15174_v27, %v1010_v23 }
  0xc0   :  { %13706 = vmatprep.subr.bf16.mxu1 %v15138_v3  ;;  %v15165_v51 = vpack.c.bf16 %v982_v40, %v975_v52  ;;  %v976_v5 = vsub.f32 %v15142_v60, %v975_v52  ;;  %v983_v15 = vsub.f32 %v15144_v42, %v982_v40  ;;  %v13737_v47 = vpack.c.bf16 %v970_v14, %v963_v9 }
  0xc1   :  { %v13733_v7 = vpack.c.bf16 %v956_v41, %v949_v36  ;;  %v990_v52 = vsub.f32 %v15160_v16, %v989_v26  ;;  %v15230_v36 = vsub.f32 %v831_v38, %v880_v49  ;;  %v1004_v40 = vsub.f32 %v15172_v33, %v1003_v10 }
  0xc2   :  { %v977_v50 = vand.u32 4294901760, %v976_v5  ;;  %v984_v56 = vand.u32 4294901760, %v983_v15  ;;  %v1017_v41 = vand.u32 4294901760, %v15224_v37  ;;  %v998_v26 = vand.u32 4294901760, %v997_v35 }
  0xc3   :  { %13708 = vmatpush3.bf16.msra.mxu1 %v15138_v3  ;;  %v991_v54 = vand.u32 4294901760, %v990_v52  ;;  %v1031_v38 = vand.u32 4294901760, %v15230_v36  ;;  %v1005_v49 = vand.u32 4294901760, %v1004_v40  ;;  %v1025_v39 = vsub.f32 %v15226_v44, %v1024_v21 }
  0xc4   :  { %13710 = vmatprep.subr.bf16.mxu1 %v15156_v12  ;;  %v13741_v24 = vpack.c.bf16 %v984_v56, %v977_v50  ;;  %v1018_v10 = vsub.f32 %v15224_v37, %v1017_v41  ;;  %v1038_v55 = vand.u32 4294901760, %v15235_v31  ;;  %v1012_v58 = vand.u32 4294901760, %v1011_v32 }
  0xc5   :  { %v13745_v4 = vpack.c.bf16 %v998_v26, %v991_v54  ;;  %v15247_v62 = vsub.f32 %v833_v59, %v886_v8  ;;  %v15249_v23 = vsub.f32 %v834_v34, %v889_v46  ;;  %v1032_v9 = vsub.f32 %v15230_v36, %v1031_v38 }
  0xc6   :  { %v1019_v5 = vand.u32 4294901760, %v1018_v10  ;;  %v13749_v14 = vpack.c.bf16 %v1012_v58, %v1005_v49  ;;  %v1039_v15 = vsub.f32 %v15235_v31, %v1038_v55  ;;  %v13769_v54 = vpack.c.bf16 %v15128_v53, %v15126_v61  ;;  %v15379_v10 = vld [vmem:[#allocation8 + $0x140] sm:$0xff] }
  0xc7   :  { %13712 = vmatpush3.bf16.msra.mxu1 %v15156_v12  ;;  %v1052_v59 = vand.u32 4294901760, %v15249_v23  ;;  %v1033_v34 = vand.u32 4294901760, %v1032_v9  ;;  %v13773_v26 = vpack.c.bf16 %v15144_v42, %v15142_v60  ;;  %v13777_v32 = vpack.c.bf16 %v15162_v43, %v15160_v16 }
  0xc8   :  { %13714 = vmatprep.subr.bf16.mxu1 %v15168_v19  ;;  %v1040_v46 = vand.u32 4294901760, %v1039_v15  ;;  %v13789_v61 = vpack.c.bf16 %v15235_v31, %v15230_v36  ;;  %v13793_v53 = vpack.c.bf16 %v15249_v23, %v15247_v62  ;;  %v15368_v36 = vld [vmem:[#allocation8 + $0x138] sm:$0xff] }
  0xc9   :  { %v1576_v49 = vand.u32 4294901760, %v15368_v36 }
  0xca   :  { %v13757_v56 = vpack.c.bf16 %v1040_v46, %v1033_v34  ;;  %v15408_v46 = vld [vmem:[#allocation8 + $0x168] sm:$0xff] }
  0xcb   :  { %13716 = vmatpush3.bf16.msra.mxu1 %v15168_v19 }
  0xcc   :  { %13718 = vmatprep.subr.bf16.mxu1 %v15180_v28 }
  0xcf   :  { %13720 = vmatpush3.bf16.msra.mxu1 %v15180_v28 }
  0xd0   :  { %13722 = vmatprep.subr.bf16.mxu1 %v15190_v45 }
  0xd3   :  { %13724 = vmatpush3.bf16.msra.mxu1 %v15190_v45 }
  0xd4   :  { %13726 = vmatprep.subr.bf16.mxu1 %v15197_v22 }
  0xd7   :  { %13728 = vmatpush3.bf16.msra.mxu1 %v15197_v22 }
  0xd8   :  { %13730 = vmatprep.subr.bf16.mxu1 %v15207_v63 }
  0xdb   :  { %13732 = vmatpush3.bf16.msra.mxu1 %v15207_v63 }
  0xdc   :  { %13734 = vmatprep.subr.bf16.mxu1 %v13733_v7 }
  0xde   :  { %12432 = vmatmul.mubr.f32.vlgmr.msra.gmra.mrb[2].mxu1 %v938_v6  ;;  %v1045_v6 = vand.u32 4294901760, %v15247_v62 }
  0xdf   :  { %13736 = vmatpush3.bf16.msra.mxu1 %v13733_v7  ;;  %12466 = vmatprep.mubr.f32.mxu1 %v15096_v13  ;;  %v1026_v7 = vand.u32 4294901760, %v1025_v39  ;;  %v15381_v39 = vld [vmem:[#allocation8 + $0x148] sm:$0xff] }
  0xe0   :  { %13738 = vmatprep.subr.bf16.mxu1 %v13737_v47  ;;  %v1046_v50 = vsub.f32 %v15247_v62, %v1045_v6  ;;  %v1579_v62 = vand.u32 4294901760, %v15379_v10 }
  0xe1   :  { %v13753_v8 = vpack.c.bf16 %v1026_v7, %v1019_v5  ;;  %v15393_v5 = vld [vmem:[#allocation8 + $0x150] sm:$0xff]  ;;  %v15395_v7 = vld [vmem:[#allocation8 + $0x158] sm:$0xff] }
  0xe2   :  { %v1047_v52 = vand.u32 4294901760, %v1046_v50  ;;  %v1588_v34 = vand.u32 4294901760, %v15395_v7 }
  0xe3   :  { %13740 = vmatpush3.bf16.msra.mxu1 %v13737_v47  ;;  %v1053_v47 = vsub.f32 %v15249_v23, %v1052_v59  ;;  %v1582_v23 = vand.u32 4294901760, %v15381_v39 }
  0xe4   :  { %13742 = vmatprep.subr.bf16.mxu1 %v13741_v24 }
  0xe5   :  { %v1054_v35 = vand.u32 4294901760, %v1053_v47 }
  0xe7   :  { %13744 = vmatpush3.bf16.msra.mxu1 %v13741_v24  ;;  %v13761_v40 = vpack.c.bf16 %v1054_v35, %v1047_v52  ;;  %v13765_v24 = vpack.c.bf16 %v15115_v30, %v15113_v20  ;;  %v13781_v20 = vpack.c.bf16 %v15174_v27, %v15172_v33  ;;  %v13785_v30 = vpack.c.bf16 %v15226_v44, %v15224_v37  ;;  %v1532_v33 = vld [vmem:[#allocation8 + $0x110] sm:$0xff] }
  0xe8   :  { %13746 = vmatprep.subr.bf16.mxu1 %v13745_v4  ;;  %v15366_v44 = vld [vmem:[#allocation8 + $0x130] sm:$0xff]  ;;  %v1594_v35 = vand.u32 4294901760, %v15408_v46 }
  0xeb   :  { %13748 = vmatpush3.bf16.msra.mxu1 %v13745_v4 }
  0xec   :  { %13750 = vmatprep.subr.bf16.mxu1 %v13749_v14 }
  0xef   :  { %13752 = vmatpush3.bf16.msra.mxu1 %v13749_v14  ;;  %v1585_v14 = vand.u32 4294901760, %v15393_v5 }
  0xf0   :  { %13754 = vmatprep.subr.bf16.mxu1 %v13753_v8 }
  0xf3   :  { %13756 = vmatpush3.bf16.msra.mxu1 %v13753_v8  ;;  %v15406_v8 = vld [vmem:[#allocation8 + $0x160] sm:$0xff] }
  0xf4   :  { %13758 = vmatprep.subr.bf16.mxu1 %v13757_v56  ;;  %v1591_v52 = vand.u32 4294901760, %v15406_v8 }
  0xf7   :  { %13760 = vmatpush3.bf16.msra.mxu1 %v13757_v56 }
  0xf8   :  { %13762 = vmatprep.subr.bf16.mxu1 %v13761_v40 }
  0xfb   :  { %13764 = vmatpush3.bf16.msra.mxu1 %v13761_v40  ;;  %v15419_v40 = vld [vmem:[#allocation8 + $0x170] sm:$0xff] }
  0xfc   :  { %13766 = vmatprep.subr.bf16.mxu1 %v13765_v24 }
  0xfe   :  { %12467 = vmatmul.mubr.f32.vlgmr.msra.gmra.mrb[2].mxu1 %v15184_v17 }
  0xff   :  { %13768 = vmatpush3.bf16.msra.mxu1 %v13765_v24  ;;  %12501 = vmatprep.mubr.f32.mxu1 %v15103_v18  ;;  %v13849_v18 = vpack.c.bf16 %v1024_v21, %v1017_v41  ;;  %v1527_v41 = vld [vmem:[#allocation7] sm:$0xff]  ;;  %v15421_v24 = vld [vmem:[#allocation8 + $0x178] sm:$0xff] }
 0x100   :  { %13770 = vmatprep.subr.bf16.mxu1 %v13769_v54  ;;  %v15372_v21 = vand.u32 4294901760, %v1527_v41 }
 0x103   :  { %13772 = vmatpush3.bf16.msra.mxu1 %v13769_v54 }
 0x104   :  { %13774 = vmatprep.subr.bf16.mxu1 %v13773_v26 }
 0x107   :  { %13776 = vmatpush3.bf16.msra.mxu1 %v13773_v26  ;;  %v15428_v26 = vpack.c.bf16 %v1588_v34, %v1585_v14 }
 0x108   :  { %13778 = vmatprep.subr.bf16.mxu1 %v13777_v32 }
 0x10b   :  { %13780 = vmatpush3.bf16.msra.mxu1 %v13777_v32 }
 0x10c   :  { %13782 = vmatprep.subr.bf16.mxu1 %v13781_v20 }
 0x10f   :  { %13784 = vmatpush3.bf16.msra.mxu1 %v13781_v20 }
 0x110   :  { %13786 = vmatprep.subr.bf16.mxu1 %v13785_v30 }
 0x113   :  { %13788 = vmatpush3.bf16.msra.mxu1 %v13785_v30 }
 0x114   :  { %13790 = vmatprep.subr.bf16.mxu1 %v13789_v61 }
 0x117   :  { %13792 = vmatpush3.bf16.msra.mxu1 %v13789_v61  ;;  %v1597_v61 = vand.u32 4294901760, %v15419_v40 }
 0x118   :  { %13794 = vmatprep.subr.bf16.mxu1 %v13793_v53 }
 0x11b   :  { %13796 = vmatpush3.bf16.msra.mxu1 %v13793_v53  ;;  %v1600_v53 = vand.u32 4294901760, %v15421_v24 }
 0x11c   :  { %13798 = vmatprep.subr.bf16.mxu1 %v15122_v29 }
 0x11e   :  { %12502 = vmatmul.mubr.f32.vlgmr.msra.gmra.mrb[2].mxu1 %v15193_v1 }
 0x11f   :  { %13800 = vmatpush3.bf16.msra.mxu1 %v15122_v29  ;;  %12536 = vmatprep.mubr.f32.mxu1 %v926_v0  ;;  %v13853_v0 = vpack.c.bf16 %v1038_v55, %v1031_v38  ;;  %v1573_v38 = vand.u32 4294901760, %v15366_v44  ;;  %v15384_v55 = vsub.f32 %v1527_v41, %v15372_v21 }
 0x120   :  { %13802 = vmatprep.subr.bf16.mxu1 %v15138_v3 }
 0x121   :  { %v1637_v4 = vand.u32 4294901760, %v15384_v55  ;;  %v15389_v58 = vpack.c.bf16 %v1576_v49, %v1573_v38 }
 0x123   :  { %13804 = vmatpush3.bf16.msra.mxu1 %v15138_v3  ;;  %v1638_v9 = vsub.f32 %v15384_v55, %v1637_v4 }
 0x124   :  { %13806 = vmatprep.subr.bf16.mxu1 %v15156_v12 }
 0x125   :  { %v1639_v15 = vand.u32 4294901760, %v1638_v9 }
 0x127   :  { %13808 = vmatpush3.bf16.msra.mxu1 %v15156_v12  ;;  %12641 = vmatprep.mubr.f32.mxu0 %v1639_v15 }
 0x128   :  { %13810 = vmatprep.subr.bf16.mxu1 %v15168_v19 }
 0x12b   :  { %13812 = vmatpush3.bf16.msra.mxu1 %v15168_v19 }
 0x12c   :  { %13814 = vmatprep.subr.bf16.mxu1 %v15180_v28 }
 0x12f   :  { %13816 = vmatpush3.bf16.msra.mxu1 %v15180_v28 }
 0x130   :  { %13818 = vmatprep.subr.bf16.mxu1 %v15190_v45 }
 0x133   :  { %13820 = vmatpush3.bf16.msra.mxu1 %v15190_v45 }
 0x134   :  { %13822 = vmatprep.subr.bf16.mxu1 %v15197_v22 }
 0x137   :  { %13824 = vmatpush3.bf16.msra.mxu1 %v15197_v22 }
 0x138   :  { %13826 = vmatprep.subr.bf16.mxu1 %v15207_v63 }
 0x13b   :  { %13828 = vmatpush3.bf16.msra.mxu1 %v15207_v63 }
 0x13c   :  { %13830 = vmatprep.subr.bf16.mxu1 %v15135_v2 }
 0x13e   :  { %12537 = vmatmul.mubr.f32.vlgmr.msra.gmra.mrb[2].mxu1 %v936_v57 }
 0x13f   :  { %13832 = vmatpush3.bf16.msra.mxu1 %v15135_v2  ;;  %12571 = vmatprep.mubr.f32.mxu1 %v15096_v13  ;;  %v13857_v2 = vpack.c.bf16 %v1052_v59, %v1045_v6  ;;  %v1528_v6 = vld [vmem:[#allocation7 + $0x8] sm:$0xff]  ;;  %v15403_v59 = vpack.c.bf16 %v1582_v23, %v1579_v62 }
 0x140   :  { %13834 = vmatprep.subr.bf16.mxu1 %v15153_v11  ;;  %v15414_v56 = vand.u32 4294901760, %v1528_v6 }
 0x143   :  { %13836 = vmatpush3.bf16.msra.mxu1 %v15153_v11 }
 0x144   :  { %13838 = vmatprep.subr.bf16.mxu1 %v15165_v51 }
 0x147   :  { %13840 = vmatpush3.bf16.msra.mxu1 %v15165_v51  ;;  %v1530_v51 = vld [vmem:[#allocation8 + $0x100] sm:$0xff] }
 0x148   :  { %13842 = vmatprep.subr.bf16.mxu1 %v15177_v48  ;;  %v1555_v27 = vand.u32 4294901760, %v1530_v51 }
 0x14a   :  { %v15410_v50 = vsub.f32 %v1530_v51, %v1555_v27 }
 0x14b   :  { %13844 = vmatpush3.bf16.msra.mxu1 %v15177_v48 }
 0x14c   :  { %13846 = vmatprep.subr.bf16.mxu1 %v15187_v25  ;;  %v1658_v32 = vand.u32 4294901760, %v15410_v50 }
 0x14f   :  { %13848 = vmatpush3.bf16.msra.mxu1 %v15187_v25  ;;  %v1534_v25 = vld [vmem:[#allocation8 + $0x120] sm:$0xff] }
 0x150   :  { %13850 = vmatprep.subr.bf16.mxu1 %v13849_v18  ;;  %v1567_v57 = vand.u32 4294901760, %v1534_v25 }
 0x153   :  { %13852 = vmatpush3.bf16.msra.mxu1 %v13849_v18  ;;  %v15437_v18 = vsub.f32 %v1528_v6, %v15414_v56 }
 0x154   :  { %13854 = vmatprep.subr.bf16.mxu1 %v13853_v0 }
 0x157   :  { %13856 = vmatpush3.bf16.msra.mxu1 %v13853_v0  ;;  %v15444_v0 = vpack.c.bf16 %v1594_v35, %v1591_v52 }
 0x158   :  { %13858 = vmatprep.subr.bf16.mxu1 %v13857_v2 }
 0x15b   :  { %13860 = vmatpush3.bf16.msra.mxu1 %v13857_v2 }
 0x15c   :  { %13862 = vmatprep.subr.bf16.mxu1 %v15122_v29 }
 0x15e   :  { %12572 = vmatmul.mubr.f32.vlgmr.msra.gmra.mrb[2].mxu1 %v15184_v17 }
 0x15f   :  { %13864 = vmatpush3.bf16.msra.mxu1 %v15122_v29  ;;  %12606 = vmatprep.mubr.f32.mxu1 %v15096_v13  ;;  %v11539_v13 = vld [vmem:[%s16811_s4] ss:$0 sm:$0xff] }
 0x160   :  { %13866 = vmatprep.subr.bf16.mxu1 %v15138_v3 }
 0x163   :  { %13868 = vmatpush3.bf16.msra.mxu1 %v15138_v3 }
 0x164   :  { %13870 = vmatprep.subr.bf16.mxu1 %v15156_v12 }
 0x167   :  { %13872 = vmatpush3.bf16.msra.mxu1 %v15156_v12 }
 0x168   :  { %13874 = vmatprep.subr.bf16.mxu1 %v15168_v19 }
 0x16b   :  { %13876 = vmatpush3.bf16.msra.mxu1 %v15168_v19  ;;  %v1531_v19 = vld [vmem:[#allocation8 + $0x108] sm:$0xff] }
 0x16c   :  { %13878 = vmatprep.subr.bf16.mxu1 %v15180_v28  ;;  %v1558_v48 = vand.u32 4294901760, %v1531_v19 }
 0x16e   :  { %v15412_v47 = vsub.f32 %v1531_v19, %v1558_v48 }
 0x16f   :  { %13880 = vmatpush3.bf16.msra.mxu1 %v15180_v28  ;;  %v1533_v28 = vld [vmem:[#allocation8 + $0x118] sm:$0xff] }
 0x170   :  { %13882 = vmatprep.subr.bf16.mxu1 %v15190_v45  ;;  %v1564_v1 = vand.u32 4294901760, %v1533_v28  ;;  %v1665_v20 = vand.u32 4294901760, %v15412_v47 }
 0x172   :  { %v15432_v30 = vsub.f32 %v1533_v28, %v1564_v1 }
 0x173   :  { %13884 = vmatpush3.bf16.msra.mxu1 %v15190_v45  ;;  %v15359_v45 = vld [vmem:[#allocation8 + $0x128] sm:$0xff] }
 0x174   :  { %13886 = vmatprep.subr.bf16.mxu1 %v15197_v22 }
 0x177   :  { %13888 = vmatpush3.bf16.msra.mxu1 %v15197_v22  ;;  %v15361_v22 = vpack.c.bf16 %v1558_v48, %v1555_v27  ;;  %v15476_v27 = vsub.f32 %v15368_v36, %v1576_v49  ;;  %v15496_v49 = vsub.f32 %v15381_v39, %v1582_v23 }
 0x178   :  { %13890 = vmatprep.subr.bf16.mxu1 %v15207_v63 }
 0x179   :  { %13894 = vmatprep.subr.bf16.mxu0 %v15361_v22 }
 0x17a   :  { %13896 = vmatpush3.bf16.msra.mxu0 %v15361_v22 }
 0x17b   :  { %13892 = vmatpush3.bf16.msra.mxu1 %v15207_v63  ;;  %v1570_v63 = vand.u32 4294901760, %v15359_v45 }
 0x17d   :  { %v15375_v31 = vpack.c.bf16 %v1570_v63, %v1567_v57 }
 0x17e   :  { %12607 = vmatmul.mubr.f32.vlgmr.msra.gmra.mrb[2].mxu1 %v15184_v17  ;;  %v1561_v17 = vand.u32 4294901760, %v1532_v33 }
 0x180   :  { %v15364_v37 = vpack.c.bf16 %v1564_v1, %v1561_v17  ;;  %v15423_v54 = vsub.f32 %v1532_v33, %v1561_v17  ;;  %v15473_v33 = vsub.f32 %v15366_v44, %v1573_v38  ;;  %v15487_v44 = vsub.f32 %v15379_v10, %v1579_v62 }
 0x181   :  { %v16823_v38 = vand.u32 4294901760, %v15476_v27  ;;  %v14693_v62 = vmov 1934713408  }
 0x182   :  { %13898 = vmatprep.subr.bf16.mxu0 %v15364_v37  ;;  %v1672_v2 = vand.u32 4294901760, %v15423_v54  ;;  %v16821_v41 = vand.u32 4294901760, %v15473_v33  ;;  %v16822_v23 = vand.u32 4294901760, %v15487_v44 }
 0x183   :  { %13900 = vmatpush3.bf16.msra.mxu0 %v15364_v37 }
 0x184   :  { %13902 = vmatprep.subr.bf16.mxu0 %v15375_v31  ;;  %v1673_v51 = vsub.f32 %v15423_v54, %v1672_v2 }
 0x186   :  { %v1674_v15 = vand.u32 4294901760, %v1673_v51  ;;  %v1701_v51 = vsub.f32 %v15473_v33, %v16821_v41  ;;  %v15524_v41 = vsub.f32 %v15406_v8, %v1591_v52 }
 0x187   :  { %13904 = vmatpush3.bf16.msra.mxu0 %v15375_v31 }
 0x188   :  { %13906 = vmatprep.subr.bf16.mxu0 %v15389_v58 }
 0x18b   :  { %13908 = vmatpush3.bf16.msra.mxu0 %v15389_v58 }
 0x18c   :  { %13910 = vmatprep.subr.bf16.mxu0 %v15403_v59 }
 0x18f   :  { %13912 = vmatpush3.bf16.msra.mxu0 %v15403_v59 }
 0x190   :  { %13914 = vmatprep.subr.bf16.mxu0 %v15428_v26 }
 0x191   :  { %v12293_v29 = vpop.f32.mrb[0].mxu1  ;;  %v12398_v3 = vpop.f32.mrb[0].mxu0 }
 0x192   :  { %v14277_v60 = vadd.f32 %v12293_v29, %v11539_v13  ;;  %v490_v42 = vpop.f32.mrb[1].mxu1  ;;  %v806_v11 = vpop.f32.mrb[1].mxu0  ;;  %v1659_v29 = vsub.f32 %v15410_v50, %v1658_v32 }
 0x193   :  { %v14279_v12 = vadd.f32 %v11539_v13, %v490_v42  ;;  %v15447_v13 = vsub.f32 %v1534_v25, %v1567_v57  ;;  %v15458_v42 = vsub.f32 %v15359_v45, %v1570_v63  ;;  %13916 = vmatpush3.bf16.msra.mxu0 %v15428_v26  ;;  %v14692_v45 = vmov 1983009808  }
 0x194   :  { %v15349_v16 = vadd.f32 %v14277_v60, %v12398_v3  ;;  %v1666_v3 = vsub.f32 %v15412_v47, %v1665_v20  ;;  %v1679_v60 = vand.u32 4294901760, %v15432_v30  ;;  %13918 = vmatprep.subr.bf16.mxu0 %v15444_v0  ;;  %v1660_v48 = vand.u32 4294901760, %v1659_v29 }
 0x195   :  { %v15351_v43 = vadd.f32 %v14279_v12, %v806_v11  ;;  %v15464_v11 = vpack.c.bf16 %v1600_v53, %v1597_v61  ;;  %v1647_v12 = vand.u32 4294901760, %v15437_v18  ;;  %v16820_v19 = vand.u32 4294901760, %v15447_v13 }
 0x196   :  { %v1667_v28 = vand.u32 4294901760, %v1666_v3  ;;  %v1680_v17 = vsub.f32 %v15432_v30, %v1679_v60  ;;  %v16819_v25 = vand.u32 4294901760, %v15458_v42  ;;  %v2261_v1 = vunpack.c.l.s4 %v14692_v45 }
 0x197   :  { %2252 = vrot.lane.b32.xlu1 %v15351_v43, %s14689_s23  ;;  %2240 = vrot.lane.b32.xlu0 %v15351_v43, %s14690_s1  ;;  %v2263_v57 = vlaneseq  ;;  %v1648_v63 = vsub.f32 %v15437_v18, %v1647_v12  ;;  %v1687_v36 = vsub.f32 %v15447_v13, %v16820_v19  ;;  %v2293_v29 = vunpack.c.l.s4 %v14693_v62 }
 0x198   :  { %13920 = vmatpush3.bf16.msra.mxu0 %v15444_v0  ;;  %v13925_v9 = vpack.c.bf16 %v1667_v28, %v1660_v48  ;;  %v1681_v6 = vand.u32 4294901760, %v1680_v17  ;;  %v1694_v10 = vsub.f32 %v15458_v42, %v16819_v25  ;;  %v15505_v3 = vsub.f32 %v15393_v5, %v1585_v14 }
 0x199   :  { %13922 = vmatprep.subr.bf16.mxu0 %v15464_v11  ;;  %v15508_v45 = vsub.f32 %v15395_v7, %v1588_v34  ;;  %v1649_v39 = vand.u32 4294901760, %v1648_v63  ;;  %v2262_v48 = vunpack.c.0.s8 %v2261_v1  ;;  %v1708_v28 = vsub.f32 %v15476_v27, %v16823_v38 }
 0x19a   :  { %v1721_v5 = vand.u32 4294901760, %v15496_v49  ;;  %v2264_v14 = vshrl.u32 %v2263_v57, 7  ;;  %v13929_v7 = vpack.c.bf16 %v1681_v6, %v1674_v15  ;;  %v1688_v34 = vand.u32 4294901760, %v1687_v36 }
 0x19b   :  { %2246 = vrot.lane.b32.xlu0 %v15351_v43, %s14691_s18  ;;  %v1695_v17 = vand.u32 4294901760, %v1694_v10  ;;  %v2294_v1 = vunpack.c.0.s8 %v2293_v29  ;;  %v1728_v25 = vand.u32 4294901760, %v15505_v3  ;;  %v1735_v19 = vand.u32 4294901760, %v15508_v45 }
 0x19c   :  { %13924 = vmatpush3.bf16.msra.mxu0 %v15464_v11  ;;  %v1715_v57 = vsub.f32 %v15487_v44, %v16822_v23  ;;  %v15532_v36 = vsub.f32 %v15408_v46, %v1594_v35  ;;  %v1702_v15 = vand.u32 4294901760, %v1701_v51  ;;  %v1709_v6 = vand.u32 4294901760, %v1708_v28 }
 0x19d   :  { %13926 = vmatprep.subr.bf16.mxu0 %v13925_v9  ;;  %v1722_v10 = vsub.f32 %v15496_v49, %v1721_v5  ;;  %v15538_v8 = vsub.s32 %v2262_v48, %v2264_v14  ;;  %v15540_v23 = vsub.s32 %v2294_v1, %v2264_v14  ;;  %v1729_v46 = vsub.f32 %v15505_v3, %v1728_v25 }
 0x19e   :  { %v1736_v35 = vsub.f32 %v15508_v45, %v1735_v19  ;;  %v1716_v28 = vand.u32 4294901760, %v1715_v57  ;;  %v13937_v14 = vpack.c.bf16 %v1709_v6, %v1702_v15 }
 0x19f   :  { %12642 = vmatmul.mubr.f32.vlgmr.msra.gmra.mrb[2].mxu0 %v1649_v39  ;;  %v13933_v39 = vpack.c.bf16 %v1695_v17, %v1688_v34  ;;  %v16824_v34 = vand.u32 4294901760, %v15532_v36  ;;  %v1723_v17 = vand.u32 4294901760, %v1722_v10  ;;  %v1730_v57 = vand.u32 4294901760, %v1729_v46 }
 0x1a0   :  { %13928 = vmatpush3.bf16.msra.mxu0 %v13925_v9  ;;  %12676 = vmatprep.mubr.f32.mxu0 %v15372_v21  ;;  %v16825_v9 = vand.u32 4294901760, %v15524_v41  ;;  %v1737_v15 = vand.u32 4294901760, %v1736_v35 }
 0x1a1   :  { %13930 = vmatprep.subr.bf16.mxu0 %v13929_v7 }
 0x1a4   :  { %13932 = vmatpush3.bf16.msra.mxu0 %v13929_v7 }
 0x1a5   :  { %13934 = vmatprep.subr.bf16.mxu0 %v13933_v39 }
 0x1a8   :  { %13936 = vmatpush3.bf16.msra.mxu0 %v13933_v39 }
 0x1a9   :  { %13938 = vmatprep.subr.bf16.mxu0 %v13937_v14 }
 0x1ac   :  { %13940 = vmatpush3.bf16.msra.mxu0 %v13937_v14 }
 0x209   :  { %v2253_v63 = vpop.permute.xlu1 %2252  ;;  %v2241_v62 = vpop.permute.xlu0 %2240 }
 0x20a   :  { %v2274_v52 = vcombine.low %v2241_v62, %v2253_v63  ;;  %v2275_v29 = vcombine.high %v2241_v62, %v2253_v63  ;;  %v15555_v63 = vsub.f32 %v15419_v40, %v1597_v61  ;;  %v15560_v62 = vsub.f32 %v15421_v24, %v1600_v53 }
 0x20b   :  { %v1743_v40 = vsub.f32 %v15524_v41, %v16825_v9  ;;  %v13941_v53 = vpack.c.bf16 %v1723_v17, %v1716_v28 }
 0x20c   :  { %v2282_v1 = vrot.slane %v2274_v52, %v15538_v8  ;;  %v1750_v52 = vsub.f32 %v15532_v36, %v16824_v34 }
 0x20d   :  { %v2247_v38 = vpop.permute.xlu0 %2246  ;;  %13942 = vmatprep.subr.bf16.mxu0 %v13941_v53 }
 0x20e   :  { %v2258_v48 = vcombine.low %v15351_v43, %v2247_v38  ;;  %v2259_v51 = vcombine.high %v15351_v43, %v2247_v38  ;;  %v2289_v43 = vrot.slane %v2275_v29, %v15538_v8  ;;  %v1756_v29 = vand.u32 4294901760, %v15555_v63  ;;  %13944 = vmatpush3.bf16.msra.mxu0 %v13941_v53 }
 0x20f   :  { %v1751_v34 = vand.u32 4294901760, %v1750_v52  ;;  %v13965_v53 = vpack.c.bf16 %v15458_v42, %v15447_v13 }
 0x210   :  { %v2266_v38 = vrot.slane %v2258_v48, %v15538_v8  ;;  %v2273_v7 = vrot.slane %v2259_v51, %v15538_v8  ;;  %v1763_v48 = vand.u32 4294901760, %v15560_v62  ;;  %v1757_v9 = vsub.f32 %v15555_v63, %v1756_v29 }
 0x212   :  { %v2290_v61 = vcombine.low %v2266_v38, %v2282_v1  ;;  %v2291_v6 = vcombine.high %v2266_v38, %v2282_v1  ;;  %v2306_v10 = vcombine.low %v2273_v7, %v2289_v43  ;;  %v2307_v24 = vcombine.high %v2273_v7, %v2289_v43 }
 0x213   :  { %v1744_v43 = vand.u32 4294901760, %v1743_v40  ;;  %v13945_v7 = vpack.c.bf16 %v1737_v15, %v1730_v57 }
 0x214   :  { %v2298_v46 = vrot.slane %v2290_v61, %v15540_v23  ;;  %v2305_v35 = vrot.slane %v2291_v6, %v15540_v23  ;;  %v2314_v51 = vrot.slane %v2306_v10, %v15540_v23  ;;  %v2321_v1 = vrot.slane %v2307_v24, %v15540_v23 }
 0x215   :  { %v1764_v61 = vsub.f32 %v15560_v62, %v1763_v48  ;;  %v13949_v24 = vpack.c.bf16 %v1751_v34, %v1744_v43  ;;  %13946 = vmatprep.subr.bf16.mxu0 %v13945_v7  ;;  %v13957_v34 = vpack.c.bf16 %v15412_v47, %v15410_v50  ;;  %v13969_v43 = vpack.c.bf16 %v15476_v27, %v15473_v33 }
 0x216   :  { %v2394_v39 = vcombine.low %v2298_v46, %v2305_v35  ;;  %v11544_v28 = vcombine.high %v2298_v46, %v2305_v35  ;;  %v2410_v17 = vcombine.low %v2314_v51, %v2321_v1  ;;  %v11545_v38 = vcombine.high %v2314_v51, %v2321_v1  ;;  %13948 = vmatpush3.bf16.msra.mxu0 %v13945_v7 }
 0x217   :  { %v1758_v35 = vand.u32 4294901760, %v1757_v9  ;;  %v1765_v51 = vand.u32 4294901760, %v1764_v61  ;;  %13950 = vmatprep.subr.bf16.mxu0 %v13949_v24  ;;  %v13961_v9 = vpack.c.bf16 %v15432_v30, %v15423_v54  ;;  %v16841_v50 = vand.u32 4294901760, %v15458_v42 }
 0x218   :  { %v15585_v6 = vrot.slane %v2394_v39, %v15538_v8  ;;  %v15588_v40 = vrot.slane %v11544_v28, %v15538_v8  ;;  %v15591_v10 = vrot.slane %v2410_v17, %v15538_v8  ;;  %v15594_v14 = vrot.slane %v11545_v38, %v15538_v8  ;;  %v11541_v17 = vld [vmem:[%s16811_s4 + $0x1] ss:$0 sm:$0xff] }
 0x219   :  { %v13953_v28 = vpack.c.bf16 %v1765_v51, %v1758_v35  ;;  %v13985_v51 = vpack.c.bf16 %v15560_v62, %v15555_v63  ;;  %v16844_v54 = vand.u32 4294901760, %v15487_v44 }
 0x21a   :  { %v2427_v57 = vcombine.high %v15585_v6, %v15588_v40  ;;  %v2443_v15 = vcombine.high %v15591_v10, %v15594_v14  ;;  %13952 = vmatpush3.bf16.msra.mxu0 %v13949_v24  ;;  %v13981_v24 = vpack.c.bf16 %v15532_v36, %v15524_v41 }
 0x21b   :  { %13954 = vmatprep.subr.bf16.mxu0 %v13953_v28  ;;  %v14037_v30 = vpack.c.bf16 %v1721_v5, %v16844_v54 }
 0x21c   :  { %v15601_v52 = vrot.slane %v2427_v57, %v15540_v23  ;;  %v15604_v46 = vrot.slane %v2443_v15, %v15540_v23  ;;  %v13973_v57 = vpack.c.bf16 %v15496_v49, %v15487_v44  ;;  %v13977_v15 = vpack.c.bf16 %v15508_v45, %v15505_v3 }
 0x21e   :  { %v2460_v1 = vcombine.low %v15601_v52, %v15604_v46  ;;  %v2461_v39 = vcombine.high %v15601_v52, %v15604_v46  ;;  %13956 = vmatpush3.bf16.msra.mxu0 %v13953_v28  ;;  %v14694_v28 = vmov 0.0  }
 0x21f   :  { %13958 = vmatprep.subr.bf16.mxu0 %v13957_v34  ;;  %12819 = vmatprep.subr.mxu1 %v14694_v28 }
 0x220   :  { %12821 = vmatprep.mubr.msk.f32.mxu1 %vm14695_vm0, %v14694_v28 }
 0x221   :  { %12677 = vmatmul.mubr.f32.vlgmr.msra.gmra.mrb[2].mxu0 %v15414_v56 }
 0x222   :  { %13960 = vmatpush3.bf16.msra.mxu0 %v13957_v34  ;;  %12711 = vmatprep.mubr.f32.mxu0 %v15384_v55  ;;  %v14021_v55 = vpack.c.bf16 %v1665_v20, %v1658_v32  ;;  %v16840_v34 = vand.u32 4294901760, %v15447_v13  ;;  %v16842_v32 = vand.u32 4294901760, %v15473_v33  ;;  %v16843_v20 = vand.u32 4294901760, %v15476_v27 }
 0x223   :  { %13962 = vmatprep.subr.bf16.mxu0 %v13961_v9  ;;  %v16845_v13 = vand.u32 4294901760, %v15524_v41 }
 0x224   :  { %v14029_v47 = vpack.c.bf16 %v16841_v50, %v16840_v34 }
 0x226   :  { %13964 = vmatpush3.bf16.msra.mxu0 %v13961_v9 }
 0x227   :  { %13966 = vmatprep.subr.bf16.mxu0 %v13965_v53 }
 0x22a   :  { %13968 = vmatpush3.bf16.msra.mxu0 %v13965_v53 }
 0x22b   :  { %13970 = vmatprep.subr.bf16.mxu0 %v13969_v43 }
 0x22e   :  { %13972 = vmatpush3.bf16.msra.mxu0 %v13969_v43 }
 0x22f   :  { %13974 = vmatprep.subr.bf16.mxu0 %v13973_v57 }
 0x232   :  { %13976 = vmatpush3.bf16.msra.mxu0 %v13973_v57 }
 0x233   :  { %13978 = vmatprep.subr.bf16.mxu0 %v13977_v15 }
 0x236   :  { %13980 = vmatpush3.bf16.msra.mxu0 %v13977_v15 }
 0x237   :  { %13982 = vmatprep.subr.bf16.mxu0 %v13981_v24 }
 0x23a   :  { %13984 = vmatpush3.bf16.msra.mxu0 %v13981_v24 }
 0x23b   :  { %13986 = vmatprep.subr.bf16.mxu0 %v13985_v51 }
 0x23e   :  { %13988 = vmatpush3.bf16.msra.mxu0 %v13985_v51 }
 0x23f   :  { %13990 = vmatprep.subr.bf16.mxu0 %v15361_v22 }
 0x241   :  { %12712 = vmatmul.mubr.f32.vlgmr.msra.gmra.mrb[2].mxu0 %v15437_v18  ;;  %v14033_v18 = vpack.c.bf16 %v16843_v20, %v16842_v32 }
 0x242   :  { %13992 = vmatpush3.bf16.msra.mxu0 %v15361_v22  ;;  %12746 = vmatprep.mubr.f32.mxu0 %v1637_v4  ;;  %v14025_v4 = vpack.c.bf16 %v1679_v60, %v1672_v2  ;;  %v14041_v2 = vpack.c.bf16 %v1735_v19, %v1728_v25  ;;  %v16846_v60 = vand.u32 4294901760, %v15532_v36 }
 0x243   :  { %13994 = vmatprep.subr.bf16.mxu0 %v15364_v37 }
 0x244   :  { %v14045_v42 = vpack.c.bf16 %v16846_v60, %v16845_v13 }
 0x246   :  { %13996 = vmatpush3.bf16.msra.mxu0 %v15364_v37 }
 0x247   :  { %13998 = vmatprep.subr.bf16.mxu0 %v15375_v31 }
 0x24a   :  { %14000 = vmatpush3.bf16.msra.mxu0 %v15375_v31 }
 0x24b   :  { %14002 = vmatprep.subr.bf16.mxu0 %v15389_v58 }
 0x24e   :  { %14004 = vmatpush3.bf16.msra.mxu0 %v15389_v58 }
 0x24f   :  { %14006 = vmatprep.subr.bf16.mxu0 %v15403_v59 }
 0x251   :  { %v12608_v38 = vpop.f32.mrb[2].mxu1 }
 0x252   :  { %v1517_v7 = vpop.f32.mrb[3].mxu1  ;;  %v15643_v35 = vadd.f32 %v12608_v38, %v11541_v17  ;;  %14008 = vmatpush3.bf16.msra.mxu0 %v15403_v59 }
 0x253   :  { %v15623_v61 = vadd.f32 %v11541_v17, %v1517_v7  ;;  %14010 = vmatprep.subr.bf16.mxu0 %v15428_v26 }
 0x255   :  { %2532 = vrot.lane.b32.xlu1 %v15623_v61, %s14690_s1  ;;  %2538 = vrot.lane.b32.xlu0 %v15623_v61, %s14691_s18 }
 0x256   :  { %14012 = vmatpush3.bf16.msra.mxu0 %v15428_v26 }
 0x257   :  { %14014 = vmatprep.subr.bf16.mxu0 %v15444_v0 }
 0x259   :  { %2544 = vrot.lane.b32.xlu1 %v15623_v61, %s14689_s23  ;;  %2242 = vrot.lane.b32.xlu0 %v15349_v16, %s14690_s1 }
 0x25a   :  { %14016 = vmatpush3.bf16.msra.mxu0 %v15444_v0 }
 0x25b   :  { %14018 = vmatprep.subr.bf16.mxu0 %v15464_v11 }
 0x25d   :  { %2248 = vrot.lane.b32.xlu1 %v15349_v16, %s14691_s18  ;;  %2254 = vrot.lane.b32.xlu0 %v15349_v16, %s14689_s23 }
 0x25e   :  { %14020 = vmatpush3.bf16.msra.mxu0 %v15464_v11 }
 0x25f   :  { %14022 = vmatprep.subr.bf16.mxu0 %v14021_v55 }
 0x261   :  { %2534 = vrot.lane.b32.xlu1 %v15643_v35, %s14690_s1  ;;  %2540 = vrot.lane.b32.xlu0 %v15643_v35, %s14691_s18 }
 0x262   :  { %12747 = vmatmul.mubr.f32.vlgmr.msra.gmra.mrb[2].mxu0 %v1647_v12  ;;  %v14049_v12 = vpack.c.bf16 %v1763_v48, %v1756_v29 }
 0x263   :  { %12781 = vmatprep.mubr.f32.mxu0 %v15372_v21  ;;  %14024 = vmatpush3.bf16.msra.mxu0 %v14021_v55 }
 0x264   :  { %14026 = vmatprep.subr.bf16.mxu0 %v14025_v4 }
 0x265   :  { %2546 = vrot.lane.b32.xlu1 %v15643_v35, %s14689_s23 }
 0x267   :  { %14028 = vmatpush3.bf16.msra.mxu0 %v14025_v4 }
 0x268   :  { %14030 = vmatprep.subr.bf16.mxu0 %v14029_v47 }
 0x26b   :  { %14032 = vmatpush3.bf16.msra.mxu0 %v14029_v47 }
 0x26c   :  { %14034 = vmatprep.subr.bf16.mxu0 %v14033_v18 }
 0x26f   :  { %14036 = vmatpush3.bf16.msra.mxu0 %v14033_v18 }
 0x270   :  { %14038 = vmatprep.subr.bf16.mxu0 %v14037_v30 }
 0x273   :  { %14040 = vmatpush3.bf16.msra.mxu0 %v14037_v30 }
 0x274   :  { %14042 = vmatprep.subr.bf16.mxu0 %v14041_v2 }
 0x277   :  { %14044 = vmatpush3.bf16.msra.mxu0 %v14041_v2 }
 0x278   :  { %14046 = vmatprep.subr.bf16.mxu0 %v14045_v42 }
 0x27b   :  { %14048 = vmatpush3.bf16.msra.mxu0 %v14045_v42 }
 0x27c   :  { %14050 = vmatprep.subr.bf16.mxu0 %v14049_v12 }
 0x27f   :  { %14052 = vmatpush3.bf16.msra.mxu0 %v14049_v12 }
 0x280   :  { %14054 = vmatprep.subr.bf16.mxu0 %v15361_v22 }
 0x282   :  { %12782 = vmatmul.mubr.f32.vlgmr.msra.gmra.mrb[2].mxu0 %v15414_v56 }
 0x283   :  { %14056 = vmatpush3.bf16.msra.mxu0 %v15361_v22  ;;  %12816 = vmatprep.mubr.f32.mxu0 %v15372_v21  ;;  %v2426_v22 = vcombine.low %v15585_v6, %v15588_v40 }
 0x284   :  { %14058 = vmatprep.subr.bf16.mxu0 %v15364_v37 }
 0x285   :  { %v15731_v21 = vrot.slane %v2426_v22, %v15540_v23 }
 0x287   :  { %14060 = vmatpush3.bf16.msra.mxu0 %v15364_v37  ;;  %v2442_v37 = vcombine.low %v15591_v10, %v15594_v14 }
 0x288   :  { %14062 = vmatprep.subr.bf16.mxu0 %v15375_v31 }
 0x28b   :  { %14064 = vmatpush3.bf16.msra.mxu0 %v15375_v31  ;;  %v15734_v31 = vrot.slane %v2442_v37, %v15540_v23 }
 0x28c   :  { %14066 = vmatprep.subr.bf16.mxu0 %v15389_v58 }
 0x28f   :  { %14068 = vmatpush3.bf16.msra.mxu0 %v15389_v58 }
 0x290   :  { %14070 = vmatprep.subr.bf16.mxu0 %v15403_v59 }
 0x293   :  { %14072 = vmatpush3.bf16.msra.mxu0 %v15403_v59 }
 0x294   :  { %14074 = vmatprep.subr.bf16.mxu0 %v15428_v26 }
 0x297   :  { %14076 = vmatpush3.bf16.msra.mxu0 %v15428_v26  ;;  %v2458_v26 = vcombine.low %v15731_v21, %v15734_v31 }
 0x298   :  { %14078 = vmatprep.subr.bf16.mxu0 %v15444_v0 }
 0x29b   :  { %14080 = vmatpush3.bf16.msra.mxu0 %v15444_v0 }
 0x29c   :  { %14082 = vmatprep.subr.bf16.mxu0 %v15464_v11 }
 0x29f   :  { %14084 = vmatpush3.bf16.msra.mxu0 %v15464_v11  ;;  %v3116_v11 = vsel %vm3114_vm1, %v2458_v26, 0 }
 0x2a0   :  { %13059 = vmatprep.subr.mxu0 %v14694_v28 }
 0x2a2   :  { %12817 = vmatmul.mubr.f32.vlgmr.msra.gmra.mrb[2].mxu0 %v15414_v56  ;;  %v15751_v56 = vand.u32 4294901760, %v3116_v11 }
 0x2a3   :  { %13061 = vmatprep.mubr.msk.f32.mxu0 %vm14695_vm0, %v14694_v28 }
 0x2c7   :  { %v2533_v58 = vpop.permute.xlu1 %2532  ;;  %v2539_v59 = vpop.permute.xlu0 %2538 }
 0x2c8   :  { %v2550_v0 = vcombine.low %v15623_v61, %v2539_v59  ;;  %v2551_v19 = vcombine.high %v15623_v61, %v2539_v59 }
 0x2ca   :  { %v2558_v41 = vrot.slane %v2550_v0, %v15538_v8  ;;  %v2565_v49 = vrot.slane %v2551_v19, %v15538_v8 }
 0x2cb   :  { %v2545_v33 = vpop.permute.xlu1 %2544  ;;  %v2243_v27 = vpop.permute.xlu0 %2242 }
 0x2cc   :  { %v2566_v25 = vcombine.low %v2533_v58, %v2545_v33  ;;  %v2567_v44 = vcombine.high %v2533_v58, %v2545_v33  ;;  %v15772_v58 = vsub.f32 %v3116_v11, %v15751_v56 }
 0x2ce   :  { %v2574_v3 = vrot.slane %v2566_v25, %v15538_v8  ;;  %v2581_v45 = vrot.slane %v2567_v44, %v15538_v8 }
 0x2cf   :  { %v2249_v5 = vpop.permute.xlu1 %2248  ;;  %v2255_v36 = vpop.permute.xlu0 %2254 }
 0x2d0   :  { %v2582_v63 = vcombine.low %v2558_v41, %v2574_v3  ;;  %v2583_v62 = vcombine.high %v2558_v41, %v2574_v3  ;;  %v2598_v29 = vcombine.low %v2565_v49, %v2581_v45  ;;  %v2599_v48 = vcombine.high %v2565_v49, %v2581_v45 }
 0x2d1   :  { %v2326_v6 = vcombine.low %v15349_v16, %v2249_v5  ;;  %v2327_v40 = vcombine.high %v15349_v16, %v2249_v5  ;;  %v2342_v10 = vcombine.low %v2243_v27, %v2255_v36  ;;  %v2343_v14 = vcombine.high %v2243_v27, %v2255_v36 }
 0x2d2   :  { %v2590_v9 = vrot.slane %v2582_v63, %v15540_v23  ;;  %v2597_v53 = vrot.slane %v2583_v62, %v15540_v23  ;;  %v2606_v43 = vrot.slane %v2598_v29, %v15540_v23  ;;  %v2613_v17 = vrot.slane %v2599_v48, %v15540_v23 }
 0x2d3   :  { %v2334_v38 = vrot.slane %v2326_v6, %v15538_v8  ;;  %v2341_v7 = vrot.slane %v2327_v40, %v15538_v8  ;;  %v2350_v61 = vrot.slane %v2342_v10, %v15538_v8  ;;  %v2357_v57 = vrot.slane %v2343_v14, %v15538_v8  ;;  %v2535_v15 = vpop.permute.xlu1 %2534  ;;  %v2541_v42 = vpop.permute.xlu0 %2540 }
 0x2d4   :  { %v2686_v16 = vcombine.low %v2590_v9, %v2597_v53  ;;  %v11548_v24 = vcombine.high %v2590_v9, %v2597_v53  ;;  %v2702_v51 = vcombine.low %v2606_v43, %v2613_v17  ;;  %v11549_v55 = vcombine.high %v2606_v43, %v2613_v17 }
 0x2d5   :  { %v2358_v4 = vcombine.low %v2334_v38, %v2350_v61  ;;  %v2359_v34 = vcombine.high %v2334_v38, %v2350_v61  ;;  %v2374_v50 = vcombine.low %v2341_v7, %v2357_v57  ;;  %v2375_v47 = vcombine.high %v2341_v7, %v2357_v57 }
 0x2d6   :  { %v2693_v32 = vrot.slane %v2686_v16, %v15538_v8  ;;  %v2701_v20 = vrot.slane %v11548_v24, %v15538_v8  ;;  %v2709_v18 = vrot.slane %v2702_v51, %v15538_v8  ;;  %v2717_v54 = vrot.slane %v11549_v55, %v15538_v8 }
 0x2d7   :  { %v2366_v30 = vrot.slane %v2358_v4, %v15540_v23  ;;  %v2373_v2 = vrot.slane %v2359_v34, %v15540_v23  ;;  %v2382_v13 = vrot.slane %v2374_v50, %v15540_v23  ;;  %v2389_v60 = vrot.slane %v2375_v47, %v15540_v23  ;;  %v2547_v12 = vpop.permute.xlu1 %2546 }
 0x2d8   :  { %v2719_v22 = vcombine.high %v2693_v32, %v2701_v20  ;;  %v2735_v37 = vcombine.high %v2709_v18, %v2717_v54  ;;  %v2618_v33 = vcombine.low %v15643_v35, %v2541_v42  ;;  %v2619_v27 = vcombine.high %v15643_v35, %v2541_v42 }
 0x2d9   :  { %v2462_v59 = vcombine.low %v2366_v30, %v2373_v2  ;;  %v11546_v26 = vcombine.high %v2366_v30, %v2373_v2  ;;  %v2478_v0 = vcombine.low %v2382_v13, %v2389_v60  ;;  %v11547_v19 = vcombine.high %v2382_v13, %v2389_v60 }
 0x2da   :  { %v2634_v25 = vcombine.low %v2535_v15, %v2547_v12  ;;  %v2635_v44 = vcombine.high %v2535_v15, %v2547_v12  ;;  %v2626_v45 = vrot.slane %v2618_v33, %v15538_v8  ;;  %v2633_v5 = vrot.slane %v2619_v27, %v15538_v8 }
 0x2db   :  { %v15777_v41 = vrot.slane %v2462_v59, %v15538_v8  ;;  %v15780_v49 = vrot.slane %v11546_v26, %v15538_v8  ;;  %v15783_v3 = vrot.slane %v2478_v0, %v15538_v8  ;;  %v15786_v11 = vrot.slane %v11547_v19, %v15538_v8 }
 0x2dc   :  { %v2642_v35 = vrot.slane %v2634_v25, %v15538_v8  ;;  %v2649_v36 = vrot.slane %v2635_v44, %v15538_v8  ;;  %v2718_v63 = vcombine.low %v2693_v32, %v2701_v20  ;;  %v2734_v62 = vcombine.low %v2709_v18, %v2717_v54 }
 0x2dd   :  { %v2495_v29 = vcombine.high %v15777_v41, %v15780_v49  ;;  %v2511_v48 = vcombine.high %v15783_v3, %v15786_v11  ;;  %v3189_v9 = vand.u32 4294901760, %v15772_v58  ;;  %v15804_v57 = vrot.slane %v2719_v22, %v15540_v23 }
 0x2de   :  { %v2650_v6 = vcombine.low %v2626_v45, %v2642_v35  ;;  %v2651_v40 = vcombine.high %v2626_v45, %v2642_v35  ;;  %v2666_v10 = vcombine.low %v2633_v5, %v2649_v36  ;;  %v2667_v14 = vcombine.high %v2633_v5, %v2649_v36 }
 0x2df   :  { %v2726_v7 = vrot.slane %v2718_v63, %v15540_v23  ;;  %v2742_v61 = vrot.slane %v2734_v62, %v15540_v23  ;;  %v15807_v15 = vrot.slane %v2735_v37, %v15540_v23  ;;  %v3190_v13 = vsub.f32 %v15772_v58, %v3189_v9 }
 0x2e0   :  { %v2658_v53 = vrot.slane %v2650_v6, %v15540_v23  ;;  %v2665_v43 = vrot.slane %v2651_v40, %v15540_v23  ;;  %v2674_v17 = vrot.slane %v2666_v10, %v15540_v23  ;;  %v2681_v38 = vrot.slane %v2667_v14, %v15540_v23 }
 0x2e1   :  { %v2750_v4 = vcombine.low %v2726_v7, %v2742_v61  ;;  %v2752_v34 = vcombine.low %v15804_v57, %v15807_v15  ;;  %v2753_v50 = vcombine.high %v15804_v57, %v15807_v15  ;;  %v3191_v12 = vand.u32 4294901760, %v3190_v13 }
 0x2e2   :  { %v2754_v16 = vcombine.low %v2658_v53, %v2665_v43  ;;  %v11550_v24 = vcombine.high %v2658_v53, %v2665_v43  ;;  %v2770_v51 = vcombine.low %v2674_v17, %v2681_v38  ;;  %v11551_v55 = vcombine.high %v2674_v17, %v2681_v38 }
 0x2e3   :  { %v3119_v54 = vsel %vm3114_vm1, %v2750_v4, 0  ;;  %v15833_v37 = vrot.slane %v2495_v29, %v15540_v23  ;;  %v15836_v59 = vrot.slane %v2511_v48, %v15540_v23  ;;  %v2459_v5 = vcombine.high %v15731_v21, %v15734_v31 }
 0x2e4   :  { %v15814_v47 = vrot.slane %v2754_v16, %v15538_v8  ;;  %v15817_v32 = vrot.slane %v11550_v24, %v15538_v8  ;;  %v15820_v20 = vrot.slane %v2770_v51, %v15538_v8  ;;  %v15823_v18 = vrot.slane %v11551_v55, %v15538_v8 }
 0x2e5   :  { %v3122_v60 = vand.u32 4294901760, %v3119_v54  ;;  %v2528_v27 = vcombine.low %v15833_v37, %v15836_v59  ;;  %v2529_v25 = vcombine.high %v15833_v37, %v15836_v59  ;;  %v2751_v35 = vcombine.high %v2726_v7, %v2742_v61 }
 0x2e6   :  { %v2787_v30 = vcombine.high %v15814_v47, %v15817_v32  ;;  %v2803_v2 = vcombine.high %v15820_v20, %v15823_v18  ;;  %v3568_v36 = vsel %vm3114_vm1, %v2459_v5, 0  ;;  %v4472_v55 = vsel %vm3114_vm1, %v2461_v39, 0 }
 0x2e7   :  { %12820 = vmatpush3.xpose.msra.mxu1 %v3122_v60  ;;  %v3199_v42 = vsub.f32 %v3119_v54, %v3122_v60  ;;  %v3571_v63 = vsel %vm3114_vm1, %v2751_v35, 0  ;;  %v4475_v4 = vsel %vm3114_vm1, %v2753_v50, 0  ;;  %v2494_v13 = vcombine.low %v15777_v41, %v15780_v49 }
 0x2e8   :  { %12824 = vmatprep.subr.mxu1 %v14694_v28  ;;  %v15841_v19 = vrot.slane %v2787_v30, %v15540_v23  ;;  %v15844_v33 = vrot.slane %v2803_v2, %v15540_v23  ;;  %v3574_v62 = vand.u32 4294901760, %v3571_v63  ;;  %v4478_v54 = vand.u32 4294901760, %v4475_v4 }
 0x2e9   :  { %v3200_v22 = vand.u32 4294901760, %v3199_v42 }
 0x2ea   :  { %12822 = vmatmul.mubr.f32.vlgmr.msra.gmra.mrb[4].mxu1 %v3191_v12  ;;  %v2820_v44 = vcombine.low %v15841_v19, %v15844_v33  ;;  %v2821_v45 = vcombine.high %v15841_v19, %v15844_v33  ;;  %v3651_v48 = vsub.f32 %v3571_v63, %v3574_v62  ;;  %v4555_v2 = vsub.f32 %v4475_v4, %v4478_v54 }
 0x2eb   :  { %v3201_v26 = vsub.f32 %v3199_v42, %v3200_v22  ;;  %12826 = vmatprep.mubr.msk.f32.mxu1 %vm14695_vm0, %v14694_v28  ;;  %v2802_v12 = vcombine.low %v15820_v20, %v15823_v18 }
 0x2ec   :  { %v3652_v31 = vand.u32 4294901760, %v3651_v48  ;;  %v4556_v46 = vand.u32 4294901760, %v4555_v2 }
 0x2ed   :  { %v3202_v0 = vand.u32 4294901760, %v3201_v26  ;;  %v2810_v5 = vrot.slane %v2802_v12, %v15540_v23 }
 0x2ee   :  { %v3653_v40 = vsub.f32 %v3651_v48, %v3652_v31  ;;  %v4557_v57 = vsub.f32 %v4555_v2, %v4556_v46 }
 0x2ef   :  { %12825 = vmatpush3.xpose.msra.mxu1 %v3202_v0 }
 0x2f0   :  { %12829 = vmatprep.subr.mxu1 %v14694_v28  ;;  %v3654_v14 = vand.u32 4294901760, %v3653_v40  ;;  %v4558_v50 = vand.u32 4294901760, %v4557_v57 }
 0x2f2   :  { %12827 = vmatmul.mubr.f32.vlgmr.msra.gmra.mrb[4].mxu1 %v15751_v56 }
 0x2f3   :  { %12830 = vmatpush3.xpose.msra.mxu1 %v3199_v42  ;;  %12831 = vmatprep.mubr.msk.f32.mxu1 %vm14695_vm0, %v14694_v28  ;;  %v2786_v42 = vcombine.low %v15814_v47, %v15817_v32 }
 0x2f4   :  { %12834 = vmatprep.subr.mxu1 %v14694_v28 }
 0x2f5   :  { %v2794_v0 = vrot.slane %v2786_v42, %v15540_v23 }
 0x2f7   :  { %v2818_v49 = vcombine.low %v2794_v0, %v2810_v5 }
 0x2fa   :  { %12832 = vmatmul.mubr.f32.vlgmr.msra.gmra.mrb[4].mxu1 %v15772_v58  ;;  %v3639_v58 = vand.u32 4294901760, %v3568_v36 }
 0x2fb   :  { %12835 = vmatpush3.xpose.msra.mxu1 %v3122_v60  ;;  %12836 = vmatprep.mubr.msk.f32.mxu1 %vm14695_vm0, %v14694_v28 }
 0x2fc   :  { %12839 = vmatprep.subr.mxu1 %v14694_v28  ;;  %v3640_v29 = vsub.f32 %v3568_v36, %v3639_v58 }
 0x2fe   :  { %v3641_v21 = vand.u32 4294901760, %v3640_v29 }
 0x300   :  { %v3642_v6 = vsub.f32 %v3640_v29, %v3641_v21 }
 0x302   :  { %12837 = vmatmul.mubr.f32.vlgmr.msra.gmra.mrb[4].mxu1 %v3189_v9  ;;  %v3643_v10 = vand.u32 4294901760, %v3642_v6  ;;  %v4023_v9 = vsel %vm3114_vm1, %v2752_v34, 0  ;;  %v4543_v34 = vand.u32 4294901760, %v4472_v55 }
 0x303   :  { %12840 = vmatpush3.xpose.msra.mxu1 %v3200_v22  ;;  %12841 = vmatprep.mubr.msk.f32.mxu1 %vm14695_vm0, %v14694_v28  ;;  %v4026_v43 = vand.u32 4294901760, %v4023_v9  ;;  %v2502_v22 = vrot.slane %v2494_v13, %v15540_v23  ;;  %v6280_v13 = vsel %vm3114_vm1, %v2529_v25, 0 }
 0x304   :  { %12844 = vmatprep.subr.mxu1 %v14694_v28  ;;  %v4544_v30 = vsub.f32 %v4472_v55, %v4543_v34  ;;  %v5831_v55 = vsel %vm3114_vm1, %v2820_v44, 0  ;;  %v6351_v42 = vand.u32 4294901760, %v6280_v13 }
 0x305   :  { %v4103_v38 = vsub.f32 %v4023_v9, %v4026_v43 }
 0x306   :  { %v4545_v52 = vand.u32 4294901760, %v4544_v30 }
 0x307   :  { %v4104_v7 = vand.u32 4294901760, %v4103_v38 }
 0x308   :  { %v4546_v39 = vsub.f32 %v4544_v30, %v4545_v52 }
 0x309   :  { %v4105_v16 = vsub.f32 %v4103_v38, %v4104_v7 }
 0x30a   :  { %12842 = vmatmul.mubr.f32.vlgmr.msra.gmra.mrb[4].mxu1 %v15751_v56  ;;  %v4547_v15 = vand.u32 4294901760, %v4546_v39 }
 0x30b   :  { %12845 = vmatpush3.xpose.msra.mxu1 %v3122_v60  ;;  %12846 = vmatprep.mubr.msk.f32.mxu1 %vm14695_vm0, %v14694_v28  ;;  %v4106_v51 = vand.u32 4294901760, %v4105_v16  ;;  %v2510_v60 = vcombine.low %v15783_v3, %v15786_v11  ;;  %v4927_v11 = vsel %vm3114_vm1, %v2818_v49, 0 }
 0x30c   :  { %12849 = vmatprep.subr.mxu1 %v14694_v28  ;;  %v4930_v32 = vand.u32 4294901760, %v4927_v11 }
 0x30d   :  { %v2518_v26 = vrot.slane %v2510_v60, %v15540_v23  ;;  %v6283_v60 = vsel %vm3114_vm1, %v2821_v45, 0 }
 0x30e   :  { %v5007_v18 = vsub.f32 %v4927_v11, %v4930_v32  ;;  %v6286_v12 = vand.u32 4294901760, %v6283_v60 }
 0x30f   :  { %v2526_v41 = vcombine.low %v2502_v22, %v2518_v26  ;;  %v2527_v40 = vcombine.high %v2502_v22, %v2518_v26  ;;  %v6352_v22 = vsub.f32 %v6280_v13, %v6351_v42 }
 0x310   :  { %v5008_v36 = vand.u32 4294901760, %v5007_v18  ;;  %v6363_v37 = vsub.f32 %v6283_v60, %v6286_v12 }
 0x311   :  { %v4924_v3 = vsel %vm3114_vm1, %v2526_v41, 0  ;;  %v6353_v19 = vand.u32 4294901760, %v6352_v22 }
 0x312   :  { %12847 = vmatmul.mubr.f32.vlgmr.msra.gmra.mrb[4].mxu1 %v15751_v56  ;;  %v4020_v56 = vsel %vm3114_vm1, %v2460_v1, 0  ;;  %v4995_v47 = vand.u32 4294901760, %v4924_v3  ;;  %v6364_v33 = vand.u32 4294901760, %v6363_v37 }
 0x313   :  { %12850 = vmatpush3.xpose.msra.mxu1 %v3574_v62  ;;  %12851 = vmatprep.mubr.msk.f32.mxu1 %vm14695_vm0, %v14694_v28  ;;  %v4091_v53 = vand.u32 4294901760, %v4020_v56  ;;  %v6354_v45 = vsub.f32 %v6352_v22, %v6353_v19 }
 0x314   :  { %12854 = vmatprep.subr.mxu1 %v14694_v28  ;;  %v4996_v20 = vsub.f32 %v4924_v3, %v4995_v47 }
 0x315   :  { %v4092_v17 = vsub.f32 %v4020_v56, %v4091_v53 }
 0x316   :  { %12852 = vmatmul.mubr.f32.vlgmr.msra.gmra.mrb[6].mxu1 %v3643_v10  ;;  %v4997_v35 = vand.u32 4294901760, %v4996_v20  ;;  %v2819_v10 = vcombine.high %v2794_v0, %v2810_v5  ;;  %v6365_v0 = vsub.f32 %v6363_v37, %v6364_v33  ;;  %v6355_v5 = vand.u32 4294901760, %v6354_v45 }
 0x317   :  { %12855 = vmatpush3.xpose.msra.mxu1 %v3654_v14  ;;  %12856 = vmatprep.mubr.msk.f32.mxu1 %vm14695_vm0, %v14694_v28  ;;  %v4093_v1 = vand.u32 4294901760, %v4092_v17  ;;  %v5376_v14 = vsel %vm3114_vm1, %v2527_v40, 0 }
 0x318   :  { %12859 = vmatprep.subr.mxu1 %v14694_v28  ;;  %v4998_v63 = vsub.f32 %v4996_v20, %v4997_v35  ;;  %v5379_v56 = vsel %vm3114_vm1, %v2819_v10, 0  ;;  %v5447_v9 = vand.u32 4294901760, %v5376_v14  ;;  %v6366_v41 = vand.u32 4294901760, %v6365_v0 }
 0x319   :  { %v4094_v61 = vsub.f32 %v4092_v17, %v4093_v1 }
 0x31b   :  { %v4095_v24 = vand.u32 4294901760, %v4094_v61 }
 0x31e   :  { %12857 = vmatmul.mubr.f32.vlgmr.msra.gmra.mrb[6].mxu1 %v3639_v58 }
 0x31f   :  { %12860 = vmatpush3.xpose.msra.mxu1 %v3651_v48  ;;  %12861 = vmatprep.mubr.msk.f32.mxu1 %vm14695_vm0, %v14694_v28  ;;  %v15968_v48 = vld [vmem:[%s16811_s4 + $0x2] ss:$0 sm:$0xff] }
 0x320   :  { %12864 = vmatprep.subr.mxu1 %v14694_v28 }
 0x326   :  { %12862 = vmatmul.mubr.f32.vlgmr.msra.gmra.mrb[6].mxu1 %v3640_v29 }
 0x327   :  { %12865 = vmatpush3.xpose.msra.mxu1 %v3574_v62  ;;  %12866 = vmatprep.mubr.msk.f32.mxu1 %vm14695_vm0, %v14694_v28 }
 0x328   :  { %12869 = vmatprep.subr.mxu1 %v14694_v28 }
 0x32e   :  { %12867 = vmatmul.mubr.f32.vlgmr.msra.gmra.mrb[6].mxu1 %v3641_v21 }
 0x32f   :  { %12870 = vmatpush3.xpose.msra.mxu1 %v3652_v31  ;;  %12871 = vmatprep.mubr.msk.f32.mxu1 %vm14695_vm0, %v14694_v28 }
 0x330   :  { %12874 = vmatprep.subr.mxu1 %v14694_v28 }
 0x336   :  { %12872 = vmatmul.mubr.f32.vlgmr.msra.gmra.mrb[6].mxu1 %v3639_v58 }
 0x337   :  { %12875 = vmatpush3.xpose.msra.mxu1 %v3574_v62  ;;  %12876 = vmatprep.mubr.msk.f32.mxu1 %vm14695_vm0, %v14694_v28  ;;  %v4999_v62 = vand.u32 4294901760, %v4998_v63 }
 0x338   :  { %12879 = vmatprep.subr.mxu1 %v14694_v28 }
 0x33e   :  { %12877 = vmatmul.mubr.f32.vlgmr.msra.gmra.mrb[6].mxu1 %v3639_v58  ;;  %v5009_v58 = vsub.f32 %v5007_v18, %v5008_v36 }
 0x33f   :  { %12880 = vmatpush3.xpose.msra.mxu1 %v4026_v43  ;;  %12881 = vmatprep.mubr.msk.f32.mxu1 %vm14695_vm0, %v14694_v28 }
 0x340   :  { %12884 = vmatprep.subr.mxu1 %v14694_v28  ;;  %v5010_v29 = vand.u32 4294901760, %v5009_v58 }
 0x342   :  { %12882 = vmatmul.mubr.f32.vlgmr.msra.gmra.mrb[8].mxu1 %v4095_v24 }
 0x343   :  { %12885 = vmatpush3.xpose.msra.mxu1 %v4106_v51  ;;  %12886 = vmatprep.mubr.msk.f32.mxu1 %vm14695_vm0, %v14694_v28  ;;  %v5828_v51 = vsel %vm3114_vm1, %v2528_v27, 0 }
 0x344   :  { %12889 = vmatprep.subr.mxu1 %v14694_v28  ;;  %v5899_v4 = vand.u32 4294901760, %v5828_v51 }
 0x34a   :  { %12887 = vmatmul.mubr.f32.vlgmr.msra.gmra.mrb[8].mxu1 %v4091_v53 }
 0x34b   :  { %12890 = vmatpush3.xpose.msra.mxu1 %v4103_v38  ;;  %12891 = vmatprep.mubr.msk.f32.mxu1 %vm14695_vm0, %v14694_v28 }
 0x34c   :  { %12894 = vmatprep.subr.mxu1 %v14694_v28 }
 0x352   :  { %12892 = vmatmul.mubr.f32.vlgmr.msra.gmra.mrb[8].mxu1 %v4092_v17 }
 0x353   :  { %12895 = vmatpush3.xpose.msra.mxu1 %v4026_v43  ;;  %12896 = vmatprep.mubr.msk.f32.mxu1 %vm14695_vm0, %v14694_v28 }
 0x354   :  { %12899 = vmatprep.subr.mxu1 %v14694_v28 }
 0x35a   :  { %12897 = vmatmul.mubr.f32.vlgmr.msra.gmra.mrb[8].mxu1 %v4093_v1 }
 0x35b   :  { %12900 = vmatpush3.xpose.msra.mxu1 %v4104_v7  ;;  %12901 = vmatprep.mubr.msk.f32.mxu1 %vm14695_vm0, %v14694_v28 }
 0x35c   :  { %12904 = vmatprep.subr.mxu1 %v14694_v28 }
 0x362   :  { %12902 = vmatmul.mubr.f32.vlgmr.msra.gmra.mrb[8].mxu1 %v4091_v53 }
 0x363   :  { %12905 = vmatpush3.xpose.msra.mxu1 %v4026_v43  ;;  %12906 = vmatprep.mubr.msk.f32.mxu1 %vm14695_vm0, %v14694_v28  ;;  %v5448_v43 = vsub.f32 %v5376_v14, %v5447_v9 }
 0x364   :  { %12909 = vmatprep.subr.mxu1 %v14694_v28 }
 0x365   :  { %v5449_v38 = vand.u32 4294901760, %v5448_v43 }
 0x367   :  { %v5450_v7 = vsub.f32 %v5448_v43, %v5449_v38 }
 0x369   :  { %v5451_v16 = vand.u32 4294901760, %v5450_v7 }
 0x36a   :  { %12907 = vmatmul.mubr.f32.vlgmr.msra.gmra.mrb[8].mxu1 %v4091_v53  ;;  %v5382_v53 = vand.u32 4294901760, %v5379_v56 }
 0x36b   :  { %12910 = vmatpush3.xpose.msra.mxu1 %v4478_v54  ;;  %12911 = vmatprep.mubr.msk.f32.mxu1 %vm14695_vm0, %v14694_v28 }
 0x36c   :  { %12914 = vmatprep.subr.mxu1 %v14694_v28  ;;  %v5459_v17 = vsub.f32 %v5379_v56, %v5382_v53 }
 0x36e   :  { %12912 = vmatmul.mubr.f32.vlgmr.msra.gmra.mrb[10].mxu1 %v4547_v15  ;;  %v5460_v1 = vand.u32 4294901760, %v5459_v17 }
 0x36f   :  { %12915 = vmatpush3.xpose.msra.mxu1 %v4558_v50  ;;  %12916 = vmatprep.mubr.msk.f32.mxu1 %vm14695_vm0, %v14694_v28 }
 0x370   :  { %12919 = vmatprep.subr.mxu1 %v14694_v28  ;;  %v5461_v61 = vsub.f32 %v5459_v17, %v5460_v1 }
 0x372   :  { %v5462_v24 = vand.u32 4294901760, %v5461_v61 }
 0x375   :  { %v12818_v21 = vpop.f32.mrb[2].mxu0 }
 0x376   :  { %12917 = vmatmul.mubr.f32.vlgmr.msra.gmra.mrb[10].mxu1 %v4543_v34  ;;  %v15971_v31 = vadd.f32 %v12818_v21, %v15968_v48  ;;  %v15973_v6 = vpop.f32.mrb[3].mxu0 }
 0x377   :  { %12920 = vmatpush3.xpose.msra.mxu1 %v4555_v2  ;;  %12921 = vmatprep.mubr.msk.f32.mxu1 %vm14695_vm0, %v14694_v28  ;;  %v16057_v49 = vadd.f32 %v15968_v48, %v15973_v6 }
 0x378   :  { %12924 = vmatprep.subr.mxu1 %v14694_v28 }
 0x37e   :  { %12922 = vmatmul.mubr.f32.vlgmr.msra.gmra.mrb[10].mxu1 %v4544_v30 }
 0x37f   :  { %12925 = vmatpush3.xpose.msra.mxu1 %v4478_v54  ;;  %12926 = vmatprep.mubr.msk.f32.mxu1 %vm14695_vm0, %v14694_v28 }
 0x380   :  { %12929 = vmatprep.subr.mxu1 %v14694_v28 }
 0x386   :  { %12927 = vmatmul.mubr.f32.vlgmr.msra.gmra.mrb[10].mxu1 %v4545_v52 }
 0x387   :  { %12930 = vmatpush3.xpose.msra.mxu1 %v4556_v46  ;;  %12931 = vmatprep.mubr.msk.f32.mxu1 %vm14695_vm0, %v14694_v28 }
 0x388   :  { %12934 = vmatprep.subr.mxu1 %v14694_v28 }
 0x38e   :  { %12932 = vmatmul.mubr.f32.vlgmr.msra.gmra.mrb[10].mxu1 %v4543_v34 }
 0x38f   :  { %12935 = vmatpush3.xpose.msra.mxu1 %v4478_v54  ;;  %12936 = vmatprep.mubr.msk.f32.mxu1 %vm14695_vm0, %v14694_v28  ;;  %v5900_v54 = vsub.f32 %v5828_v51, %v5899_v4 }
 0x390   :  { %12939 = vmatprep.subr.mxu1 %v14694_v28 }
 0x391   :  { %v5901_v44 = vand.u32 4294901760, %v5900_v54 }
 0x393   :  { %v5902_v39 = vsub.f32 %v5900_v54, %v5901_v44 }
 0x395   :  { %v5903_v15 = vand.u32 4294901760, %v5902_v39 }
 0x396   :  { %12937 = vmatmul.mubr.f32.vlgmr.msra.gmra.mrb[10].mxu1 %v4543_v34  ;;  %v5834_v34 = vand.u32 4294901760, %v5831_v55 }
 0x397   :  { %12940 = vmatpush3.xpose.msra.mxu1 %v4930_v32  ;;  %12941 = vmatprep.mubr.msk.f32.mxu1 %vm14695_vm0, %v14694_v28 }
 0x398   :  { %12944 = vmatprep.subr.mxu1 %v14694_v28  ;;  %v5911_v2 = vsub.f32 %v5831_v55, %v5834_v34 }
 0x39a   :  { %12942 = vmatmul.mubr.f32.vlgmr.msra.gmra.mrb[12].mxu1 %v4999_v62  ;;  %v5912_v46 = vand.u32 4294901760, %v5911_v2 }
 0x39b   :  { %12945 = vmatpush3.xpose.msra.mxu1 %v5010_v29  ;;  %12946 = vmatprep.mubr.msk.f32.mxu1 %vm14695_vm0, %v14694_v28 }
 0x39c   :  { %12949 = vmatprep.subr.mxu1 %v14694_v28  ;;  %v5913_v57 = vsub.f32 %v5911_v2, %v5912_v46 }
 0x39e   :  { %v5914_v50 = vand.u32 4294901760, %v5913_v57 }
 0x3a2   :  { %12947 = vmatmul.mubr.f32.vlgmr.msra.gmra.mrb[12].mxu1 %v4995_v47 }
 0x3a3   :  { %12950 = vmatpush3.xpose.msra.mxu1 %v5007_v18  ;;  %12951 = vmatprep.mubr.msk.f32.mxu1 %vm14695_vm0, %v14694_v28 }
 0x3a4   :  { %12954 = vmatprep.subr.mxu1 %v14694_v28 }
 0x3aa   :  { %12952 = vmatmul.mubr.f32.vlgmr.msra.gmra.mrb[12].mxu1 %v4996_v20 }
 0x3ab   :  { %12955 = vmatpush3.xpose.msra.mxu1 %v4930_v32  ;;  %12956 = vmatprep.mubr.msk.f32.mxu1 %vm14695_vm0, %v14694_v28 }
 0x3ac   :  { %12959 = vmatprep.subr.mxu1 %v14694_v28 }
 0x3b2   :  { %12957 = vmatmul.mubr.f32.vlgmr.msra.gmra.mrb[12].mxu1 %v4997_v35 }
 0x3b3   :  { %12960 = vmatpush3.xpose.msra.mxu1 %v5008_v36  ;;  %12961 = vmatprep.mubr.msk.f32.mxu1 %vm14695_vm0, %v14694_v28 }
 0x3b4   :  { %12964 = vmatprep.subr.mxu1 %v14694_v28 }
 0x3ba   :  { %12962 = vmatmul.mubr.f32.vlgmr.msra.gmra.mrb[12].mxu1 %v4995_v47 }
 0x3bb   :  { %12965 = vmatpush3.xpose.msra.mxu1 %v4930_v32  ;;  %12966 = vmatprep.mubr.msk.f32.mxu1 %vm14695_vm0, %v14694_v28 }
 0x3bc   :  { %12969 = vmatprep.subr.mxu1 %v14694_v28 }
 0x3c2   :  { %12967 = vmatmul.mubr.f32.vlgmr.msra.gmra.mrb[12].mxu1 %v4995_v47 }
 0x3c3   :  { %12970 = vmatpush3.xpose.msra.mxu1 %v5382_v53  ;;  %12971 = vmatprep.mubr.msk.f32.mxu1 %vm14695_vm0, %v14694_v28 }
 0x3c4   :  { %12974 = vmatprep.subr.mxu1 %v14694_v28 }
 0x3c6   :  { %12972 = vmatmul.mubr.f32.vlgmr.msra.gmra.mrb[14].mxu1 %v5451_v16 }
 0x3c7   :  { %12975 = vmatpush3.xpose.msra.mxu1 %v5462_v24  ;;  %12976 = vmatprep.mubr.msk.f32.mxu1 %vm14695_vm0, %v14694_v28 }
 0x3c8   :  { %12979 = vmatprep.subr.mxu1 %v14694_v28 }
 0x3ce   :  { %12977 = vmatmul.mubr.f32.vlgmr.msra.gmra.mrb[14].mxu1 %v5447_v9 }
 0x3cf   :  { %12980 = vmatpush3.xpose.msra.mxu1 %v5459_v17  ;;  %12981 = vmatprep.mubr.msk.f32.mxu1 %vm14695_vm0, %v14694_v28 }
 0x3d0   :  { %12984 = vmatprep.subr.mxu1 %v14694_v28 }
 0x3d6   :  { %12982 = vmatmul.mubr.f32.vlgmr.msra.gmra.mrb[14].mxu1 %v5448_v43 }
 0x3d7   :  { %12985 = vmatpush3.xpose.msra.mxu1 %v5382_v53  ;;  %12986 = vmatprep.mubr.msk.f32.mxu1 %vm14695_vm0, %v14694_v28 }
 0x3d8   :  { %12989 = vmatprep.subr.mxu1 %v14694_v28 }
 0x3de   :  { %12987 = vmatmul.mubr.f32.vlgmr.msra.gmra.mrb[14].mxu1 %v5449_v38 }
 0x3df   :  { %12990 = vmatpush3.xpose.msra.mxu1 %v5460_v1  ;;  %12991 = vmatprep.mubr.msk.f32.mxu1 %vm14695_vm0, %v14694_v28 }
 0x3e0   :  { %12994 = vmatprep.subr.mxu1 %v14694_v28 }
 0x3e5   :  { %v16012_v30 = vpop.f32.mrb[4].mxu1 }
 0x3e6   :  { %v12848_v27 = vpop.f32.mrb[5].mxu1  ;;  %12992 = vmatmul.mubr.f32.vlgmr.msra.gmra.mrb[14].mxu1 %v5447_v9  ;;  %v6732_v52 = vsel %vm6731_vm2, %v16012_v30, -inf }
 0x3e7   :  { %12995 = vmatpush3.xpose.msra.mxu1 %v5382_v53  ;;  %6733 = vmax.xlane.f32.xlu0 %v6732_v52 }
 0x3e8   :  { %12996 = vmatprep.mubr.msk.f32.mxu1 %vm14695_vm0, %v14694_v28  ;;  %12999 = vmatprep.subr.mxu1 %v14694_v28 }
 0x3ee   :  { %12997 = vmatmul.mubr.f32.vlgmr.msra.gmra.mrb[14].mxu1 %v5447_v9 }
 0x3ef   :  { %13000 = vmatpush3.xpose.msra.mxu1 %v5834_v34  ;;  %13001 = vmatprep.mubr.msk.f32.mxu1 %vm14695_vm0, %v14694_v28 }
 0x3f0   :  { %13004 = vmatprep.subr.mxu1 %v14694_v28 }
 0x3f2   :  { %13002 = vmatmul.mubr.f32.vlgmr.msra.gmra.mrb[16].mxu1 %v5903_v15 }
 0x3f3   :  { %13005 = vmatpush3.xpose.msra.mxu1 %v5914_v50  ;;  %13006 = vmatprep.mubr.msk.f32.mxu1 %vm14695_vm0, %v14694_v28 }
 0x3f4   :  { %13009 = vmatprep.subr.mxu1 %v14694_v28 }
 0x3fa   :  { %13007 = vmatmul.mubr.f32.vlgmr.msra.gmra.mrb[16].mxu1 %v5899_v4 }
 0x3fb   :  { %13010 = vmatpush3.xpose.msra.mxu1 %v5911_v2  ;;  %13011 = vmatprep.mubr.msk.f32.mxu1 %vm14695_vm0, %v14694_v28 }
 0x3fc   :  { %13014 = vmatprep.subr.mxu1 %v14694_v28 }
 0x402   :  { %13012 = vmatmul.mubr.f32.vlgmr.msra.gmra.mrb[16].mxu1 %v5900_v54 }
 0x403   :  { %13015 = vmatpush3.xpose.msra.mxu1 %v5834_v34  ;;  %13016 = vmatprep.mubr.msk.f32.mxu1 %vm14695_vm0, %v14694_v28 }
 0x404   :  { %13019 = vmatprep.subr.mxu1 %v14694_v28 }
 0x40a   :  { %13017 = vmatmul.mubr.f32.vlgmr.msra.gmra.mrb[16].mxu1 %v5901_v44 }
 0x40b   :  { %13020 = vmatpush3.xpose.msra.mxu1 %v5912_v46  ;;  %13021 = vmatprep.mubr.msk.f32.mxu1 %vm14695_vm0, %v14694_v28 }
 0x40c   :  { %13024 = vmatprep.subr.mxu1 %v14694_v28 }
 0x411   :  { %v16042_v26 = vpop.f32.mrb[6].mxu1 }
 0x412   :  { %v12878_v59 = vpop.f32.mrb[7].mxu1  ;;  %13022 = vmatmul.mubr.f32.vlgmr.msra.gmra.mrb[16].mxu1 %v5899_v4  ;;  %v6735_v25 = vsel %vm6731_vm2, %v16042_v26, -inf }
 0x413   :  { %13025 = vmatpush3.xpose.msra.mxu1 %v5834_v34  ;;  %6736 = vmax.xlane.f32.xlu1 %v6735_v25 }
 0x414   :  { %13026 = vmatprep.mubr.msk.f32.mxu1 %vm14695_vm0, %v14694_v28  ;;  %13029 = vmatprep.subr.mxu1 %v14694_v28 }
 0x41a   :  { %13027 = vmatmul.mubr.f32.vlgmr.msra.gmra.mrb[16].mxu1 %v5899_v4 }
 0x41b   :  { %13030 = vmatpush3.xpose.msra.mxu1 %v6286_v12  ;;  %13031 = vmatprep.mubr.msk.f32.mxu1 %vm14695_vm0, %v14694_v28 }
 0x41c   :  { %13034 = vmatprep.subr.mxu1 %v14694_v28 }
 0x41e   :  { %13032 = vmatmul.mubr.f32.vlgmr.msra.gmra.mrb[18].mxu1 %v6355_v5 }
 0x41f   :  { %13035 = vmatpush3.xpose.msra.mxu1 %v6366_v41  ;;  %13036 = vmatprep.mubr.msk.f32.mxu1 %vm14695_vm0, %v14694_v28 }
 0x420   :  { %13039 = vmatprep.subr.mxu1 %v14694_v28 }
 0x424   :  { %2824 = vrot.lane.b32.xlu1 %v16057_v49, %s14690_s1 }
 0x426   :  { %13037 = vmatmul.mubr.f32.vlgmr.msra.gmra.mrb[18].mxu1 %v6351_v42 }
 0x427   :  { %13040 = vmatpush3.xpose.msra.mxu1 %v6363_v37  ;;  %13041 = vmatprep.mubr.msk.f32.mxu1 %vm14695_vm0, %v14694_v28 }
 0x428   :  { %13044 = vmatprep.subr.mxu1 %v14694_v28 }
 0x42e   :  { %13042 = vmatmul.mubr.f32.vlgmr.msra.gmra.mrb[18].mxu1 %v6352_v22 }
 0x42f   :  { %13045 = vmatpush3.xpose.msra.mxu1 %v6286_v12  ;;  %13046 = vmatprep.mubr.msk.f32.mxu1 %vm14695_vm0, %v14694_v28 }
 0x430   :  { %13049 = vmatprep.subr.mxu1 %v14694_v28 }
 0x436   :  { %13047 = vmatmul.mubr.f32.vlgmr.msra.gmra.mrb[18].mxu1 %v6353_v19 }
 0x437   :  { %13050 = vmatpush3.xpose.msra.mxu1 %v6364_v33  ;;  %13051 = vmatprep.mubr.msk.f32.mxu1 %vm14695_vm0, %v14694_v28 }
 0x438   :  { %13054 = vmatprep.subr.mxu1 %v14694_v28 }
 0x43d   :  { %v4467_v3 = vpop.f32.mrb[8].mxu1 }
 0x43e   :  { %v12908_v11 = vpop.f32.mrb[9].mxu1  ;;  %13052 = vmatmul.mubr.f32.vlgmr.msra.gmra.mrb[18].mxu1 %v6351_v42  ;;  %v6738_v47 = vsel %vm6731_vm2, %v4467_v3, -inf }
 0x43f   :  { %13055 = vmatpush3.xpose.msra.mxu1 %v6286_v12  ;;  %6739 = vmax.xlane.f32.xlu0 %v6738_v47 }
 0x440   :  { %13056 = vmatprep.mubr.msk.f32.mxu1 %vm14695_vm0, %v14694_v28  ;;  %13089 = vmatprep.subr.mxu1 %v14694_v28 }
 0x446   :  { %13057 = vmatmul.mubr.f32.vlgmr.msra.gmra.mrb[18].mxu1 %v6351_v42 }
 0x447   :  { %13091 = vmatprep.mubr.msk.f32.mxu1 %vm14695_vm0, %v14694_v28 }
 0x469   :  { %v4919_v32 = vpop.f32.mrb[10].mxu1 }
 0x46a   :  { %v12938_v20 = vpop.f32.mrb[11].mxu1  ;;  %v6741_v18 = vsel %vm6731_vm2, %v4919_v32, -inf }
 0x46b   :  { %6742 = vmax.xlane.f32.xlu0 %v6741_v18 }
 0x474   :  { %v6734_v35 = vpop.xlane.xlu0 %6733 }
 0x475   :  { %v6756_v36 = vsub.f32 %v16012_v30, %v6734_v35 }
 0x477   :  { %v6764_v63 = vmul.f32 1.442695, %v6756_v36 }
 0x479   :  { %14500 = vpow2.f32 %v6764_v63 }
 0x483   :  { %v14501_v58 = vpop.eup %14500 }
 0x484   :  { %v6780_v62 = vsel %vm6731_vm2, %v14501_v58, 0.0 }
 0x485   :  { %6781 = vadd.xlane.f32.xlu1 %v6780_v62 }
 0x495   :  { %v5371_v29 = vpop.f32.mrb[12].mxu1 }
 0x496   :  { %v12968_v48 = vpop.f32.mrb[13].mxu1  ;;  %v6744_v21 = vsel %vm6731_vm2, %v5371_v29, -inf }
 0x497   :  { %6745 = vmax.xlane.f32.xlu1 %v6744_v21 }
 0x4a0   :  { %v6737_v6 = vpop.xlane.xlu1 %6736 }
 0x4a1   :  { %v6757_v40 = vsub.f32 %v16042_v26, %v6737_v6 }
 0x4a3   :  { %v6766_v10 = vmul.f32 1.442695, %v6757_v40 }
 0x4a4   :  { %v2825_v52 = vpop.permute.xlu1 %2824 }
 0x4a5   :  { %14502 = vpow2.f32 %v6766_v10 }
 0x4a8   :  { %2836 = vrot.lane.b32.xlu1 %v16057_v49, %s14689_s23 }
 0x4af   :  { %v14503_v14 = vpop.eup %14502 }
 0x4b0   :  { %v6783_v56 = vsel %vm6731_vm2, %v14503_v14, 0.0 }
 0x4b1   :  { %6784 = vadd.xlane.f32.xlu0 %v6783_v56 }
 0x4c1   :  { %v5823_v9 = vpop.f32.mrb[14].mxu1 }
 0x4c2   :  { %v12998_v53 = vpop.f32.mrb[15].mxu1  ;;  %v6747_v43 = vsel %vm6731_vm2, %v5823_v9, -inf }
 0x4c3   :  { %6748 = vmax.xlane.f32.xlu0 %v6747_v43 }
 0x4cc   :  { %v6740_v7 = vpop.xlane.xlu0 %6739 }
 0x4cd   :  { %v6758_v4 = vsub.f32 %v4467_v3, %v6740_v7 }
 0x4cf   :  { %v6768_v34 = vmul.f32 1.442695, %v6758_v4 }
 0x4d9   :  { %2830 = vrot.lane.b32.xlu0 %v16057_v49, %s14691_s18 }
 0x4ed   :  { %v16087_v17 = vpop.f32.mrb[16].mxu1 }
 0x4ee   :  { %v13028_v38 = vpop.f32.mrb[17].mxu1  ;;  %v6750_v1 = vsel %vm6731_vm2, %v16087_v17, -inf }
 0x4ef   :  { %6751 = vmax.xlane.f32.xlu1 %v6750_v1 }
 0x4f8   :  { %v6743_v61 = vpop.xlane.xlu0 %6742 }
 0x4f9   :  { %v6759_v16 = vsub.f32 %v4919_v32, %v6743_v61 }
 0x4fb   :  { %v6770_v24 = vmul.f32 1.442695, %v6759_v16 }
 0x4fd   :  { %14504 = vpow2.f32 %v6770_v24 }
 0x4fe   :  { %14506 = vpow2.f32 %v6768_v34 }
 0x507   :  { %v16091_v51 = vpop.eup %14504 }
 0x508   :  { %v6789_v55 = vsel %vm6731_vm2, %v16091_v51, 0.0  ;;  %v16101_v27 = vpop.eup %14506 }
 0x509   :  { %6790 = vadd.xlane.f32.xlu1 %v6789_v55  ;;  %v6786_v44 = vsel %vm6731_vm2, %v16101_v27, 0.0 }
 0x512   :  { %v6782_v46 = vpop.xlane.xlu1 %6781 }
 0x519   :  { %v16095_v54 = vpop.f32.mrb[18].mxu1 }
 0x51a   :  { %v13058_v30 = vpop.f32.mrb[19].mxu1  ;;  %2832 = vrot.lane.b32.xlu1 %v15971_v31, %s14691_s18  ;;  %v6753_v2 = vsel %vm6731_vm2, %v16095_v54, -inf }
 0x51b   :  { %6754 = vmax.xlane.f32.xlu0 %v6753_v2 }
 0x51f   :  { %6787 = vadd.xlane.f32.xlu0 %v6786_v44 }
 0x524   :  { %v6746_v39 = vpop.xlane.xlu1 %6745 }
 0x525   :  { %v6760_v57 = vsub.f32 %v5371_v29, %v6746_v39 }
 0x527   :  { %v6772_v15 = vmul.f32 1.442695, %v6760_v57 }
 0x528   :  { %v2837_v26 = vpop.permute.xlu1 %2836 }
 0x529   :  { %14508 = vpow2.f32 %v6772_v15  ;;  %v2858_v19 = vcombine.low %v2825_v52, %v2837_v26  ;;  %v2859_v33 = vcombine.high %v2825_v52, %v2837_v26 }
 0x52a   :  { %14510 = vrcp.f32 %v6782_v46 }
 0x52b   :  { %v2866_v47 = vrot.slane %v2858_v19, %v15538_v8  ;;  %v2873_v32 = vrot.slane %v2859_v33, %v15538_v8 }
 0x533   :  { %v16105_v50 = vpop.eup %14508 }
 0x534   :  { %v6792_v13 = vsel %vm6731_vm2, %v16105_v50, 0.0  ;;  %v14511_v42 = vpop.eup %14510 }
 0x535   :  { %6793 = vadd.xlane.f32.xlu0 %v6792_v13  ;;  %v6805_v22 = vmul.f32 %v14511_v42, %v14501_v58 }
 0x537   :  { %v6821_v5 = vsel %vm6731_vm2, %v6805_v22, 0 }
 0x538   :  { %v16119_v35 = vand.u32 4294901760, %v6821_v5 }
 0x53a   :  { %v16128_v40 = vsub.f32 %v6821_v5, %v16119_v35 }
 0x53c   :  { %v6891_v24 = vand.u32 4294901760, %v16128_v40 }
 0x53e   :  { %v6785_v60 = vpop.xlane.xlu0 %6784  ;;  %v6892_v52 = vsub.f32 %v16128_v40, %v6891_v24 }
 0x53f   :  { %14512 = vrcp.f32 %v6785_v60 }
 0x540   :  { %v6893_v13 = vand.u32 4294901760, %v6892_v52 }
 0x549   :  { %v14513_v12 = vpop.eup %14512 }
 0x54a   :  { %v6807_v59 = vmul.f32 %v14513_v12, %v14503_v14 }
 0x54b   :  { %2826 = vrot.lane.b32.xlu0 %v15971_v31, %s14690_s1 }
 0x54c   :  { %v7270_v11 = vsel %vm6731_vm2, %v6807_v59, 0 }
 0x54d   :  { %v16121_v36 = vand.u32 4294901760, %v7270_v11 }
 0x54f   :  { %v16131_v10 = vsub.f32 %v7270_v11, %v16121_v36 }
 0x550   :  { %v6749_v37 = vpop.xlane.xlu0 %6748 }
 0x551   :  { %v6761_v25 = vsub.f32 %v5823_v9, %v6749_v37  ;;  %v7340_v55 = vand.u32 4294901760, %v16131_v10 }
 0x553   :  { %v6774_v45 = vmul.f32 1.442695, %v6761_v25  ;;  %v7341_v44 = vsub.f32 %v16131_v10, %v7340_v55 }
 0x554   :  { %v2831_v0 = vpop.permute.xlu0 %2830 }
 0x555   :  { %14514 = vpow2.f32 %v6774_v45  ;;  %v2842_v41 = vcombine.low %v16057_v49, %v2831_v0  ;;  %v2843_v3 = vcombine.high %v16057_v49, %v2831_v0  ;;  %v7342_v60 = vand.u32 4294901760, %v7341_v44 }
 0x557   :  { %v2850_v20 = vrot.slane %v2842_v41, %v15538_v8  ;;  %v2857_v18 = vrot.slane %v2843_v3, %v15538_v8 }
 0x559   :  { %v2874_v63 = vcombine.low %v2850_v20, %v2866_v47  ;;  %v2875_v58 = vcombine.high %v2850_v20, %v2866_v47  ;;  %v2890_v62 = vcombine.low %v2857_v18, %v2873_v32  ;;  %v2891_v29 = vcombine.high %v2857_v18, %v2873_v32 }
 0x55b   :  { %v2882_v49 = vrot.slane %v2874_v63, %v15540_v23  ;;  %v2889_v48 = vrot.slane %v2875_v58, %v15540_v23  ;;  %v2898_v21 = vrot.slane %v2890_v62, %v15540_v23  ;;  %v2905_v6 = vrot.slane %v2891_v29, %v15540_v23 }
 0x55d   :  { %v2978_v14 = vcombine.low %v2882_v49, %v2889_v48  ;;  %v11552_v56 = vcombine.high %v2882_v49, %v2889_v48  ;;  %v2994_v9 = vcombine.low %v2898_v21, %v2905_v6  ;;  %v11553_v53 = vcombine.high %v2898_v21, %v2905_v6 }
 0x55f   :  { %v16133_v43 = vpop.eup %14514  ;;  %v16136_v38 = vrot.slane %v2978_v14, %v15538_v8  ;;  %v16139_v1 = vrot.slane %v11552_v56, %v15538_v8  ;;  %v16142_v7 = vrot.slane %v2994_v9, %v15538_v8  ;;  %v16145_v61 = vrot.slane %v11553_v53, %v15538_v8 }
 0x560   :  { %v6795_v16 = vsel %vm6731_vm2, %v16133_v43, 0.0 }
 0x561   :  { %6796 = vadd.xlane.f32.xlu1 %v6795_v16  ;;  %v3010_v4 = vcombine.low %v16136_v38, %v16139_v1  ;;  %v3026_v34 = vcombine.low %v16142_v7, %v16145_v61  ;;  %v3027_v5 = vcombine.high %v16142_v7, %v16145_v61 }
 0x563   :  { %v3018_v30 = vrot.slane %v3010_v4, %v15540_v23  ;;  %v3034_v2 = vrot.slane %v3026_v34, %v15540_v23  ;;  %v3041_v3 = vrot.slane %v3027_v5, %v15540_v23 }
 0x565   :  { %v3042_v46 = vcombine.low %v3018_v30, %v3034_v2  ;;  %v3043_v39 = vcombine.high %v3018_v30, %v3034_v2 }
 0x567   :  { %v6824_v57 = vand.u32 4294901760, %v3042_v46  ;;  %v7273_v15 = vand.u32 4294901760, %v3043_v39 }
 0x569   :  { %13060 = vmatpush3.msra.mxu0 %v6824_v57  ;;  %v6901_v42 = vsub.f32 %v3042_v46, %v6824_v57  ;;  %13090 = vmatpush3.msra.mxu1 %v7273_v15  ;;  %v7350_v12 = vsub.f32 %v3043_v39, %v7273_v15 }
 0x56a   :  { %13062 = vmatmul.mubr.f32.vlgmr.msra.gmra.mrb[4].mxu0 %v6893_v13  ;;  %13092 = vmatmul.mubr.f32.vlgmr.msra.gmra.mrb[20].mxu1 %v7342_v60 }
 0x56b   :  { %13064 = vmatprep.subr.mxu0 %v14694_v28  ;;  %13094 = vmatprep.subr.mxu1 %v14694_v28  ;;  %v6902_v22 = vand.u32 4294901760, %v6901_v42  ;;  %v7351_v26 = vand.u32 4294901760, %v7350_v12 }
 0x56c   :  { %13066 = vmatprep.mubr.msk.f32.mxu0 %vm14695_vm0, %v14694_v28  ;;  %13096 = vmatprep.mubr.msk.f32.mxu1 %vm14695_vm0, %v14694_v28 }
 0x56d   :  { %v6903_v37 = vsub.f32 %v6901_v42, %v6902_v22  ;;  %v7352_v59 = vsub.f32 %v7350_v12, %v7351_v26 }
 0x56f   :  { %v6904_v25 = vand.u32 4294901760, %v6903_v37  ;;  %v7353_v19 = vand.u32 4294901760, %v7352_v59 }
 0x571   :  { %13065 = vmatpush3.msra.mxu0 %v6904_v25  ;;  %13095 = vmatpush3.msra.mxu1 %v7353_v19 }
 0x572   :  { %2838 = vrot.lane.b32.xlu1 %v15971_v31, %s14689_s23  ;;  %13067 = vmatmul.mubr.f32.vlgmr.msra.gmra.mrb[4].mxu0 %v16119_v35 }
 0x573   :  { %13069 = vmatprep.subr.mxu0 %v14694_v28  ;;  %13097 = vmatmul.mubr.f32.vlgmr.msra.gmra.mrb[20].mxu1 %v16121_v36 }
 0x574   :  { %13099 = vmatprep.subr.mxu1 %v14694_v28  ;;  %13070 = vmatpush3.msra.mxu0 %v6901_v42 }
 0x575   :  { %13100 = vmatpush3.msra.mxu1 %v7350_v12  ;;  %13071 = vmatprep.mubr.msk.f32.mxu0 %vm14695_vm0, %v14694_v28 }
 0x576   :  { %13074 = vmatprep.subr.mxu0 %v14694_v28  ;;  %13101 = vmatprep.mubr.msk.f32.mxu1 %vm14695_vm0, %v14694_v28 }
 0x577   :  { %13104 = vmatprep.subr.mxu1 %v14694_v28 }
 0x57a   :  { %13072 = vmatmul.mubr.f32.vlgmr.msra.gmra.mrb[4].mxu0 %v16128_v40 }
 0x57b   :  { %13075 = vmatpush3.msra.mxu0 %v6824_v57  ;;  %13102 = vmatmul.mubr.f32.vlgmr.msra.gmra.mrb[20].mxu1 %v16131_v10 }
 0x57c   :  { %13105 = vmatpush3.msra.mxu1 %v7273_v15  ;;  %v6752_v33 = vpop.xlane.xlu1 %6751  ;;  %13076 = vmatprep.mubr.msk.f32.mxu0 %vm14695_vm0, %v14694_v28 }
 0x57d   :  { %v6762_v45 = vsub.f32 %v16087_v17, %v6752_v33  ;;  %13079 = vmatprep.subr.mxu0 %v14694_v28  ;;  %13106 = vmatprep.mubr.msk.f32.mxu1 %vm14695_vm0, %v14694_v28  ;;  %v3011_v17 = vcombine.high %v16136_v38, %v16139_v1 }
 0x57e   :  { %13109 = vmatprep.subr.mxu1 %v14694_v28 }
 0x57f   :  { %v6776_v0 = vmul.f32 1.442695, %v6762_v45  ;;  %v3025_v41 = vrot.slane %v3011_v17, %v15540_v23 }
 0x581   :  { %14516 = vpow2.f32 %v6776_v0  ;;  %v3044_v32 = vcombine.low %v3025_v41, %v3041_v3  ;;  %v3045_v20 = vcombine.high %v3025_v41, %v3041_v3 }
 0x582   :  { %13077 = vmatmul.mubr.f32.vlgmr.msra.gmra.mrb[4].mxu0 %v6891_v24 }
 0x583   :  { %13080 = vmatpush3.msra.mxu0 %v6902_v22  ;;  %13107 = vmatmul.mubr.f32.vlgmr.msra.gmra.mrb[20].mxu1 %v7340_v55  ;;  %v16210_v18 = vand.u32 4294901760, %v3044_v32  ;;  %v16213_v63 = vand.u32 4294901760, %v3045_v20 }
 0x584   :  { %13110 = vmatpush3.msra.mxu1 %v7351_v26  ;;  %13081 = vmatprep.mubr.msk.f32.mxu0 %vm14695_vm0, %v14694_v28 }
 0x585   :  { %13084 = vmatprep.subr.mxu0 %v14694_v28  ;;  %13111 = vmatprep.mubr.msk.f32.mxu1 %vm14695_vm0, %v14694_v28  ;;  %v8248_v62 = vsub.f32 %v3045_v20, %v16213_v63  ;;  %v7799_v61 = vsub.f32 %v3044_v32, %v16210_v18 }
 0x586   :  { %13114 = vmatprep.subr.mxu1 %v14694_v28 }
 0x587   :  { %v8249_v48 = vand.u32 4294901760, %v8248_v62  ;;  %v7800_v4 = vand.u32 4294901760, %v7799_v61 }
 0x589   :  { %v8250_v14 = vsub.f32 %v8248_v62, %v8249_v48  ;;  %v7801_v2 = vsub.f32 %v7799_v61, %v7800_v4 }
 0x58a   :  { %13082 = vmatmul.mubr.f32.vlgmr.msra.gmra.mrb[4].mxu0 %v16119_v35 }
 0x58b   :  { %v16199_v11 = vpop.eup %14516  ;;  %13085 = vmatpush3.msra.mxu0 %v6824_v57  ;;  %13112 = vmatmul.mubr.f32.vlgmr.msra.gmra.mrb[20].mxu1 %v16121_v36  ;;  %v8251_v1 = vand.u32 4294901760, %v8250_v14  ;;  %v7802_v44 = vand.u32 4294901760, %v7801_v2 }
 0x58c   :  { %13115 = vmatpush3.msra.mxu1 %v7273_v15  ;;  %v6798_v47 = vsel %vm6731_vm2, %v16199_v11, 0.0  ;;  %13086 = vmatprep.mubr.msk.f32.mxu0 %vm14695_vm0, %v14694_v28 }
 0x58d   :  { %6799 = vadd.xlane.f32.xlu0 %v6798_v47  ;;  %13116 = vmatprep.mubr.msk.f32.mxu1 %vm14695_vm0, %v14694_v28 }
 0x58e   :  { %13119 = vmatprep.subr.mxu0 %v14694_v28  ;;  %13149 = vmatprep.subr.mxu1 %v14694_v28 }
 0x592   :  { %13087 = vmatmul.mubr.f32.vlgmr.msra.gmra.mrb[4].mxu0 %v16119_v35 }
 0x593   :  { %13117 = vmatmul.mubr.f32.vlgmr.msra.gmra.mrb[20].mxu1 %v16121_v36  ;;  %13120 = vmatpush3.msra.mxu0 %v16210_v18 }
 0x594   :  { %13150 = vmatpush3.msra.mxu1 %v16213_v63  ;;  %13151 = vmatprep.mubr.msk.f32.mxu1 %vm14695_vm0, %v14694_v28 }
 0x595   :  { %13154 = vmatprep.subr.mxu1 %v14694_v28  ;;  %13121 = vmatprep.mubr.msk.f32.mxu0 %vm14695_vm0, %v14694_v28 }
 0x596   :  { %v6791_v58 = vpop.xlane.xlu1 %6790  ;;  %13124 = vmatprep.subr.mxu0 %v14694_v28 }
 0x597   :  { %14518 = vrcp.f32 %v6791_v58 }
 0x59a   :  { %v2833_v39 = vpop.permute.xlu1 %2832 }
 0x59b   :  { %v2910_v60 = vcombine.low %v15971_v31, %v2833_v39  ;;  %v2911_v42 = vcombine.high %v15971_v31, %v2833_v39 }
 0x59d   :  { %v2918_v25 = vrot.slane %v2910_v60, %v15538_v8  ;;  %v2925_v19 = vrot.slane %v2911_v42, %v15538_v8 }
 0x5a1   :  { %v14519_v35 = vpop.eup %14518 }
 0x5a2   :  { %v6811_v36 = vmul.f32 %v14519_v35, %v16091_v51 }
 0x5a4   :  { %v8168_v29 = vsel %vm6731_vm2, %v6811_v36, 0 }
 0x5a5   :  { %v8236_v49 = vand.u32 4294901760, %v8168_v29 }
 0x5a7   :  { %v8237_v21 = vsub.f32 %v8168_v29, %v8236_v49 }
 0x5a8   :  { %v6755_v6 = vpop.xlane.xlu0 %6754 }
 0x5a9   :  { %v6763_v40 = vsub.f32 %v16095_v54, %v6755_v6  ;;  %v8238_v10 = vand.u32 4294901760, %v8237_v21 }
 0x5ab   :  { %v6778_v56 = vmul.f32 1.442695, %v6763_v40  ;;  %v8239_v9 = vsub.f32 %v8237_v21, %v8238_v10 }
 0x5ac   :  { %v6788_v53 = vpop.xlane.xlu0 %6787 }
 0x5ad   :  { %14520 = vpow2.f32 %v6778_v56  ;;  %v8240_v38 = vand.u32 4294901760, %v8239_v9 }
 0x5ae   :  { %14522 = vrcp.f32 %v6788_v53 }
 0x5af   :  { %13152 = vmatmul.mubr.f32.vlgmr.msra.gmra.mrb[22].mxu1 %v8240_v38 }
 0x5b0   :  { %13155 = vmatpush3.msra.mxu1 %v8251_v1  ;;  %13156 = vmatprep.mubr.msk.f32.mxu1 %vm14695_vm0, %v14694_v28 }
 0x5b1   :  { %13159 = vmatprep.subr.mxu1 %v14694_v28 }
 0x5b7   :  { %v16231_v51 = vpop.eup %14520  ;;  %13157 = vmatmul.mubr.f32.vlgmr.msra.gmra.mrb[22].mxu1 %v8236_v49 }
 0x5b8   :  { %v14523_v54 = vpop.eup %14522  ;;  %13160 = vmatpush3.msra.mxu1 %v8248_v62  ;;  %v6801_v7 = vsel %vm6731_vm2, %v16231_v51, 0.0  ;;  %13161 = vmatprep.mubr.msk.f32.mxu1 %vm14695_vm0, %v14694_v28 }
 0x5b9   :  { %v6809_v16 = vmul.f32 %v14523_v54, %v16101_v27  ;;  %6802 = vadd.xlane.f32.xlu1 %v6801_v7  ;;  %13164 = vmatprep.subr.mxu1 %v14694_v28 }
 0x5bb   :  { %v7719_v24 = vsel %vm6731_vm2, %v6809_v16, 0 }
 0x5bc   :  { %v7787_v55 = vand.u32 4294901760, %v7719_v24 }
 0x5be   :  { %v7788_v34 = vsub.f32 %v7719_v24, %v7787_v55 }
 0x5bf   :  { %13162 = vmatmul.mubr.f32.vlgmr.msra.gmra.mrb[22].mxu1 %v8237_v21 }
 0x5c0   :  { %13165 = vmatpush3.msra.mxu1 %v16213_v63  ;;  %v7789_v30 = vand.u32 4294901760, %v7788_v34  ;;  %13166 = vmatprep.mubr.msk.f32.mxu1 %vm14695_vm0, %v14694_v28 }
 0x5c1   :  { %13169 = vmatprep.subr.mxu1 %v14694_v28 }
 0x5c2   :  { %v7790_v52 = vsub.f32 %v7788_v34, %v7789_v30  ;;  %v6794_v46 = vpop.xlane.xlu0 %6793 }
 0x5c3   :  { %14524 = vrcp.f32 %v6794_v46 }
 0x5c4   :  { %v7791_v27 = vand.u32 4294901760, %v7790_v52 }
 0x5c6   :  { %13122 = vmatmul.mubr.f32.vlgmr.msra.gmra.mrb[6].mxu0 %v7791_v27  ;;  %v2827_v12 = vpop.permute.xlu0 %2826 }
 0x5c7   :  { %13125 = vmatpush3.msra.mxu0 %v7802_v44  ;;  %13167 = vmatmul.mubr.f32.vlgmr.msra.gmra.mrb[22].mxu1 %v8238_v10 }
 0x5c8   :  { %13170 = vmatpush3.msra.mxu1 %v8249_v48  ;;  %13126 = vmatprep.mubr.msk.f32.mxu0 %vm14695_vm0, %v14694_v28 }
 0x5c9   :  { %13129 = vmatprep.subr.mxu0 %v14694_v28  ;;  %13171 = vmatprep.mubr.msk.f32.mxu1 %vm14695_vm0, %v14694_v28 }
 0x5ca   :  { %13174 = vmatprep.subr.mxu1 %v14694_v28 }
 0x5cd   :  { %v14525_v57 = vpop.eup %14524 }
 0x5ce   :  { %13127 = vmatmul.mubr.f32.vlgmr.msra.gmra.mrb[6].mxu0 %v7787_v55  ;;  %v6813_v13 = vmul.f32 %v14525_v57, %v16105_v50 }
 0x5cf   :  { %13130 = vmatpush3.msra.mxu0 %v7799_v61  ;;  %13172 = vmatmul.mubr.f32.vlgmr.msra.gmra.mrb[22].mxu1 %v8236_v49 }
 0x5d0   :  { %13175 = vmatpush3.msra.mxu1 %v16213_v63  ;;  %13131 = vmatprep.mubr.msk.f32.mxu0 %vm14695_vm0, %v14694_v28  ;;  %v8617_v59 = vsel %vm6731_vm2, %v6813_v13, 0 }
 0x5d1   :  { %13134 = vmatprep.subr.mxu0 %v14694_v28  ;;  %13176 = vmatprep.mubr.msk.f32.mxu1 %vm14695_vm0, %v14694_v28  ;;  %v16281_v45 = vand.u32 4294901760, %v8617_v59 }
 0x5d2   :  { %13209 = vmatprep.subr.mxu1 %v14694_v28 }
 0x5d3   :  { %v16289_v63 = vsub.f32 %v8617_v59, %v16281_v45 }
 0x5d5   :  { %v8687_v40 = vand.u32 4294901760, %v16289_v63 }
 0x5d6   :  { %13132 = vmatmul.mubr.f32.vlgmr.msra.gmra.mrb[6].mxu0 %v7788_v34 }
 0x5d7   :  { %13135 = vmatpush3.msra.mxu0 %v16210_v18  ;;  %13177 = vmatmul.mubr.f32.vlgmr.msra.gmra.mrb[22].mxu1 %v8236_v49  ;;  %v8688_v38 = vsub.f32 %v16289_v63, %v8687_v40 }
 0x5d8   :  { %13136 = vmatprep.mubr.msk.f32.mxu0 %vm14695_vm0, %v14694_v28  ;;  %13139 = vmatprep.subr.mxu0 %v14694_v28 }
 0x5d9   :  { %13211 = vmatprep.mubr.msk.f32.mxu1 %vm14695_vm0, %v14694_v28 }
 0x5de   :  { %13137 = vmatmul.mubr.f32.vlgmr.msra.gmra.mrb[6].mxu0 %v7789_v30 }
 0x5df   :  { %13140 = vmatpush3.msra.mxu0 %v7800_v4  ;;  %13141 = vmatprep.mubr.msk.f32.mxu0 %vm14695_vm0, %v14694_v28 }
 0x5e0   :  { %13144 = vmatprep.subr.mxu0 %v14694_v28 }
 0x5e6   :  { %13142 = vmatmul.mubr.f32.vlgmr.msra.gmra.mrb[6].mxu0 %v7787_v55 }
 0x5e7   :  { %13145 = vmatpush3.msra.mxu0 %v16210_v18  ;;  %13146 = vmatprep.mubr.msk.f32.mxu0 %vm14695_vm0, %v14694_v28 }
 0x5e8   :  { %13179 = vmatprep.subr.mxu0 %v14694_v28 }
 0x5ee   :  { %13147 = vmatmul.mubr.f32.vlgmr.msra.gmra.mrb[6].mxu0 %v7787_v55  ;;  %v6797_v15 = vpop.xlane.xlu1 %6796  ;;  %v8689_v55 = vand.u32 4294901760, %v8688_v38 }
 0x5ef   :  { %14526 = vrcp.f32 %v6797_v15  ;;  %13181 = vmatprep.mubr.msk.f32.mxu0 %vm14695_vm0, %v14694_v28 }
 0x5f2   :  { %v2839_v22 = vpop.permute.xlu1 %2838 }
 0x5f3   :  { %v2926_v26 = vcombine.low %v2827_v12, %v2839_v22  ;;  %v2927_v37 = vcombine.high %v2827_v12, %v2839_v22 }
 0x5f5   :  { %v2934_v50 = vrot.slane %v2926_v26, %v15538_v8  ;;  %v2941_v33 = vrot.slane %v2927_v37, %v15538_v8 }
 0x5f7   :  { %v2942_v0 = vcombine.low %v2918_v25, %v2934_v50  ;;  %v2943_v17 = vcombine.high %v2918_v25, %v2934_v50  ;;  %v2958_v5 = vcombine.low %v2925_v19, %v2941_v33  ;;  %v2959_v31 = vcombine.high %v2925_v19, %v2941_v33 }
 0x5f9   :  { %v14527_v41 = vpop.eup %14526  ;;  %v2950_v3 = vrot.slane %v2942_v0, %v15540_v23  ;;  %v2957_v47 = vrot.slane %v2943_v17, %v15540_v23  ;;  %v2966_v32 = vrot.slane %v2958_v5, %v15540_v23  ;;  %v2973_v20 = vrot.slane %v2959_v31, %v15540_v23 }
 0x5fa   :  { %v6815_v18 = vmul.f32 %v14527_v41, %v16133_v43 }
 0x5fb   :  { %v3046_v58 = vcombine.low %v2950_v3, %v2957_v47  ;;  %v11554_v35 = vcombine.high %v2950_v3, %v2957_v47  ;;  %v3062_v62 = vcombine.low %v2966_v32, %v2973_v20  ;;  %v11555_v36 = vcombine.high %v2966_v32, %v2973_v20 }
 0x5fc   :  { %v9066_v29 = vsel %vm6731_vm2, %v6815_v18, 0 }
 0x5fd   :  { %v3053_v49 = vrot.slane %v3046_v58, %v15538_v8  ;;  %v3061_v48 = vrot.slane %v11554_v35, %v15538_v8  ;;  %v3069_v21 = vrot.slane %v3062_v62, %v15538_v8  ;;  %v3077_v6 = vrot.slane %v11555_v36, %v15538_v8 }
 0x5fe   :  { %v16297_v43 = vand.u32 4294901760, %v9066_v29 }
 0x5ff   :  { %v3078_v10 = vcombine.low %v3053_v49, %v3061_v48  ;;  %v3094_v14 = vcombine.low %v3069_v21, %v3077_v6  ;;  %v3079_v57 = vcombine.high %v3053_v49, %v3061_v48  ;;  %v3095_v15 = vcombine.high %v3069_v21, %v3077_v6 }
 0x600   :  { %v9135_v56 = vsub.f32 %v9066_v29, %v16297_v43 }
 0x601   :  { %v3086_v9 = vrot.slane %v3078_v10, %v15540_v23  ;;  %v3102_v53 = vrot.slane %v3094_v14, %v15540_v23  ;;  %v3093_v60 = vrot.slane %v3079_v57, %v15540_v23  ;;  %v3109_v42 = vrot.slane %v3095_v15, %v15540_v23 }
 0x602   :  { %v9136_v1 = vand.u32 4294901760, %v9135_v56 }
 0x603   :  { %v3110_v54 = vcombine.low %v3086_v9, %v3102_v53  ;;  %v3111_v7 = vcombine.high %v3086_v9, %v3102_v53  ;;  %v3112_v12 = vcombine.low %v3093_v60, %v3109_v42  ;;  %v3113_v33 = vcombine.high %v3093_v60, %v3109_v42 }
 0x604   :  { %v9137_v61 = vsub.f32 %v9135_v56, %v9136_v1 }
 0x605   :  { %v8620_v16 = vand.u32 4294901760, %v3110_v54  ;;  %v9069_v24 = vand.u32 4294901760, %v3111_v7  ;;  %v9518_v22 = vand.u32 4294901760, %v3112_v12  ;;  %v16345_v31 = vand.u32 4294901760, %v3113_v33 }
 0x606   :  { %v9138_v4 = vand.u32 4294901760, %v9137_v61 }
 0x607   :  { %13180 = vmatpush3.msra.mxu0 %v8620_v16  ;;  %v8697_v34 = vsub.f32 %v3110_v54, %v8620_v16  ;;  %13210 = vmatpush3.msra.mxu1 %v9069_v24  ;;  %v9146_v30 = vsub.f32 %v3111_v7, %v9069_v24  ;;  %v9595_v59 = vsub.f32 %v3112_v12, %v9518_v22 }
 0x608   :  { %13182 = vmatmul.mubr.f32.vlgmr.msra.gmra.mrb[8].mxu0 %v8689_v55  ;;  %13212 = vmatmul.mubr.f32.vlgmr.msra.gmra.mrb[24].mxu1 %v9138_v4  ;;  %v10044_v32 = vsub.f32 %v3113_v33, %v16345_v31 }
 0x609   :  { %13184 = vmatprep.subr.mxu0 %v14694_v28  ;;  %13214 = vmatprep.subr.mxu1 %v14694_v28  ;;  %v8698_v2 = vand.u32 4294901760, %v8697_v34  ;;  %v9147_v52 = vand.u32 4294901760, %v9146_v30 }
 0x60a   :  { %13186 = vmatprep.mubr.msk.f32.mxu0 %vm14695_vm0, %v14694_v28  ;;  %13216 = vmatprep.mubr.msk.f32.mxu1 %vm14695_vm0, %v14694_v28  ;;  %v10045_v58 = vand.u32 4294901760, %v10044_v32 }
 0x60b   :  { %v8699_v27 = vsub.f32 %v8697_v34, %v8698_v2  ;;  %v9148_v44 = vsub.f32 %v9146_v30, %v9147_v52 }
 0x60c   :  { %v10046_v36 = vsub.f32 %v10044_v32, %v10045_v58 }
 0x60d   :  { %v8700_v46 = vand.u32 4294901760, %v8699_v27  ;;  %v9149_v39 = vand.u32 4294901760, %v9148_v44 }
 0x60e   :  { %v10047_v48 = vand.u32 4294901760, %v10046_v36 }
 0x60f   :  { %13185 = vmatpush3.msra.mxu0 %v8700_v46  ;;  %13215 = vmatpush3.msra.mxu1 %v9149_v39 }
 0x610   :  { %13187 = vmatmul.mubr.f32.vlgmr.msra.gmra.mrb[8].mxu0 %v16281_v45  ;;  %13189 = vmatprep.subr.mxu0 %v14694_v28 }
 0x611   :  { %13217 = vmatmul.mubr.f32.vlgmr.msra.gmra.mrb[24].mxu1 %v16297_v43  ;;  %13219 = vmatprep.subr.mxu1 %v14694_v28 }
 0x612   :  { %13190 = vmatpush3.msra.mxu0 %v8697_v34  ;;  %13220 = vmatpush3.msra.mxu1 %v9146_v30 }
 0x613   :  { %13191 = vmatprep.mubr.msk.f32.mxu0 %vm14695_vm0, %v14694_v28  ;;  %13194 = vmatprep.subr.mxu0 %v14694_v28 }
 0x614   :  { %13221 = vmatprep.mubr.msk.f32.mxu1 %vm14695_vm0, %v14694_v28  ;;  %13224 = vmatprep.subr.mxu1 %v14694_v28 }
 0x618   :  { %13192 = vmatmul.mubr.f32.vlgmr.msra.gmra.mrb[8].mxu0 %v16289_v63 }
 0x619   :  { %13195 = vmatpush3.msra.mxu0 %v8620_v16  ;;  %13222 = vmatmul.mubr.f32.vlgmr.msra.gmra.mrb[24].mxu1 %v9135_v56 }
 0x61a   :  { %13225 = vmatpush3.msra.mxu1 %v9069_v24  ;;  %v6800_v13 = vpop.xlane.xlu0 %6799  ;;  %13196 = vmatprep.mubr.msk.f32.mxu0 %vm14695_vm0, %v14694_v28 }
 0x61b   :  { %14528 = vrcp.f32 %v6800_v13  ;;  %13199 = vmatprep.subr.mxu0 %v14694_v28  ;;  %13226 = vmatprep.mubr.msk.f32.mxu1 %vm14695_vm0, %v14694_v28 }
 0x61c   :  { %13229 = vmatprep.subr.mxu1 %v14694_v28 }
 0x620   :  { %13197 = vmatmul.mubr.f32.vlgmr.msra.gmra.mrb[8].mxu0 %v8687_v40 }
 0x621   :  { %13200 = vmatpush3.msra.mxu0 %v8698_v2  ;;  %13227 = vmatmul.mubr.f32.vlgmr.msra.gmra.mrb[24].mxu1 %v9136_v1 }
 0x622   :  { %13230 = vmatpush3.msra.mxu1 %v9147_v52  ;;  %13201 = vmatprep.mubr.msk.f32.mxu0 %vm14695_vm0, %v14694_v28 }
 0x623   :  { %13204 = vmatprep.subr.mxu0 %v14694_v28  ;;  %13231 = vmatprep.mubr.msk.f32.mxu1 %vm14695_vm0, %v14694_v28 }
 0x624   :  { %13234 = vmatprep.subr.mxu1 %v14694_v28 }
 0x625   :  { %v14529_v26 = vpop.eup %14528 }
 0x626   :  { %v6817_v37 = vmul.f32 %v14529_v26, %v16199_v11  ;;  %v9596_v11 = vand.u32 4294901760, %v9595_v59 }
 0x628   :  { %13202 = vmatmul.mubr.f32.vlgmr.msra.gmra.mrb[8].mxu0 %v16281_v45  ;;  %v9515_v25 = vsel %vm6731_vm2, %v6817_v37, 0  ;;  %v9597_v5 = vsub.f32 %v9595_v59, %v9596_v11 }
 0x629   :  { %13205 = vmatpush3.msra.mxu0 %v8620_v16  ;;  %13232 = vmatmul.mubr.f32.vlgmr.msra.gmra.mrb[24].mxu1 %v16297_v43  ;;  %v9583_v19 = vand.u32 4294901760, %v9515_v25 }
 0x62a   :  { %13235 = vmatpush3.msra.mxu1 %v9069_v24  ;;  %13206 = vmatprep.mubr.msk.f32.mxu0 %vm14695_vm0, %v14694_v28  ;;  %v9598_v3 = vand.u32 4294901760, %v9597_v5 }
 0x62b   :  { %13236 = vmatprep.mubr.msk.f32.mxu1 %vm14695_vm0, %v14694_v28  ;;  %13239 = vmatprep.subr.mxu0 %v14694_v28  ;;  %v9584_v50 = vsub.f32 %v9515_v25, %v9583_v19 }
 0x62c   :  { %13269 = vmatprep.subr.mxu1 %v14694_v28 }
 0x62d   :  { %v9585_v0 = vand.u32 4294901760, %v9584_v50 }
 0x62f   :  { %v9586_v17 = vsub.f32 %v9584_v50, %v9585_v0 }
 0x630   :  { %13207 = vmatmul.mubr.f32.vlgmr.msra.gmra.mrb[8].mxu0 %v16281_v45 }
 0x631   :  { %13237 = vmatmul.mubr.f32.vlgmr.msra.gmra.mrb[24].mxu1 %v16297_v43  ;;  %13240 = vmatpush3.msra.mxu0 %v9518_v22  ;;  %v9587_v41 = vand.u32 4294901760, %v9586_v17 }
 0x632   :  { %13270 = vmatpush3.msra.mxu1 %v16345_v31  ;;  %13241 = vmatprep.mubr.msk.f32.mxu0 %vm14695_vm0, %v14694_v28 }
 0x633   :  { %13244 = vmatprep.subr.mxu0 %v14694_v28  ;;  %13271 = vmatprep.mubr.msk.f32.mxu1 %vm14695_vm0, %v14694_v28 }
 0x634   :  { %13242 = vmatmul.mubr.f32.vlgmr.msra.gmra.mrb[10].mxu0 %v9587_v41  ;;  %13274 = vmatprep.subr.mxu1 %v14694_v28 }
 0x635   :  { %13245 = vmatpush3.msra.mxu0 %v9598_v3  ;;  %13246 = vmatprep.mubr.msk.f32.mxu0 %vm14695_vm0, %v14694_v28 }
 0x636   :  { %13249 = vmatprep.subr.mxu0 %v14694_v28 }
 0x63c   :  { %13247 = vmatmul.mubr.f32.vlgmr.msra.gmra.mrb[10].mxu0 %v9583_v19 }
 0x63d   :  { %13250 = vmatpush3.msra.mxu0 %v9595_v59  ;;  %13251 = vmatprep.mubr.msk.f32.mxu0 %vm14695_vm0, %v14694_v28 }
 0x63e   :  { %13254 = vmatprep.subr.mxu0 %v14694_v28 }
 0x644   :  { %13252 = vmatmul.mubr.f32.vlgmr.msra.gmra.mrb[10].mxu0 %v9584_v50 }
 0x645   :  { %13255 = vmatpush3.msra.mxu0 %v9518_v22  ;;  %13256 = vmatprep.mubr.msk.f32.mxu0 %vm14695_vm0, %v14694_v28 }
 0x646   :  { %v6803_v45 = vpop.xlane.xlu1 %6802  ;;  %13259 = vmatprep.subr.mxu0 %v14694_v28 }
 0x647   :  { %14530 = vrcp.f32 %v6803_v45 }
 0x64c   :  { %13257 = vmatmul.mubr.f32.vlgmr.msra.gmra.mrb[10].mxu0 %v9585_v0 }
 0x64d   :  { %13260 = vmatpush3.msra.mxu0 %v9596_v11  ;;  %13261 = vmatprep.mubr.msk.f32.mxu0 %vm14695_vm0, %v14694_v28 }
 0x64e   :  { %13264 = vmatprep.subr.mxu0 %v14694_v28 }
 0x651   :  { %v14531_v47 = vpop.eup %14530 }
 0x652   :  { %v6819_v20 = vmul.f32 %v14531_v47, %v16231_v51 }
 0x654   :  { %13262 = vmatmul.mubr.f32.vlgmr.msra.gmra.mrb[10].mxu0 %v9583_v19  ;;  %v9964_v18 = vsel %vm6731_vm2, %v6819_v20, 0 }
 0x655   :  { %13265 = vmatpush3.msra.mxu0 %v9518_v22  ;;  %13266 = vmatprep.mubr.msk.f32.mxu0 %vm14695_vm0, %v14694_v28  ;;  %v10032_v63 = vand.u32 4294901760, %v9964_v18 }
 0x657   :  { %v10033_v35 = vsub.f32 %v9964_v18, %v10032_v63 }
 0x659   :  { %v10034_v62 = vand.u32 4294901760, %v10033_v35 }
 0x65b   :  { %v10035_v29 = vsub.f32 %v10033_v35, %v10034_v62 }
 0x65c   :  { %13267 = vmatmul.mubr.f32.vlgmr.msra.gmra.mrb[10].mxu0 %v9583_v19 }
 0x65d   :  { %v10036_v49 = vand.u32 4294901760, %v10035_v29 }
 0x65f   :  { %13272 = vmatmul.mubr.f32.vlgmr.msra.gmra.mrb[26].mxu1 %v10036_v49 }
 0x660   :  { %13275 = vmatpush3.msra.mxu1 %v10047_v48  ;;  %13276 = vmatprep.mubr.msk.f32.mxu1 %vm14695_vm0, %v14694_v28 }
 0x661   :  { %13279 = vmatprep.subr.mxu1 %v14694_v28 }
 0x665   :  { %v7265_v51 = vpop.f32.mrb[4].mxu0 }
 0x666   :  { %v7714_v21 = vpop.f32.mrb[20].mxu1  ;;  %v13088_v6 = vpop.f32.mrb[5].mxu0 }
 0x667   :  { %v13118_v40 = vpop.f32.mrb[21].mxu1  ;;  %13277 = vmatmul.mubr.f32.vlgmr.msra.gmra.mrb[26].mxu1 %v10032_v63 }
 0x668   :  { %13280 = vmatpush3.msra.mxu1 %v10044_v32  ;;  %13281 = vmatprep.mubr.msk.f32.mxu1 %vm14695_vm0, %v14694_v28 }
 0x669   :  { %13284 = vmatprep.subr.mxu1 %v14694_v28 }
 0x66f   :  { %13282 = vmatmul.mubr.f32.vlgmr.msra.gmra.mrb[26].mxu1 %v10033_v35 }
 0x670   :  { %13285 = vmatpush3.msra.mxu1 %v16345_v31  ;;  %13286 = vmatprep.mubr.msk.f32.mxu1 %vm14695_vm0, %v14694_v28 }
 0x671   :  { %13289 = vmatprep.subr.mxu1 %v14694_v28 }
 0x677   :  { %13287 = vmatmul.mubr.f32.vlgmr.msra.gmra.mrb[26].mxu1 %v10034_v62 }
 0x678   :  { %13290 = vmatpush3.msra.mxu1 %v10045_v58  ;;  %13291 = vmatprep.mubr.msk.f32.mxu1 %vm14695_vm0, %v14694_v28 }
 0x679   :  { %13294 = vmatprep.subr.mxu1 %v14694_v28 }
 0x67f   :  { %13292 = vmatmul.mubr.f32.vlgmr.msra.gmra.mrb[26].mxu1 %v10032_v63 }
 0x680   :  { %13295 = vmatpush3.msra.mxu1 %v16345_v31  ;;  %13296 = vmatprep.mubr.msk.f32.mxu1 %vm14695_vm0, %v14694_v28 }
 0x687   :  { %13297 = vmatmul.mubr.f32.vlgmr.msra.gmra.mrb[26].mxu1 %v10032_v63 }
 0x6aa   :  { %v8612_v43 = vpop.f32.mrb[22].mxu1 }
 0x6ab   :  { %v10428_v10 = vcombine.low %v7714_v21, %v8612_v43  ;;  %v10429_v14 = vcombine.high %v7714_v21, %v8612_v43  ;;  %v13178_v56 = vpop.f32.mrb[23].mxu1 }
 0x6ad   :  { %v10436_v54 = vrot.slane %v10428_v10, %v15538_v8  ;;  %v10443_v7 = vrot.slane %v10429_v14, %v15538_v8 }
 0x6c1   :  { %v8163_v9 = vpop.f32.mrb[6].mxu0 }
 0x6c2   :  { %v10412_v53 = vcombine.low %v7265_v51, %v8163_v9  ;;  %v10413_v38 = vcombine.high %v7265_v51, %v8163_v9  ;;  %v13148_v1 = vpop.f32.mrb[7].mxu0 }
 0x6c4   :  { %v10420_v61 = vrot.slane %v10412_v53, %v15538_v8  ;;  %v10427_v16 = vrot.slane %v10413_v38, %v15538_v8 }
 0x6c6   :  { %v10444_v24 = vcombine.low %v10420_v61, %v10436_v54  ;;  %v10445_v55 = vcombine.high %v10420_v61, %v10436_v54  ;;  %v10460_v28 = vcombine.low %v10427_v16, %v10443_v7  ;;  %v10461_v4 = vcombine.high %v10427_v16, %v10443_v7 }
 0x6c8   :  { %v10452_v34 = vrot.slane %v10444_v24, %v15540_v23  ;;  %v10459_v30 = vrot.slane %v10445_v55, %v15540_v23  ;;  %v10468_v2 = vrot.slane %v10460_v28, %v15540_v23  ;;  %v10475_v52 = vrot.slane %v10461_v4, %v15540_v23 }
 0x6ca   :  { %v10548_v27 = vcombine.low %v10452_v34, %v10459_v30  ;;  %v11556_v44 = vcombine.high %v10452_v34, %v10459_v30  ;;  %v10564_v46 = vcombine.low %v10468_v2, %v10475_v52  ;;  %v11557_v39 = vcombine.high %v10468_v2, %v10475_v52 }
 0x6cc   :  { %v10555_v57 = vrot.slane %v10548_v27, %v15538_v8  ;;  %v10563_v15 = vrot.slane %v11556_v44, %v15538_v8  ;;  %v10571_v13 = vrot.slane %v10564_v46, %v15538_v8  ;;  %v10579_v60 = vrot.slane %v11557_v39, %v15538_v8 }
 0x6ce   :  { %v10580_v42 = vcombine.low %v10555_v57, %v10563_v15  ;;  %v10596_v12 = vcombine.low %v10571_v13, %v10579_v60  ;;  %v10581_v22 = vcombine.high %v10555_v57, %v10563_v15  ;;  %v10597_v26 = vcombine.high %v10571_v13, %v10579_v60 }
 0x6d0   :  { %v10588_v37 = vrot.slane %v10580_v42, %v15540_v23  ;;  %v10604_v59 = vrot.slane %v10596_v12, %v15540_v23  ;;  %v10595_v25 = vrot.slane %v10581_v22, %v15540_v23  ;;  %v10611_v19 = vrot.slane %v10597_v26, %v15540_v23 }
 0x6d2   :  { %v10613_v50 = vcombine.high %v10588_v37, %v10604_v59  ;;  %v10614_v11 = vcombine.low %v10595_v25, %v10611_v19  ;;  %v10615_v33 = vcombine.high %v10595_v25, %v10611_v19  ;;  %v10612_v0 = vcombine.low %v10588_v37, %v10604_v59 }
 0x6d4   :  { %10686 = vrot.lane.b32.xlu0 %v10613_v50, %s14689_s23 }
 0x6d8   :  { %10694 = vrot.lane.b32.xlu0 %v10614_v11, %s14691_s18 }
 0x6dc   :  { %10702 = vrot.lane.b32.xlu0 %v10615_v33, %s14690_s1 }
 0x703   :  { %v9061_v17 = vpop.f32.mrb[8].mxu0 }
 0x704   :  { %v9510_v5 = vpop.f32.mrb[24].mxu1  ;;  %v13208_v31 = vpop.f32.mrb[9].mxu0 }
 0x705   :  { %v13238_v41 = vpop.f32.mrb[25].mxu1 }
 0x706   :  { %v16446_v41 = vld [vmem:[%s16812_s5] ss:$0 sm:$0xff] }
 0x72f   :  { %v9959_v3 = vpop.f32.mrb[10].mxu0 }
 0x730   :  { %v10480_v45 = vcombine.low %v9061_v17, %v9959_v3  ;;  %v10481_v47 = vcombine.high %v9061_v17, %v9959_v3  ;;  %v13268_v32 = vpop.f32.mrb[11].mxu0 }
 0x732   :  { %v10488_v21 = vrot.slane %v10480_v45, %v15538_v8  ;;  %v10495_v6 = vrot.slane %v10481_v47, %v15538_v8  ;;  %v16451_v45 = vld [vmem:[%s16813_s6] ss:$0 sm:$0xff] }
 0x746   :  { %v10687_v20 = vpop.permute.xlu0 %10686 }
 0x747   :  { %v10708_v63 = vsel %vm3114_vm1, %v10612_v0, %v10687_v20  ;;  %v14540_v20 = vld [vmem:[#allocation2] sm:$0xff] }
 0x74a   :  { %v10695_v18 = vpop.permute.xlu0 %10694 }
 0x74b   :  { %v10711_v58 = vsel %vm10710_vm3, %v10708_v63, %v10695_v18 }
 0x74e   :  { %v10703_v35 = vpop.permute.xlu0 %10702 }
 0x74f   :  { %v16410_v62 = vsel %vm10713_vm4, %v10711_v58, %v10703_v35 }
 0x750   :  { %10718 = vadd.xlane.f32.xlu0 %v16410_v62  ;;  %v10725_v36 = vmul.f32 %v16410_v62, %v16410_v62 }
 0x754   :  { %10727 = vadd.xlane.f32.xlu0 %v10725_v36  ;;  %v10765_v36 = vld [vmem:[#allocation10] sm:$0xff] }
 0x75a   :  { %v10408_v29 = vpop.f32.mrb[26].mxu1 }
 0x75b   :  { %v10496_v49 = vcombine.low %v9510_v5, %v10408_v29  ;;  %v10497_v48 = vcombine.high %v9510_v5, %v10408_v29  ;;  %v13298_v51 = vpop.f32.mrb[27].mxu1  ;;  %v10766_v29 = vld [vmem:[#allocation10 + $0x8] sm:$0xff] }
 0x75c   :  { %v10792_v51 = vand.u32 4294901760, %v10766_v29 }
 0x75d   :  { %v10504_v40 = vrot.slane %v10496_v49, %v15538_v8  ;;  %v10511_v43 = vrot.slane %v10497_v48, %v15538_v8  ;;  %v10789_v48 = vand.u32 4294901760, %v10765_v36 }
 0x75f   :  { %v10512_v10 = vcombine.low %v10488_v21, %v10504_v40  ;;  %v10513_v14 = vcombine.high %v10488_v21, %v10504_v40  ;;  %v10528_v56 = vcombine.low %v10495_v6, %v10511_v43  ;;  %v10529_v9 = vcombine.high %v10495_v6, %v10511_v43  ;;  %v10767_v40 = vld [vmem:[#allocation10 + $0x10] sm:$0xff]  ;;  %v10768_v43 = vld [vmem:[#allocation10 + $0x18] sm:$0xff] }
 0x760   :  { %v16467_v6 = vpack.c.bf16 %v10792_v51, %v10789_v48 }
 0x761   :  { %v10520_v53 = vrot.slane %v10512_v10, %v15540_v23  ;;  %v10527_v38 = vrot.slane %v10513_v14, %v15540_v23  ;;  %v10536_v1 = vrot.slane %v10528_v56, %v15540_v23  ;;  %v10543_v54 = vrot.slane %v10529_v9, %v15540_v23  ;;  %v10769_v9 = vld [vmem:[#allocation10 + $0x20] sm:$0xff] }
 0x762   :  { %14086 = vmatprep.subr.bf16.mxu0 %v16467_v6  ;;  %v10795_v10 = vand.u32 4294901760, %v10767_v40  ;;  %v10798_v14 = vand.u32 4294901760, %v10768_v43 }
 0x763   :  { %v10616_v7 = vcombine.low %v10520_v53, %v10527_v38  ;;  %v11558_v61 = vcombine.high %v10520_v53, %v10527_v38  ;;  %v10632_v16 = vcombine.low %v10536_v1, %v10543_v54  ;;  %v11559_v24 = vcombine.high %v10536_v1, %v10543_v54  ;;  %14088 = vmatpush3.bf16.msra.mxu0 %v16467_v6  ;;  %v10770_v53 = vld [vmem:[#allocation10 + $0x28] sm:$0xff]  ;;  %v16475_v54 = vld [vmem:[#allocation10 + $0x30] sm:$0xff] }
 0x764   :  { %v16471_v56 = vpack.c.bf16 %v10798_v14, %v10795_v10  ;;  %v10801_v38 = vand.u32 4294901760, %v10769_v9  ;;  %v10804_v1 = vand.u32 4294901760, %v10770_v53 }
 0x765   :  { %v10623_v55 = vrot.slane %v10616_v7, %v15538_v8  ;;  %v10631_v28 = vrot.slane %v11558_v61, %v15538_v8  ;;  %v10639_v4 = vrot.slane %v10632_v16, %v15538_v8  ;;  %v10647_v34 = vrot.slane %v11559_v24, %v15538_v8  ;;  %v16477_v7 = vld [vmem:[#allocation10 + $0x38] sm:$0xff]  ;;  %v16479_v61 = vld [vmem:[#allocation10 + $0x40] sm:$0xff] }
 0x766   :  { %14090 = vmatprep.subr.bf16.mxu0 %v16471_v56  ;;  %v16481_v16 = vpack.c.bf16 %v10804_v1, %v10801_v38  ;;  %v10807_v24 = vand.u32 4294901760, %v16475_v54 }
 0x767   :  { %v10648_v30 = vcombine.low %v10623_v55, %v10631_v28  ;;  %v10664_v2 = vcombine.low %v10639_v4, %v10647_v34  ;;  %v10649_v52 = vcombine.high %v10623_v55, %v10631_v28  ;;  %v10665_v27 = vcombine.high %v10639_v4, %v10647_v34  ;;  %14092 = vmatpush3.bf16.msra.mxu0 %v16471_v56  ;;  %v16485_v28 = vld [vmem:[#allocation10 + $0x48] sm:$0xff] }
 0x768   :  { %v10810_v55 = vand.u32 4294901760, %v16477_v7  ;;  %v10813_v4 = vand.u32 4294901760, %v16479_v61  ;;  %v10816_v34 = vand.u32 4294901760, %v16485_v28  ;;  %14094 = vmatprep.subr.bf16.mxu0 %v16481_v16 }
 0x769   :  { %v10656_v44 = vrot.slane %v10648_v30, %v15540_v23  ;;  %v10672_v46 = vrot.slane %v10664_v2, %v15540_v23  ;;  %v10663_v39 = vrot.slane %v10649_v52, %v15540_v23  ;;  %v10679_v57 = vrot.slane %v10665_v27, %v15540_v23  ;;  %v16489_v30 = vld [vmem:[#allocation10 + $0x50] sm:$0xff]  ;;  %v16491_v2 = vld [vmem:[#allocation10 + $0x58] sm:$0xff] }
 0x76a   :  { %v16494_v52 = vpack.c.bf16 %v10810_v55, %v10807_v24  ;;  %v16497_v27 = vsub.f32 %v10765_v36, %v10789_v48  ;;  %v16570_v36 = vsub.f32 %v10769_v9, %v10801_v38  ;;  %v16590_v9 = vsub.f32 %v16477_v7, %v10810_v55 }
 0x76b   :  { %v10681_v15 = vcombine.high %v10656_v44, %v10672_v46  ;;  %v10682_v13 = vcombine.low %v10663_v39, %v10679_v57  ;;  %v10683_v60 = vcombine.high %v10663_v39, %v10679_v57  ;;  %v10680_v42 = vcombine.low %v10656_v44, %v10672_v46  ;;  %14096 = vmatpush3.bf16.msra.mxu0 %v16481_v16  ;;  %v16508_v57 = vld [vmem:[#allocation10 + $0x60] sm:$0xff] }
 0x76c   :  { %14098 = vmatprep.subr.bf16.mxu0 %v16494_v52  ;;  %v16504_v44 = vpack.c.bf16 %v10816_v34, %v10813_v4  ;;  %v10819_v46 = vand.u32 4294901760, %v16489_v30  ;;  %v10822_v39 = vand.u32 4294901760, %v16491_v2  ;;  %v16607_v7 = vsub.f32 %v16485_v28, %v10816_v34 }
 0x76d   :  { %10688 = vrot.lane.b32.xlu1 %v10681_v15, %s14689_s23  ;;  %v16510_v15 = vsub.f32 %v10766_v29, %v10792_v51  ;;  %v16572_v29 = vsub.f32 %v10770_v53, %v10804_v1  ;;  %v16837_v51 = vand.u32 4294901760, %v16570_v36 }
 0x76e   :  { %v16623_v28 = vsub.f32 %v16489_v30, %v10819_v46  ;;  %v16628_v34 = vsub.f32 %v16491_v2, %v10822_v39 }
 0x76f   :  { %14100 = vmatpush3.bf16.msra.mxu0 %v16494_v52 }
 0x770   :  { %14102 = vmatprep.subr.bf16.mxu0 %v16504_v44 }
 0x771   :  { %10696 = vrot.lane.b32.xlu1 %v10682_v13, %s14691_s18  ;;  %v16512_v13 = vld [vmem:[#allocation10 + $0x68] sm:$0xff] }
 0x773   :  { %14104 = vmatpush3.bf16.msra.mxu0 %v16504_v44 }
 0x775   :  { %10704 = vrot.lane.b32.xlu1 %v10683_v60, %s14690_s1  ;;  %v10825_v60 = vand.u32 4294901760, %v16508_v57 }
 0x777   :  { %v16643_v2 = vsub.f32 %v16508_v57, %v10825_v60 }
 0x7dd   :  { %v10719_v8 = vpop.xlane.xlu0 %10718 }
 0x7de   :  { %v10723_v12 = vmul.f32 0.0078125, %v10719_v8  ;;  %v10828_v8 = vand.u32 4294901760, %v16512_v13 }
 0x7df   :  { %v10689_v22 = vpop.permute.xlu1 %10688 }
 0x7e0   :  { %v10733_v37 = vmul.f32 %v10723_v12, %v10723_v12  ;;  %v10709_v23 = vsel %vm3114_vm1, %v10680_v42, %v10689_v22  ;;  %v10737_v5 = vsub.f32 %v16410_v62, %v10723_v12  ;;  %v16521_v42 = vpack.c.bf16 %v10822_v39, %v10819_v46  ;;  %v16524_v12 = vld [vmem:[#allocation10 + $0x70] sm:$0xff] }
 0x7e1   :  { %v10728_v26 = vpop.xlane.xlu0 %10727  ;;  %v10892_v22 = vand.u32 4294901760, %v16497_v27  ;;  %v16648_v46 = vsub.f32 %v16512_v13, %v10828_v8 }
 0x7e2   :  { %v10731_v59 = vmul.f32 0.0078125, %v10728_v26  ;;  %v10899_v26 = vand.u32 4294901760, %v16510_v15  ;;  %14106 = vmatprep.subr.bf16.mxu0 %v16521_v42 }
 0x7e3   :  { %v10697_v25 = vpop.permute.xlu1 %10696  ;;  %14108 = vmatpush3.bf16.msra.mxu0 %v16521_v42 }
 0x7e4   :  { %v10735_v19 = vsub.f32 %v10731_v59, %v10733_v37  ;;  %v10712_v11 = vsel %vm10710_vm3, %v10709_v23, %v10697_v25  ;;  %v16528_v37 = vld [vmem:[#allocation10 + $0x78] sm:$0xff]  ;;  %v10831_v59 = vand.u32 4294901760, %v16524_v12  ;;  %v16537_v25 = vpack.c.bf16 %v10828_v8, %v10825_v60 }
 0x7e5   :  { %v10893_v23 = vsub.f32 %v16497_v27, %v10892_v22 }
 0x7e6   :  { %v10739_v50 = vadd.f32 1e-05, %v10735_v19  ;;  %v10834_v19 = vand.u32 4294901760, %v16528_v37  ;;  %14110 = vmatprep.subr.bf16.mxu0 %v16537_v25  ;;  %v16658_v57 = vsub.f32 %v16524_v12, %v10831_v59 }
 0x7e7   :  { %v10705_v33 = vpop.permute.xlu1 %10704  ;;  %14112 = vmatpush3.bf16.msra.mxu0 %v16537_v25 }
 0x7e8   :  { %14532 = vrsqrt.f32 %v10739_v50  ;;  %v16437_v0 = vsel %vm10713_vm4, %v10712_v11, %v10705_v33  ;;  %v10900_v50 = vsub.f32 %v16510_v15, %v10899_v26  ;;  %v16552_v11 = vpack.c.bf16 %v10834_v19, %v10831_v59 }
 0x7e9   :  { %10720 = vadd.xlane.f32.xlu1 %v16437_v0  ;;  %v10726_v17 = vmul.f32 %v16437_v0, %v16437_v0  ;;  %v10894_v33 = vand.u32 4294901760, %v10893_v23  ;;  %v16834_v23 = vand.u32 4294901760, %v16590_v9  ;;  %v16663_v13 = vsub.f32 %v16528_v37, %v10834_v19 }
 0x7ea   :  { %14114 = vmatprep.subr.bf16.mxu0 %v16552_v11 }
 0x7eb   :  { %10729 = vadd.xlane.f32.xlu0 %v10726_v17  ;;  %v10901_v17 = vand.u32 4294901760, %v10900_v50  ;;  %14116 = vmatpush3.bf16.msra.mxu0 %v16552_v11 }
 0x7f2   :  { %v14533_v31 = vpop.eup %14532 }
 0x7f3   :  { %v10743_v3 = vmul.f32 %v14533_v31, %v10737_v5  ;;  %v16554_v5 = vsub.f32 %v10767_v40, %v10795_v10  ;;  %v16556_v31 = vsub.f32 %v10768_v43, %v10798_v14  ;;  %v10921_v43 = vsub.f32 %v16570_v36, %v16837_v51  ;;  %v14541_v51 = vld [vmem:[#allocation2 + $0x8] sm:$0xff] }
 0x7f4   :  { %v16587_v14 = vsub.f32 %v16475_v54, %v10807_v24  ;;  %v16602_v54 = vsub.f32 %v16479_v61, %v10813_v4  ;;  %v10942_v24 = vsub.f32 %v16590_v9, %v16834_v23 }
 0x7f5   :  { %v10751_v47 = vmul.f32 %v16446_v41, %v10743_v3  ;;  %v16560_v3 = vpack.c.bf16 %v10901_v17, %v10894_v33  ;;  %v10922_v53 = vand.u32 4294901760, %v10921_v43 }
 0x7f6   :  { %v16835_v1 = vand.u32 4294901760, %v16587_v14  ;;  %v16833_v17 = vand.u32 4294901760, %v16602_v54 }
 0x7f7   :  { %v10759_v32 = vadd.f32 %v16451_v45, %v10751_v47  ;;  %v16839_v47 = vand.u32 4294901760, %v16554_v5  ;;  %14118 = vmatprep.subr.bf16.mxu0 %v16560_v3 }
 0x7f8   :  { %v10935_v33 = vsub.f32 %v16587_v14, %v16835_v1  ;;  %v10949_v61 = vsub.f32 %v16602_v54, %v16833_v17 }
 0x7f9   :  { %v16455_v18 = vadd.f32 %v14540_v20, %v10759_v32  ;;  %v16838_v32 = vand.u32 4294901760, %v16556_v31  ;;  %v10907_v20 = vsub.f32 %v16554_v5, %v16839_v47 }
 0x7fa   :  { %v10936_v55 = vand.u32 4294901760, %v10935_v33 }
 0x7fb   :  { %v10763_v63 = vmax.f32 %v16455_v18, 0.0 }
 0x7fd   :  { %v16458_v58 = vand.u32 4294901760, %v10763_v63 }
 0x7ff   :  { %v16461_v35 = vsub.f32 %v10763_v63, %v16458_v58  ;;  %v10914_v63 = vsub.f32 %v16556_v31, %v16838_v32 }
 0x801   :  { %v10871_v62 = vand.u32 4294901760, %v16461_v35  ;;  %v10915_v48 = vand.u32 4294901760, %v10914_v63  ;;  %v10943_v63 = vand.u32 4294901760, %v10942_v24 }
 0x803   :  { %v10872_v49 = vsub.f32 %v16461_v35, %v10871_v62 }
 0x805   :  { %v10873_v21 = vand.u32 4294901760, %v10872_v49  ;;  %v10908_v49 = vand.u32 4294901760, %v10907_v20  ;;  %v16832_v20 = vand.u32 4294901760, %v16607_v7 }
 0x807   :  { %13331 = vmatprep.mubr.f32.mxu0 %v10873_v21  ;;  %v16836_v21 = vand.u32 4294901760, %v16572_v29  ;;  %v16578_v40 = vpack.c.bf16 %v10915_v48, %v10908_v49  ;;  %v10956_v4 = vsub.f32 %v16607_v7, %v16832_v20  ;;  %v16630_v49 = vpack.c.bf16 %v10943_v63, %v10936_v55 }
 0x808   :  { %v10950_v48 = vand.u32 4294901760, %v10949_v61  ;;  %v16829_v55 = vand.u32 4294901760, %v16643_v2  ;;  %v16827_v63 = vand.u32 4294901760, %v16648_v46 }
 0x809   :  { %v10928_v10 = vsub.f32 %v16572_v29, %v16836_v21  ;;  %v10957_v43 = vand.u32 4294901760, %v10956_v4 }
 0x80a   :  { %v10977_v4 = vsub.f32 %v16643_v2, %v16829_v55  ;;  %v10984_v60 = vsub.f32 %v16648_v46, %v16827_v63  ;;  %v14165_v63 = vpack.c.bf16 %v16607_v7, %v16602_v54 }
 0x80b   :  { %v10929_v38 = vand.u32 4294901760, %v10928_v10  ;;  %v16831_v10 = vand.u32 4294901760, %v16623_v28 }
 0x80c   :  { %v10978_v8 = vand.u32 4294901760, %v10977_v4  ;;  %v14153_v4 = vpack.c.bf16 %v16556_v31, %v16554_v5 }
 0x80d   :  { %v16594_v50 = vpack.c.bf16 %v10929_v38, %v10922_v53  ;;  %v16830_v53 = vand.u32 4294901760, %v16628_v34  ;;  %v14133_v38 = vpack.c.bf16 %v10957_v43, %v10950_v48  ;;  %v10963_v33 = vsub.f32 %v16623_v28, %v16831_v10 }
 0x80e   :  { %v16826_v48 = vand.u32 4294901760, %v16658_v57  ;;  %v16828_v43 = vand.u32 4294901760, %v16663_v13 }
 0x80f   :  { %v10970_v30 = vsub.f32 %v16628_v34, %v16830_v53  ;;  %v10964_v39 = vand.u32 4294901760, %v10963_v33  ;;  %v10985_v33 = vand.u32 4294901760, %v10984_v60  ;;  %v14157_v60 = vpack.c.bf16 %v16572_v29, %v16570_v36 }
 0x810   :  { %v10991_v12 = vsub.f32 %v16658_v57, %v16826_v48  ;;  %v10998_v59 = vsub.f32 %v16663_v13, %v16828_v43  ;;  %v14161_v48 = vpack.c.bf16 %v16590_v9, %v16587_v14 }
 0x811   :  { %v10971_v24 = vand.u32 4294901760, %v10970_v30  ;;  %v14141_v37 = vpack.c.bf16 %v10985_v33, %v10978_v8  ;;  %v14169_v8 = vpack.c.bf16 %v16628_v34, %v16623_v28  ;;  %v14173_v33 = vpack.c.bf16 %v16648_v46, %v16643_v2 }
 0x812   :  { %v10992_v19 = vand.u32 4294901760, %v10991_v12  ;;  %v10999_v30 = vand.u32 4294901760, %v10998_v59  ;;  %v14177_v12 = vpack.c.bf16 %v16663_v13, %v16658_v57 }
 0x813   :  { %v14137_v61 = vpack.c.bf16 %v10971_v24, %v10964_v39  ;;  %v14149_v39 = vpack.c.bf16 %v16510_v15, %v16497_v27  ;;  %v16850_v27 = vand.u32 4294901760, %v16572_v29  ;;  %v16851_v15 = vand.u32 4294901760, %v16587_v14 }
 0x814   :  { %v14145_v24 = vpack.c.bf16 %v10999_v30, %v10992_v19  ;;  %v16856_v29 = vand.u32 4294901760, %v16628_v34 }
 0x876   :  { %v10721_v59 = vpop.xlane.xlu1 %10720 }
 0x877   :  { %v10724_v19 = vmul.f32 0.0078125, %v10721_v59 }
 0x878   :  { %v10730_v30 = vpop.xlane.xlu0 %10729 }
 0x879   :  { %v10734_v43 = vmul.f32 %v10724_v19, %v10724_v19  ;;  %v10732_v55 = vmul.f32 0.0078125, %v10730_v30  ;;  %v10738_v20 = vsub.f32 %v16437_v0, %v10724_v19  ;;  %v14213_v0 = vpack.c.bf16 %v10899_v26, %v10892_v22 }
 0x87a   :  { %v16852_v22 = vand.u32 4294901760, %v16590_v9  ;;  %v16859_v9 = vand.u32 4294901760, %v16658_v57 }
 0x87b   :  { %v10736_v53 = vsub.f32 %v10732_v55, %v10734_v43 }
 0x87c   :  { %v14225_v26 = vpack.c.bf16 %v16852_v22, %v16851_v15 }
 0x87d   :  { %v10740_v10 = vadd.f32 1e-05, %v10736_v53 }
 0x87f   :  { %14534 = vrsqrt.f32 %v10740_v10 }
 0x889   :  { %v14535_v17 = vpop.eup %14534 }
 0x88a   :  { %v10744_v23 = vmul.f32 %v14535_v17, %v10738_v20 }
 0x88c   :  { %v10752_v1 = vmul.f32 %v16446_v41, %v10744_v23  ;;  %v16847_v41 = vand.u32 4294901760, %v16554_v5  ;;  %v16853_v5 = vand.u32 4294901760, %v16602_v54 }
 0x88e   :  { %v10760_v21 = vadd.f32 %v16451_v45, %v10752_v1  ;;  %v16848_v45 = vand.u32 4294901760, %v16556_v31  ;;  %v16854_v31 = vand.u32 4294901760, %v16607_v7  ;;  %v16860_v1 = vand.u32 4294901760, %v16663_v13 }
 0x890   :  { %v16695_v32 = vadd.f32 %v14541_v51, %v10760_v21  ;;  %v16857_v21 = vand.u32 4294901760, %v16643_v2  ;;  %v14241_v23 = vpack.c.bf16 %v16860_v1, %v16859_v9 }
 0x892   :  { %v10764_v47 = vmax.f32 %v16695_v32, 0.0 }
 0x894   :  { %v16698_v59 = vand.u32 4294901760, %v10764_v47 }
 0x896   :  { %v10880_v30 = vsub.f32 %v10764_v47, %v16698_v59  ;;  %v14229_v47 = vpack.c.bf16 %v16854_v31, %v16853_v5 }
 0x898   :  { %v10881_v55 = vand.u32 4294901760, %v10880_v30 }
 0x89a   :  { %v10882_v53 = vsub.f32 %v10880_v30, %v10881_v55 }
 0x89c   :  { %v10883_v10 = vand.u32 4294901760, %v10882_v53 }
 0x89e   :  { %13332 = vmatmul.mubr.f32.vlgmr.msra.gmra.mrb[12].mxu0 %v10883_v10 }
 0x89f   :  { %14120 = vmatpush3.bf16.msra.mxu0 %v16560_v3  ;;  %13366 = vmatprep.mubr.f32.mxu0 %v16458_v58 }
 0x8a0   :  { %14122 = vmatprep.subr.bf16.mxu0 %v16578_v40 }
 0x8a3   :  { %14124 = vmatpush3.bf16.msra.mxu0 %v16578_v40  ;;  %v16858_v40 = vand.u32 4294901760, %v16648_v46 }
 0x8a4   :  { %14126 = vmatprep.subr.bf16.mxu0 %v16594_v50 }
 0x8a5   :  { %v14237_v14 = vpack.c.bf16 %v16858_v40, %v16857_v21 }
 0x8a7   :  { %14128 = vmatpush3.bf16.msra.mxu0 %v16594_v50 }
 0x8a8   :  { %14130 = vmatprep.subr.bf16.mxu0 %v16630_v49 }
 0x8ab   :  { %14132 = vmatpush3.bf16.msra.mxu0 %v16630_v49 }
 0x8ac   :  { %14134 = vmatprep.subr.bf16.mxu0 %v14133_v38 }
 0x8af   :  { %14136 = vmatpush3.bf16.msra.mxu0 %v14133_v38 }
 0x8b0   :  { %14138 = vmatprep.subr.bf16.mxu0 %v14137_v61 }
 0x8b3   :  { %14140 = vmatpush3.bf16.msra.mxu0 %v14137_v61 }
 0x8b4   :  { %14142 = vmatprep.subr.bf16.mxu0 %v14141_v37 }
 0x8b7   :  { %14144 = vmatpush3.bf16.msra.mxu0 %v14141_v37 }
 0x8b8   :  { %14146 = vmatprep.subr.bf16.mxu0 %v14145_v24 }
 0x8bb   :  { %14148 = vmatpush3.bf16.msra.mxu0 %v14145_v24 }
 0x8bc   :  { %14150 = vmatprep.subr.bf16.mxu0 %v14149_v39 }
 0x8be   :  { %13367 = vmatmul.mubr.f32.vlgmr.msra.gmra.mrb[12].mxu0 %v16698_v59 }
 0x8bf   :  { %14152 = vmatpush3.bf16.msra.mxu0 %v14149_v39  ;;  %13401 = vmatprep.mubr.f32.mxu0 %v16461_v35  ;;  %v14217_v35 = vpack.c.bf16 %v16848_v45, %v16847_v41  ;;  %v11564_v39 = vld [vmem:[%s16817_s10] ss:$0 sm:$0xff] }
 0x8c0   :  { %14154 = vmatprep.subr.bf16.mxu0 %v14153_v4 }
 0x8c3   :  { %14156 = vmatpush3.bf16.msra.mxu0 %v14153_v4 }
 0x8c4   :  { %14158 = vmatprep.subr.bf16.mxu0 %v14157_v60 }
 0x8c7   :  { %14160 = vmatpush3.bf16.msra.mxu0 %v14157_v60 }
 0x8c8   :  { %14162 = vmatprep.subr.bf16.mxu0 %v14161_v48 }
 0x8cb   :  { %14164 = vmatpush3.bf16.msra.mxu0 %v14161_v48  ;;  %v11563_v48 = vld [vmem:[%s16816_s9] ss:$0 sm:$0xff]  ;;  %s14652_s9 = scalar_lea.vmem %s11526_s3, 256 }
 0x8cc   :  { %14166 = vmatprep.subr.bf16.mxu0 %v14165_v63  ;;  %p14653_p12 = scmp.ne.s32.totalorder %s11526_s3, %s14652_s9  ;;  %p14658_p0 = scmp.lt.s32.totalorder %s14652_s9, %s14652_s9 }
 0x8ce   :  { %p14659_p1 = por %p14658_p0, %p14657_p13 }
 0x8cf   :  { %14168 = vmatpush3.bf16.msra.mxu0 %v14165_v63 }
 0x8d0   :  { %14170 = vmatprep.subr.bf16.mxu0 %v14169_v8  ;;  %p14660_p2 = pnand %p14659_p1, %p14653_p12 }
 0x8d3   :  { %14172 = vmatpush3.bf16.msra.mxu0 %v14169_v8 }
 0x8d4   :  { %14174 = vmatprep.subr.bf16.mxu0 %v14173_v33 }
 0x8d7   :  { %14176 = vmatpush3.bf16.msra.mxu0 %v14173_v33 }
 0x8d8   :  { %14178 = vmatprep.subr.bf16.mxu0 %v14177_v12 }
 0x8db   :  { %14180 = vmatpush3.bf16.msra.mxu0 %v14177_v12 }
 0x8dc   :  { %14182 = vmatprep.subr.bf16.mxu0 %v16467_v6 }
 0x8de   :  { %13402 = vmatmul.mubr.f32.vlgmr.msra.gmra.mrb[12].mxu0 %v10880_v30 }
 0x8df   :  { %14184 = vmatpush3.bf16.msra.mxu0 %v16467_v6  ;;  %13436 = vmatprep.mubr.f32.mxu0 %v10871_v62  ;;  %v16849_v62 = vand.u32 4294901760, %v16570_v36  ;;  %v16855_v36 = vand.u32 4294901760, %v16623_v28 }
 0x8e0   :  { %14186 = vmatprep.subr.bf16.mxu0 %v16471_v56 }
 0x8e1   :  { %v14221_v3 = vpack.c.bf16 %v16850_v27, %v16849_v62  ;;  %v14233_v51 = vpack.c.bf16 %v16856_v29, %v16855_v36 }
 0x8e3   :  { %14188 = vmatpush3.bf16.msra.mxu0 %v16471_v56 }
 0x8e4   :  { %14190 = vmatprep.subr.bf16.mxu0 %v16481_v16 }
 0x8e7   :  { %14192 = vmatpush3.bf16.msra.mxu0 %v16481_v16 }
 0x8e8   :  { %14194 = vmatprep.subr.bf16.mxu0 %v16494_v52 }
 0x8eb   :  { %14196 = vmatpush3.bf16.msra.mxu0 %v16494_v52 }
 0x8ec   :  { %14198 = vmatprep.subr.bf16.mxu0 %v16504_v44 }
 0x8ef   :  { %14200 = vmatpush3.bf16.msra.mxu0 %v16504_v44 }
 0x8f0   :  { %14202 = vmatprep.subr.bf16.mxu0 %v16521_v42 }
 0x8f3   :  { %14204 = vmatpush3.bf16.msra.mxu0 %v16521_v42 }
 0x8f4   :  { %14206 = vmatprep.subr.bf16.mxu0 %v16537_v25 }
 0x8f7   :  { %14208 = vmatpush3.bf16.msra.mxu0 %v16537_v25 }
 0x8f8   :  { %14210 = vmatprep.subr.bf16.mxu0 %v16552_v11 }
 0x8fb   :  { %14212 = vmatpush3.bf16.msra.mxu0 %v16552_v11 }
 0x8fc   :  { %14214 = vmatprep.subr.bf16.mxu0 %v14213_v0 }
 0x8fe   :  { %13437 = vmatmul.mubr.f32.vlgmr.msra.gmra.mrb[12].mxu0 %v10881_v55 }
 0x8ff   :  { %14216 = vmatpush3.bf16.msra.mxu0 %v14213_v0  ;;  %13471 = vmatprep.mubr.f32.mxu0 %v16458_v58 }
 0x900   :  { %14218 = vmatprep.subr.bf16.mxu0 %v14217_v35 }
 0x903   :  { %14220 = vmatpush3.bf16.msra.mxu0 %v14217_v35 }
 0x904   :  { %14222 = vmatprep.subr.bf16.mxu0 %v14221_v3 }
 0x907   :  { %14224 = vmatpush3.bf16.msra.mxu0 %v14221_v3 }
 0x908   :  { %14226 = vmatprep.subr.bf16.mxu0 %v14225_v26 }
 0x90b   :  { %14228 = vmatpush3.bf16.msra.mxu0 %v14225_v26 }
 0x90c   :  { %14230 = vmatprep.subr.bf16.mxu0 %v14229_v47 }
 0x90f   :  { %14232 = vmatpush3.bf16.msra.mxu0 %v14229_v47 }
 0x910   :  { %14234 = vmatprep.subr.bf16.mxu0 %v14233_v51 }
 0x913   :  { %14236 = vmatpush3.bf16.msra.mxu0 %v14233_v51 }
 0x914   :  { %14238 = vmatprep.subr.bf16.mxu0 %v14237_v14 }
 0x917   :  { %14240 = vmatpush3.bf16.msra.mxu0 %v14237_v14 }
 0x918   :  { %14242 = vmatprep.subr.bf16.mxu0 %v14241_v23 }
 0x91b   :  { %14244 = vmatpush3.bf16.msra.mxu0 %v14241_v23 }
 0x91c   :  { %14246 = vmatprep.subr.bf16.mxu0 %v16467_v6 }
 0x91e   :  { %13472 = vmatmul.mubr.f32.vlgmr.msra.gmra.mrb[12].mxu0 %v16698_v59 }
 0x91f   :  { %14248 = vmatpush3.bf16.msra.mxu0 %v16467_v6  ;;  %13506 = vmatprep.mubr.f32.mxu0 %v16458_v58  ;;  %v11562_v58 = vld [vmem:[%s16815_s8] ss:$0 sm:$0xff] }
 0x920   :  { %14250 = vmatprep.subr.bf16.mxu0 %v16471_v56 }
 0x923   :  { %14252 = vmatpush3.bf16.msra.mxu0 %v16471_v56 }
 0x924   :  { %14254 = vmatprep.subr.bf16.mxu0 %v16481_v16 }
 0x927   :  { %14256 = vmatpush3.bf16.msra.mxu0 %v16481_v16 }
 0x928   :  { %14258 = vmatprep.subr.bf16.mxu0 %v16494_v52 }
 0x92b   :  { %14260 = vmatpush3.bf16.msra.mxu0 %v16494_v52 }
 0x92c   :  { %14262 = vmatprep.subr.bf16.mxu0 %v16504_v44 }
 0x92f   :  { %14264 = vmatpush3.bf16.msra.mxu0 %v16504_v44 }
 0x930   :  { %14266 = vmatprep.subr.bf16.mxu0 %v16521_v42 }
 0x933   :  { %14268 = vmatpush3.bf16.msra.mxu0 %v16521_v42 }
 0x934   :  { %14270 = vmatprep.subr.bf16.mxu0 %v16537_v25 }
 0x937   :  { %14272 = vmatpush3.bf16.msra.mxu0 %v16537_v25 }
 0x938   :  { %14274 = vmatprep.subr.bf16.mxu0 %v16552_v11 }
 0x93b   :  { %14276 = vmatpush3.bf16.msra.mxu0 %v16552_v11 }
 0x93e   :  { %13507 = vmatmul.mubr.f32.vlgmr.msra.gmra.mrb[12].mxu0 %v16698_v59 }
 0xa11   :  { %v13508_v6 = vpop.f32.mrb[12].mxu0 }
 0xa12   :  { %v14285_v56 = vadd.f32 %v13508_v6, %v11562_v58  ;;  %v11462_v16 = vpop.f32.mrb[13].mxu0 }
 0xa13   :  { %v14286_v52 = vadd.f32 %v11562_v58, %v11462_v16 }
 0xa14   :  { %11476 = vadd.xlane.f32.xlu0 %v14285_v56  ;;  %v11481_v44 = vmul.f32 %v14285_v56, %v14285_v56 }
 0xa15   :  { %11474 = vadd.xlane.f32.xlu1 %v14286_v52  ;;  %v11480_v42 = vmul.f32 %v14286_v52, %v14286_v52 }
 0xa18   :  { %11484 = vadd.xlane.f32.xlu0 %v11481_v44 }
 0xa19   :  { %11482 = vadd.xlane.f32.xlu1 %v11480_v42 }
 0xaa1   :  { %v11477_v25 = vpop.xlane.xlu0 %11476 }
 0xaa2   :  { %v11479_v50 = vmul.f32 0.0078125, %v11477_v25  ;;  %v11475_v54 = vpop.xlane.xlu1 %11474 }
 0xaa3   :  { %v11478_v11 = vmul.f32 0.0078125, %v11475_v54 }
 0xaa4   :  { %v11489_v17 = vmul.f32 %v11479_v50, %v11479_v50  ;;  %v11493_v61 = vsub.f32 %v14285_v56, %v11479_v50 }
 0xaa5   :  { %v11485_v7 = vpop.xlane.xlu0 %11484  ;;  %v11488_v34 = vmul.f32 %v11478_v11, %v11478_v11  ;;  %v11492_v13 = vsub.f32 %v14286_v52, %v11478_v11 }
 0xaa6   :  { %v11487_v20 = vmul.f32 0.0078125, %v11485_v7  ;;  %v11483_v28 = vpop.xlane.xlu1 %11482 }
 0xaa7   :  { %v11486_v49 = vmul.f32 0.0078125, %v11483_v28 }
 0xaa8   :  { %v11491_v38 = vsub.f32 %v11487_v20, %v11489_v17 }
 0xaa9   :  { %v11490_v2 = vsub.f32 %v11486_v49, %v11488_v34 }
 0xaaa   :  { %v11495_v46 = vadd.f32 1e-05, %v11491_v38 }
 0xaab   :  { %v11494_v63 = vadd.f32 1e-05, %v11490_v2 }
 0xaac   :  { %14536 = vrsqrt.f32 %v11495_v46 }
 0xaad   :  { %14538 = vrsqrt.f32 %v11494_v63 }
 0xab6   :  { %v14537_v57 = vpop.eup %14536 }
 0xab7   :  { %v14539_v43 = vpop.eup %14538  ;;  %v11499_v37 = vmul.f32 %v14537_v57, %v11493_v61 }
 0xab8   :  { %v11498_v24 = vmul.f32 %v14539_v43, %v11492_v13 }
 0xab9   :  { %v11507_v4 = vmul.f32 %v11563_v48, %v11499_v37 }
 0xaba   :  { %v11506_v60 = vmul.f32 %v11563_v48, %v11498_v24 }
 0xabb   :  { %v11515_v8 = vadd.f32 %v11564_v39, %v11507_v4 }
 0xabc   :  { %v11514_v33 = vadd.f32 %v11564_v39, %v11506_v60 }
 0xabd   :  { %v11517_v12 = vadd.f32 %v11515_v8, %v16695_v32 }
 0xabe   :  { %v11516_v19 = vadd.f32 %v11514_v33, %v16455_v18 }
 0xabf   :  { %11519 = vst [vmem:[#allocation11 + $0x8] sm:$0xff] %v11517_v12 }
 0xac0   :  { %11518 = vst [vmem:[#allocation11] sm:$0xff] %v11516_v19 }
 0xac1   :  { %14663 = shalt.err (!%p14660_p2)
}
 0xac2   :  { %s14664_s19 = scalar_lea.hbm %s16818_s11, 256 }
 0xac3   :  { %p14665_p3 = scmp.ne.s32.totalorder %s16818_s11, %s14664_s19  ;;  %p14668_p4 = scmp.lt.u32.totalorder %s14664_s19, %s16818_s11 }
 0xac5   :  { %p14670_p5 = pnand %p14668_p4, %p14665_p3 }
 0xac7   :  { %14673 = shalt.err (!%p14670_p5)
}
 0xac8   :  { %11531 = dma.vmem_to_hbm [thread:$0]  %s11526_s3, 256, %s16818_s11, [#allocation4], %s14684_s29, %s14684_s29, %s14685_s30  }
 0xac9   :  { %14680 = dma.done.wait [#allocation4], 256  }
 0xaca   :  { %14681 = vsyncadd [#allocation4], 4294967040 }
 0xacb   :  { %11535 = vsyncpa [#allocation3], 1 }
 0xacc   :  { %11536 = vsyncpa [#allocation6], 1 }
 0xacd   :  { %11537 = vsyncpa [#allocation9], 1 }
 0xace   :  { %11538 = vsyncpa [#allocation4], 1 }

</bundles_post_ra>
